<compile_context>
chip_gen: v7x
topology: tpu7x:2x2x1
jax: 0.10.0
libtpu: 0.0.40
codegen_flags: <defaults>
</compile_context>

<pallas_src>
import jax
import jax.numpy as jnp
from jax import lax
from jax.experimental import pallas as pl
from jax.experimental.pallas import tpu as pltpu


def _nhn_kernel(x_ref, w1_ref, b1_ref, w2_ref, b2_ref, w3_ref, b3_ref, out_ref):
    # Contract last axes: [B, F] x [H, F] -> [B, H]  (== x @ W.T, nn.Linear layout)
    contract_last = (((1,), (1,)), ((), ()))

    h1 = lax.dot_general(x_ref[...], w1_ref[...],
                         dimension_numbers=contract_last,
                         preferred_element_type=jnp.float32)
    h1 = jnp.maximum(h1 + b1_ref[...], 0.0)                  # relu(fc1)

    h2 = lax.dot_general(h1, w2_ref[...],
                         dimension_numbers=contract_last,
                         preferred_element_type=jnp.float32)
    h2 = jnp.maximum(h2 + b2_ref[...], 0.0)                  # relu(fc2)

    h3 = lax.dot_general(h2, w3_ref[...],
                         dimension_numbers=contract_last,
                         preferred_element_type=jnp.float32)
    out_ref[...] = (h3 + b3_ref[...]).astype(out_ref.dtype)  # fc3 (no activation)


def neural_hamiltonian_forward(x, w1, b1, w2, b2, w3, b3):
    """x: [B, F]; w*: native PyTorch (out, in); b*: (1, out). Returns [B, out_dim]."""
    B, F = x.shape
    H, F1 = w1.shape
    assert F1 == F, f"fc1 in_features mismatch: {F1} vs {F}"
    assert w2.shape == (H, H) and w3.shape[1] == H
    O = w3.shape[0]

    itemsize = jnp.dtype(x.dtype).itemsize
    bytes_accessed = itemsize * (x.size + w1.size + b1.size + w2.size
                                 + b2.size + w3.size + b3.size + B * O)
    flops = 2 * B * (F * H + H * H + H * O)

    return pl.pallas_call(
        _nhn_kernel,
        out_shape=jax.ShapeDtypeStruct((B, O), x.dtype),
        grid_spec=pltpu.PrefetchScalarGridSpec(
            num_scalar_prefetch=0,
            grid=(1,),                                   # single step: whole F in VMEM
            in_specs=[
                pl.BlockSpec((B, F), lambda i: (0, 0)),  # x   (lane-dense, full array)
                pl.BlockSpec((H, F), lambda i: (0, 0)),  # W1  native (out, in) layout
                pl.BlockSpec((1, H), lambda i: (0, 0)),  # b1
                pl.BlockSpec((H, H), lambda i: (0, 0)),  # W2
                pl.BlockSpec((1, H), lambda i: (0, 0)),  # b2
                pl.BlockSpec((O, H), lambda i: (0, 0)),  # W3
                pl.BlockSpec((1, O), lambda i: (0, 0)),  # b3
            ],
            out_specs=pl.BlockSpec((B, O), lambda i: (0, 0)),
        ),
        compiler_params=pltpu.CompilerParams(
            dimension_semantics=("arbitrary",),
            vmem_limit_bytes=32 * 1024 * 1024,           # ~9 MiB used; safe on v5e/v6e/v7x
        ),
        cost_estimate=pl.CostEstimate(flops=flops, transcendentals=0,
                                      bytes_accessed=bytes_accessed),
    )(x, w1, b1, w2, b2, w3, b3)


def _reference(x, w1, b1, w2, b2, w3, b3):
    h1 = jnp.maximum(x @ w1.T + b1, 0.0)
    h2 = jnp.maximum(h1 @ w2.T + b2, 0.0)
    return h2 @ w3.T + b3


if __name__ == "__main__":
    # Module hyperparameters (input_dim only affects the unused conv layers).
    input_dim, hidden_dim, output_dim = 4, 32, 8
    batch = 2
    feat = hidden_dim * 32 * 32  # fc1 in_features = 32 * 32 * 32 = 32768

    key = jax.random.PRNGKey(0)
    kx, k1, k2, k3, kb1, kb2, kb3 = jax.random.split(key, 7)

    x = jax.random.normal(kx, (batch, feat), dtype=jnp.float32)

    # Deterministic parameter init in PyTorch-native layout: weight (out, in).
    scale1 = 1.0 / jnp.sqrt(feat)
    scale2 = 1.0 / jnp.sqrt(hidden_dim)
    w1 = jax.random.uniform(k1, (hidden_dim, feat), jnp.float32, -scale1, scale1)
    b1 = jax.random.uniform(kb1, (1, hidden_dim), jnp.float32, -scale1, scale1)
    w2 = jax.random.uniform(k2, (hidden_dim, hidden_dim), jnp.float32, -scale2, scale2)
    b2 = jax.random.uniform(kb2, (1, hidden_dim), jnp.float32, -scale2, scale2)
    w3 = jax.random.uniform(k3, (output_dim, hidden_dim), jnp.float32, -scale2, scale2)
    b3 = jax.random.uniform(kb3, (1, output_dim), jnp.float32, -scale2, scale2)

    out = neural_hamiltonian_forward(x, w1, b1, w2, b2, w3, b3)
    out = jax.block_until_ready(out)

    ref = _reference(x, w1, b1, w2, b2, w3, b3)
    assert out.shape == (batch, output_dim), out.shape
    max_err = jnp.max(jnp.abs(out - ref))
    assert jnp.allclose(out, ref, atol=1e-4, rtol=1e-4), f"max err {max_err}"

    print("KERNEL_OK")
</pallas_src>

<mosaic_0001>
module attributes {stable_mosaic.version = 11 : i64} {
  func.func @_nhn_kernel(%arg0: i32, %arg1: memref<2x32768xf32, #tpu.memory_space<vmem>>, %arg2: memref<32x32768xf32, #tpu.memory_space<vmem>>, %arg3: memref<1x32xf32, #tpu.memory_space<vmem>>, %arg4: memref<32x32xf32, #tpu.memory_space<vmem>>, %arg5: memref<1x32xf32, #tpu.memory_space<vmem>>, %arg6: memref<8x32xf32, #tpu.memory_space<vmem>>, %arg7: memref<1x8xf32, #tpu.memory_space<vmem>>, %arg8: memref<2x8xf32, #tpu.memory_space<vmem>>) attributes {dimension_semantics = [#tpu.dimension_semantics<arbitrary>], iteration_bounds = array<i64: 1>, scalar_prefetch = 0 : i64, scratch_operands = 0 : i64, tpu.core_type = #tpu.core_type<tc>, window_params = [{pipeline_mode = #tpu.pipeline_mode<synchronous>, transform_indices = @transform_0, window_bounds = array<i64: 2, 32768>}, {pipeline_mode = #tpu.pipeline_mode<synchronous>, transform_indices = @transform_1, window_bounds = array<i64: 32, 32768>}, {pipeline_mode = #tpu.pipeline_mode<synchronous>, transform_indices = @transform_2, window_bounds = array<i64: 1, 32>}, {pipeline_mode = #tpu.pipeline_mode<synchronous>, transform_indices = @transform_3, window_bounds = array<i64: 32, 32>}, {pipeline_mode = #tpu.pipeline_mode<synchronous>, transform_indices = @transform_4, window_bounds = array<i64: 1, 32>}, {pipeline_mode = #tpu.pipeline_mode<synchronous>, transform_indices = @transform_5, window_bounds = array<i64: 8, 32>}, {pipeline_mode = #tpu.pipeline_mode<synchronous>, transform_indices = @transform_6, window_bounds = array<i64: 1, 8>}, {pipeline_mode = #tpu.pipeline_mode<synchronous>, transform_indices = @transform_7, window_bounds = array<i64: 2, 8>}]} {
    %c0 = arith.constant 0 : index
    %c0_0 = arith.constant 0 : index
    %0 = vector.load %arg1[%c0, %c0_0] : memref<2x32768xf32, #tpu.memory_space<vmem>>, vector<2x32768xf32>
    %c0_1 = arith.constant 0 : index
    %c0_2 = arith.constant 0 : index
    %1 = vector.load %arg2[%c0_1, %c0_2] : memref<32x32768xf32, #tpu.memory_space<vmem>>, vector<32x32768xf32>
    %cst = arith.constant dense<0.000000e+00> : vector<2x32xf32>
    %2 = tpu.matmul %0, %1, %cst {dimension_numbers = #tpu.dot_dimension_numbers<[1], [1], [0], [0], [0, 0, 1, 0], [], []>} : vector<2x32768xf32>, vector<32x32768xf32>, vector<2x32xf32> -> vector<2x32xf32>
    %c0_3 = arith.constant 0 : index
    %c0_4 = arith.constant 0 : index
    %3 = vector.load %arg3[%c0_3, %c0_4] : memref<1x32xf32, #tpu.memory_space<vmem>>, vector<1x32xf32>
    %4 = vector.broadcast %3 : vector<1x32xf32> to vector<2x32xf32>
    %5 = arith.addf %2, %4 : vector<2x32xf32>
    %cst_5 = arith.constant 0.000000e+00 : f32
    %6 = vector.broadcast %cst_5 : f32 to vector<2x32xf32>
    %7 = arith.maximumf %5, %6 : vector<2x32xf32>
    %c0_6 = arith.constant 0 : index
    %c0_7 = arith.constant 0 : index
    %8 = vector.load %arg4[%c0_6, %c0_7] : memref<32x32xf32, #tpu.memory_space<vmem>>, vector<32x32xf32>
    %cst_8 = arith.constant dense<0.000000e+00> : vector<2x32xf32>
    %9 = tpu.matmul %7, %8, %cst_8 {dimension_numbers = #tpu.dot_dimension_numbers<[1], [1], [0], [0], [0, 0, 1, 0], [], []>} : vector<2x32xf32>, vector<32x32xf32>, vector<2x32xf32> -> vector<2x32xf32>
    %c0_9 = arith.constant 0 : index
    %c0_10 = arith.constant 0 : index
    %10 = vector.load %arg5[%c0_9, %c0_10] : memref<1x32xf32, #tpu.memory_space<vmem>>, vector<1x32xf32>
    %11 = vector.broadcast %10 : vector<1x32xf32> to vector<2x32xf32>
    %12 = arith.addf %9, %11 : vector<2x32xf32>
    %cst_11 = arith.constant 0.000000e+00 : f32
    %13 = vector.broadcast %cst_11 : f32 to vector<2x32xf32>
    %14 = arith.maximumf %12, %13 : vector<2x32xf32>
    %c0_12 = arith.constant 0 : index
    %c0_13 = arith.constant 0 : index
    %15 = vector.load %arg6[%c0_12, %c0_13] : memref<8x32xf32, #tpu.memory_space<vmem>>, vector<8x32xf32>
    %cst_14 = arith.constant dense<0.000000e+00> : vector<2x8xf32>
    %16 = tpu.matmul %14, %15, %cst_14 {dimension_numbers = #tpu.dot_dimension_numbers<[1], [1], [0], [0], [0, 0, 1, 0], [], []>} : vector<2x32xf32>, vector<8x32xf32>, vector<2x8xf32> -> vector<2x8xf32>
    %c0_15 = arith.constant 0 : index
    %c0_16 = arith.constant 0 : index
    %17 = vector.load %arg7[%c0_15, %c0_16] : memref<1x8xf32, #tpu.memory_space<vmem>>, vector<1x8xf32>
    %18 = vector.broadcast %17 : vector<1x8xf32> to vector<2x8xf32>
    %19 = arith.addf %16, %18 : vector<2x8xf32>
    %c0_17 = arith.constant 0 : index
    %c0_18 = arith.constant 0 : index
    %20 = vector.load %arg8[%c0_17, %c0_18] : memref<2x8xf32, #tpu.memory_space<vmem>>, vector<2x8xf32>
    tpu.vector_store %arg8[%c0_17, %c0_18], %19 {strides = array<i32>} : memref<2x8xf32, #tpu.memory_space<vmem>>, vector<2x8xf32>,
    return
  }
  func.func @transform_0(%arg0: i32) -> (i32, i32) {
    %c0_i32 = arith.constant 0 : i32
    %c0_i32_0 = arith.constant 0 : i32
    %c0_i32_1 = arith.constant 0 : i32
    return %c0_i32, %c0_i32_0 : i32, i32
  }
  func.func @transform_1(%arg0: i32) -> (i32, i32) {
    %c0_i32 = arith.constant 0 : i32
    %c0_i32_0 = arith.constant 0 : i32
    %c0_i32_1 = arith.constant 0 : i32
    return %c0_i32, %c0_i32_0 : i32, i32
  }
  func.func @transform_2(%arg0: i32) -> (i32, i32) {
    %c0_i32 = arith.constant 0 : i32
    %c0_i32_0 = arith.constant 0 : i32
    %c0_i32_1 = arith.constant 0 : i32
    return %c0_i32, %c0_i32_0 : i32, i32
  }
  func.func @transform_3(%arg0: i32) -> (i32, i32) {
    %c0_i32 = arith.constant 0 : i32
    %c0_i32_0 = arith.constant 0 : i32
    %c0_i32_1 = arith.constant 0 : i32
    return %c0_i32, %c0_i32_0 : i32, i32
  }
  func.func @transform_4(%arg0: i32) -> (i32, i32) {
    %c0_i32 = arith.constant 0 : i32
    %c0_i32_0 = arith.constant 0 : i32
    %c0_i32_1 = arith.constant 0 : i32
    return %c0_i32, %c0_i32_0 : i32, i32
  }
  func.func @transform_5(%arg0: i32) -> (i32, i32) {
    %c0_i32 = arith.constant 0 : i32
    %c0_i32_0 = arith.constant 0 : i32
    %c0_i32_1 = arith.constant 0 : i32
    return %c0_i32, %c0_i32_0 : i32, i32
  }
  func.func @transform_6(%arg0: i32) -> (i32, i32) {
    %c0_i32 = arith.constant 0 : i32
    %c0_i32_0 = arith.constant 0 : i32
    %c0_i32_1 = arith.constant 0 : i32
    return %c0_i32, %c0_i32_0 : i32, i32
  }
  func.func @transform_7(%arg0: i32) -> (i32, i32) {
    %c0_i32 = arith.constant 0 : i32
    %c0_i32_0 = arith.constant 0 : i32
    %c0_i32_1 = arith.constant 0 : i32
    return %c0_i32, %c0_i32_0 : i32, i32
  }
}

</mosaic_0001>

<bundles_post_ra>
// kernel: tpu_custom_call.1
= control target key start
LH: loop header
LB: loop body
LE: loop exit
PB: predicated region body
PF: predicated region fallthrough
CT: control target
= control target key end

     0   :  { %12 = vsyncpa [#allocation3], 0  ;;  %s13651_s0 = inlined_call_operand.hbm [shape: f32[2,32768], index: 0, kind: input, shape index: {}]   ;;  %s13652_s1 = inlined_call_operand.hbm [shape: f32[32,32768], index: 1, kind: input, shape index: {}]   ;;  %s13653_s2 = inlined_call_operand.hbm [shape: f32[1,32], index: 2, kind: input, shape index: {}]   ;;  %s13654_s3 = inlined_call_operand.hbm [shape: f32[32,32], index: 3, kind: input, shape index: {}]   ;;  %s13655_s4 = inlined_call_operand.hbm [shape: f32[1,32], index: 4, kind: input, shape index: {}]   ;;  %s13656_s5 = inlined_call_operand.hbm [shape: f32[8,32], index: 5, kind: input, shape index: {}]   ;;  %s13657_s6 = inlined_call_operand.hbm [shape: f32[1,8], index: 6, kind: input, shape index: {}]   ;;  %s13658_s7 = inlined_call_operand.hbm [shape: f32[2,8], index: 7, kind: output, shape index: {}]  }
   0x1   :  { %13 = vsyncpa [#allocation6], 0 }
   0x2   :  { %14 = vsyncpa [#allocation9], 0 }
   0x3   :  { %15 = vsyncpa [#allocation12], 0 }
   0x4   :  { %16 = vsyncpa [#allocation4], 0  ;;  %s13365_s24 = smov [#allocation5]   ;;  %s13179_s28 = scalar_lea.hbm %s13652_s1, 131072 }
   0x5   :  { %s32_s25 = sshll.u32 %s13365_s24, 4  ;;  %p13180_p0 = scmp.ne.s32.totalorder %s13652_s1, %s13179_s28  ;;  %s33_s25 = int_to_ptr.vmem [resolvable:$true] %s32_s25 }
   0x6   :  { %p13183_p1 = scmp.lt.u32.totalorder %s13179_s28, %s13652_s1 }
   0x8   :  { %p13185_p2 = pnand %p13183_p1, %p13180_p0 }
   0xa   :  { %13188 = shalt.err (!%p13185_p2)
}
   0xb   :  { %s13189_s10 = scalar_lea.vmem %s33_s25, 131072  ;;  %p13194_p4 = scmp.lt.s32.totalorder %s33_s25, %s33_s25 }
   0xc   :  { %p13190_p3 = scmp.ne.s32.totalorder %s33_s25, %s13189_s10  ;;  %p13195_p5 = scmp.lt.s32.totalorder %s13189_s10, %s13189_s10 }
   0xe   :  { %p13196_p6 = por %p13195_p5, %p13194_p4 }
  0x10   :  { %p13197_p7 = pnand %p13196_p6, %p13190_p3 }
  0x12   :  { %13200 = shalt.err (!%p13197_p7)
}
  0x13   :  { %s13366_s11 = smov 32768   ;;  %s13367_s12 = smov 2048  }
  0x14   :  { %38 = dma.hbm_to_vmem [thread:$0]  %s13652_s1, 131072, %s33_s25, [#allocation6], %s13366_s11, %s13366_s11, %s13367_s12  }
  0x15   :  { %s13368_s15 = smov [#allocation8]   ;;  %s13201_s19 = scalar_lea.hbm %s13654_s3, 512 }
  0x16   :  { %s54_s16 = sshll.u32 %s13368_s15, 4  ;;  %p13202_p8 = scmp.ne.s32.totalorder %s13654_s3, %s13201_s19  ;;  %s55_s16 = int_to_ptr.vmem [resolvable:$true] %s54_s16 }
  0x17   :  { %p13205_p9 = scmp.lt.u32.totalorder %s13201_s19, %s13654_s3 }
  0x19   :  { %p13207_p10 = pnand %p13205_p9, %p13202_p8 }
  0x1b   :  { %13210 = shalt.err (!%p13207_p10)
}
  0x1c   :  { %s13211_s24 = scalar_lea.vmem %s55_s16, 512  ;;  %p13216_p12 = scmp.lt.s32.totalorder %s55_s16, %s55_s16 }
  0x1d   :  { %p13212_p11 = scmp.ne.s32.totalorder %s55_s16, %s13211_s24  ;;  %p13217_p13 = scmp.lt.s32.totalorder %s13211_s24, %s13211_s24 }
  0x1f   :  { %p13218_p0 = por %p13217_p13, %p13216_p12 }
  0x21   :  { %p13219_p1 = pnand %p13218_p0, %p13212_p11 }
  0x23   :  { %13222 = shalt.err (!%p13219_p1)
}
  0x24   :  { %s13369_s1 = smov 128   ;;  %s13370_s25 = smov 8  }
  0x25   :  { %60 = dma.hbm_to_vmem [thread:$0]  %s13654_s3, 512, %s55_s16, [#allocation9], %s13369_s1, %s13369_s1, %s13370_s25  }
  0x26   :  { %s13371_s28 = smov [#allocation11]   ;;  %s13372_s30 = smov [#allocation2]  }
  0x27   :  { %s77_s29 = sshll.u32 %s13371_s28, 4  ;;  %s23_s8 = sshll.u32 %s13372_s30, 4  ;;  %s78_s29 = int_to_ptr.vmem [resolvable:$true] %s77_s29  ;;  %s24_s8 = int_to_ptr.vmem [resolvable:$true] %s23_s8 }
  0x28   :  { %s13223_s11 = scalar_lea.hbm %s13656_s5, 128 }
  0x29   :  { %p13224_p2 = scmp.ne.s32.totalorder %s13656_s5, %s13223_s11  ;;  %p13227_p3 = scmp.lt.u32.totalorder %s13223_s11, %s13656_s5 }
  0x2b   :  { %p13229_p4 = pnand %p13227_p3, %p13224_p2 }
  0x2d   :  { %13232 = shalt.err (!%p13229_p4)
}
  0x2e   :  { %s13233_s3 = scalar_lea.vmem %s78_s29, 128  ;;  %p13238_p6 = scmp.lt.s32.totalorder %s78_s29, %s78_s29 }
  0x2f   :  { %p13234_p5 = scmp.ne.s32.totalorder %s78_s29, %s13233_s3  ;;  %p13239_p7 = scmp.lt.s32.totalorder %s13233_s3, %s13233_s3 }
  0x31   :  { %p13240_p8 = por %p13239_p7, %p13238_p6 }
  0x33   :  { %p13241_p9 = pnand %p13240_p8, %p13234_p5 }
  0x35   :  { %13244 = shalt.err (!%p13241_p9)
}
  0x36   :  { %80 = dma.hbm_to_vmem [thread:$0]  %s13656_s5, 128, %s78_s29, [#allocation12]  }
  0x37   :  { %s13245_s20 = scalar_lea.hbm %s13651_s0, 8192 }
  0x38   :  { %p13246_p10 = scmp.ne.s32.totalorder %s13651_s0, %s13245_s20  ;;  %p13249_p11 = scmp.lt.u32.totalorder %s13245_s20, %s13651_s0 }
  0x3a   :  { %p13251_p12 = pnand %p13249_p11, %p13246_p10 }
  0x3c   :  { %13254 = shalt.err (!%p13251_p12)
}
  0x3d   :  { %s13255_s1 = scalar_lea.vmem %s24_s8, 8192  ;;  %p13260_p0 = scmp.lt.s32.totalorder %s24_s8, %s24_s8 }
  0x3e   :  { %p13256_p13 = scmp.ne.s32.totalorder %s24_s8, %s13255_s1  ;;  %p13261_p1 = scmp.lt.s32.totalorder %s13255_s1, %s13255_s1 }
  0x40   :  { %p13262_p2 = por %p13261_p1, %p13260_p0 }
  0x42   :  { %p13263_p3 = pnand %p13262_p2, %p13256_p13 }
  0x44   :  { %13266 = shalt.err (!%p13263_p3)
}
  0x45   :  { %26 = dma.hbm_to_vmem [thread:$0]  %s13651_s0, 8192, %s24_s8, [#allocation3]  }
  0x46   :  { %s13373_s26 = smov [#allocation7]   ;;  %s13374_s28 = smov [#allocation10]  }
  0x47   :  { %s45_s27 = sshll.u32 %s13373_s26, 4  ;;  %s67_s29 = sshll.u32 %s13374_s28, 4  ;;  %s46_s27 = int_to_ptr.vmem [resolvable:$true] %s45_s27  ;;  %s68_s29 = int_to_ptr.vmem [resolvable:$true] %s67_s29 }
  0x48   :  { %s13267_s10 = scalar_lea.hbm %s13653_s2, 16 }
  0x49   :  { %p13268_p4 = scmp.ne.s32.totalorder %s13653_s2, %s13267_s10  ;;  %p13271_p5 = scmp.lt.u32.totalorder %s13267_s10, %s13653_s2 }
  0x4b   :  { %p13273_p6 = pnand %p13271_p5, %p13268_p4 }
  0x4d   :  { %13276 = shalt.err (!%p13273_p6)
}
  0x4e   :  { %s13277_s0 = scalar_lea.vmem %s46_s27, 16  ;;  %s13281_s8 = scalar_lea.vmem %s46_s27, 32 }
  0x4f   :  { %p13278_p7 = scmp.ne.s32.totalorder %s46_s27, %s13277_s0  ;;  %p13282_p8 = scmp.lt.s32.totalorder %s46_s27, %s46_s27 }
  0x50   :  { %p13283_p9 = scmp.lt.s32.totalorder %s13281_s8, %s13277_s0 }
  0x52   :  { %p13284_p10 = por %p13283_p9, %p13282_p8 }
  0x54   :  { %p13285_p11 = pnand %p13284_p10, %p13278_p7 }
  0x56   :  { %13288 = shalt.err (!%p13285_p11)
}
  0x57   :  { %48 = dma.hbm_to_vmem [thread:$0]  %s13653_s2, 16, %s46_s27, [#allocation6]  }
  0x58   :  { %s13289_s18 = scalar_lea.hbm %s13655_s4, 16 }
  0x59   :  { %p13290_p12 = scmp.ne.s32.totalorder %s13655_s4, %s13289_s18  ;;  %p13293_p13 = scmp.lt.u32.totalorder %s13289_s18, %s13655_s4 }
  0x5b   :  { %p13295_p0 = pnand %p13293_p13, %p13290_p12 }
  0x5d   :  { %13298 = shalt.err (!%p13295_p0)
}
  0x5e   :  { %s13299_s23 = scalar_lea.vmem %s68_s29, 16  ;;  %s13303_s24 = scalar_lea.vmem %s68_s29, 32 }
  0x5f   :  { %p13300_p1 = scmp.ne.s32.totalorder %s68_s29, %s13299_s23  ;;  %p13304_p2 = scmp.lt.s32.totalorder %s68_s29, %s68_s29 }
  0x60   :  { %p13305_p3 = scmp.lt.s32.totalorder %s13303_s24, %s13299_s23 }
  0x62   :  { %p13306_p4 = por %p13305_p3, %p13304_p2 }
  0x64   :  { %p13307_p5 = pnand %p13306_p4, %p13300_p1 }
  0x66   :  { %13310 = shalt.err (!%p13307_p5)
}
  0x67   :  { %70 = dma.hbm_to_vmem [thread:$0]  %s13655_s4, 16, %s68_s29, [#allocation9]  }
  0x68   :  { %s13375_s5 = smov [#allocation13]   ;;  %s13311_s28 = scalar_lea.hbm %s13657_s6, 16 }
  0x69   :  { %s87_s25 = sshll.u32 %s13375_s5, 4  ;;  %p13312_p6 = scmp.ne.s32.totalorder %s13657_s6, %s13311_s28  ;;  %s88_s25 = int_to_ptr.vmem [resolvable:$true] %s87_s25 }
  0x6a   :  { %p13315_p7 = scmp.lt.u32.totalorder %s13311_s28, %s13657_s6 }
  0x6c   :  { %p13317_p8 = pnand %p13315_p7, %p13312_p6 }
  0x6e   :  { %13320 = shalt.err (!%p13317_p8)
}
  0x6f   :  { %s13321_s12 = scalar_lea.vmem %s88_s25, 16  ;;  %s13325_s4 = scalar_lea.vmem %s88_s25, 32 }
  0x70   :  { %p13322_p9 = scmp.ne.s32.totalorder %s88_s25, %s13321_s12  ;;  %p13326_p10 = scmp.lt.s32.totalorder %s88_s25, %s88_s25 }
  0x71   :  { %p13327_p11 = scmp.lt.s32.totalorder %s13325_s4, %s13321_s12 }
  0x73   :  { %p13328_p12 = por %p13327_p11, %p13326_p10 }
  0x75   :  { %p13329_p13 = pnand %p13328_p12, %p13322_p9 }
  0x77   :  { %13332 = shalt.err (!%p13329_p13)
}
  0x78   :  { %90 = dma.hbm_to_vmem [thread:$0]  %s13657_s6, 16, %s88_s25, [#allocation12]  }
  0x79   :  { %13355 = dma.done.wait [#allocation3], 8192  }
  0x7a   :  { %13356 = vsyncadd [#allocation3], 4294959104 }
  0x7b   :  { %13357 = dma.done.wait [#allocation6], 131088  }
  0x7c   :  { %13358 = vsyncadd [#allocation6], 4294836208 }
  0x7d   :  { %13359 = dma.done.wait [#allocation9], 528  }
  0x7e   :  { %13360 = vsyncadd [#allocation9], 4294966768 }
  0x7f   :  { %13361 = dma.done.wait [#allocation12], 144  }
  0x80   :  { %13362 = vsyncadd [#allocation12], 4294967152  ;;  %v13376_v0 = vmov 1983009808   ;;  %v1275_v2 = vlaneseq  ;;  %v177_v5 = vld [vmem:[#allocation5 + $0x8] sm:$0xff]  ;;  %v303_v7 = vld [vmem:[#allocation5 + $0x3f8] sm:$0xff] }
  0x81   :  { %v1273_v1 = vunpack.c.l.s4 %v13376_v0  ;;  %v433_v6 = vld [vmem:[#allocation5 + $0x808] sm:$0xff]  ;;  %v559_v9 = vld [vmem:[#allocation5 + $0xbf8] sm:$0xff]  ;;  %v176_v10 = vld [vmem:[#allocation5] sm:$0xff]  ;;  %vm11587_vm0 = vcmask 261120   ;;  %vm13378_vm2 = vmmov 0   ;;  %s13380_s6 = smov [#allocation14]  }
  0x82   :  { %v1276_v4 = vshrl.u32 %v1275_v2, 7  ;;  %v11811_v8 = vpack.c.bf16 %v433_v6, %v177_v5  ;;  %v432_v11 = vld [vmem:[#allocation5 + $0x800] sm:$0xff]  ;;  %v12315_v12 = vpack.c.bf16 %v559_v9, %v303_v7  ;;  %v302_v14 = vld [vmem:[#allocation5 + $0x3f0] sm:$0xff]  ;;  %v689_v16 = vld [vmem:[#allocation5 + $0x1008] sm:$0xff]  ;;  %s11766_s14 = sshll.u32 %s13380_s6, 4  ;;  %vm11758_vm3 = vcmask 58368   ;;  %s11767_s14 = int_to_ptr.vmem [resolvable:$true] %s11766_s14 }
  0x83   :  { %v1274_v3 = vunpack.c.0.s8 %v1273_v1  ;;  %v11813_v13 = vpack.c.bf16 %v432_v11, %v176_v10  ;;  %v558_v15 = vld [vmem:[#allocation5 + $0xbf0] sm:$0xff]  ;;  %v945_v19 = vld [vmem:[#allocation5 + $0x1808] sm:$0xff]  ;;  %v815_v20 = vld [vmem:[#allocation5 + $0x13f8] sm:$0xff]  ;;  %s13333_s0 = scalar_lea.vmem %s11767_s14, 32  ;;  %p13338_p1 = scmp.lt.s32.totalorder %s11767_s14, %s11767_s14 }
  0x84   :  { %11812 = vmatprep.subr.bf16.mxu1 %v11811_v8  ;;  %v12317_v18 = vpack.c.bf16 %v558_v15, %v302_v14  ;;  %v1071_v21 = vld [vmem:[#allocation5 + $0x1bf8] sm:$0xff]  ;;  %12316 = vmatprep.subr.bf16.mxu0 %v12315_v12  ;;  %v11815_v22 = vpack.c.bf16 %v945_v19, %v689_v16  ;;  %v688_v24 = vld [vmem:[#allocation5 + $0x1000] sm:$0xff]  ;;  %v814_v26 = vld [vmem:[#allocation5 + $0x13f0] sm:$0xff]  ;;  %p13334_p0 = scmp.ne.s32.totalorder %s11767_s14, %s13333_s0  ;;  %p13339_p2 = scmp.lt.s32.totalorder %s13333_s0, %s13333_s0 }
  0x85   :  { %v13505_v17 = vsub.s32 %v1274_v3, %v1276_v4  ;;  %11814 = vmatpush1.bf16.xpose.msra.mxu1 %v11813_v13  ;;  %v12319_v23 = vpack.c.bf16 %v1071_v21, %v815_v20  ;;  %v944_v25 = vld [vmem:[#allocation5 + $0x1800] sm:$0xff]  ;;  %v1070_v27 = vld [vmem:[#allocation5 + $0x1bf0] sm:$0xff]  ;;  %v179_v30 = vld [vmem:[#allocation5 + $0x18] sm:$0xff] }
  0x86   :  { %12318 = vmatpush1.bf16.xpose.msra.mxu0 %v12317_v18  ;;  %v112_v28 = vld [vmem:[#allocation2] sm:$0xff]  ;;  %11816 = vmatprep.subr.bf16.mxu1 %v11815_v22  ;;  %v435_v31 = vld [vmem:[#allocation5 + $0x818] sm:$0xff]  ;;  %v305_v34 = vld [vmem:[#allocation5 + $0x408] sm:$0xff]  ;;  %v11817_v36 = vpack.c.bf16 %v944_v25, %v688_v24  ;;  %v12321_v38 = vpack.c.bf16 %v1070_v27, %v814_v26  ;;  %p13340_p3 = por %p13339_p2, %p13338_p1 }
  0x87   :  { %12320 = vmatprep.subr.bf16.mxu0 %v12319_v23  ;;  %v1278_v29 = vrot.slane %v112_v28, %v13505_v17  ;;  %v143_v32 = vld [vmem:[#allocation2 + $0xf8] sm:$0xff]  ;;  %v561_v35 = vld [vmem:[#allocation5 + $0xc08] sm:$0xff]  ;;  %v11819_v39 = vpack.c.bf16 %v435_v31, %v179_v30  ;;  %v1271_v41 = vcombine.high %v112_v28, %v112_v28  ;;  %v144_v44 = vld [vmem:[#allocation2 + $0x100] sm:$0xff] }
  0x88   :  { %v1798_v33 = vcombine.high %v143_v32, %v143_v32  ;;  %v12323_v42 = vpack.c.bf16 %v561_v35, %v305_v34  ;;  %v178_v45 = vld [vmem:[#allocation5 + $0x10] sm:$0xff]  ;;  %v304_v47 = vld [vmem:[#allocation5 + $0x400] sm:$0xff]  ;;  %v691_v49 = vld [vmem:[#allocation5 + $0x1018] sm:$0xff]  ;;  %v1822_v54 = vrot.slane %v144_v44, %v13505_v17  ;;  %v1815_v10 = vcombine.high %v144_v44, %v144_v44  ;;  %p13341_p4 = pnand %p13340_p3, %p13334_p0 }
  0x89   :  { %v1286_v37 = vcombine.high %v1278_v29, %v1278_v29  ;;  %v434_v46 = vld [vmem:[#allocation5 + $0x810] sm:$0xff]  ;;  %v560_v48 = vld [vmem:[#allocation5 + $0xc00] sm:$0xff]  ;;  %v947_v50 = vld [vmem:[#allocation5 + $0x1818] sm:$0xff]  ;;  %v1285_v51 = vrot.slane %v1271_v41, %v13505_v17 }
  0x8a   :  { %v1812_v40 = vrot.slane %v1798_v33, %v13505_v17  ;;  %v817_v52 = vld [vmem:[#allocation5 + $0x1408] sm:$0xff]  ;;  %v11821_v55 = vpack.c.bf16 %v434_v46, %v178_v45  ;;  %v12325_v56 = vpack.c.bf16 %v560_v48, %v304_v47  ;;  %v11823_v57 = vpack.c.bf16 %v947_v50, %v691_v49  ;;  %v690_v61 = vld [vmem:[#allocation5 + $0x1010] sm:$0xff]  ;;  %v816_v63 = vld [vmem:[#allocation5 + $0x1400] sm:$0xff] }
  0x8b   :  { %2679 = vmatprep.mubr.f32.mxu1 %v1286_v37  ;;  %v1073_v53 = vld [vmem:[#allocation5 + $0x1c08] sm:$0xff]  ;;  %v1287_v59 = vcombine.high %v1285_v51, %v1285_v51  ;;  %v1830_v60 = vcombine.high %v1822_v54, %v1822_v54  ;;  %v946_v62 = vld [vmem:[#allocation5 + $0x1810] sm:$0xff]  ;;  %v1072_v0 = vld [vmem:[#allocation5 + $0x1c00] sm:$0xff]  ;;  %v1829_v21 = vrot.slane %v1815_v10, %v13505_v17 }
  0x8c   :  { %v1814_v43 = vcombine.high %v1812_v40, %v1812_v40  ;;  %v12327_v58 = vpack.c.bf16 %v1073_v53, %v817_v52  ;;  %v181_v1 = vld [vmem:[#allocation5 + $0x28] sm:$0xff]  ;;  %v307_v3 = vld [vmem:[#allocation5 + $0x418] sm:$0xff]  ;;  %v11825_v5 = vpack.c.bf16 %v946_v62, %v690_v61  ;;  %v12329_v6 = vpack.c.bf16 %v1072_v0, %v816_v63  ;;  %v180_v11 = vld [vmem:[#allocation5 + $0x20] sm:$0xff] }
  0x8d   :  { %11818 = vmatpush1.bf16.xpose.msra.mxu1 %v11817_v36  ;;  %v437_v2 = vld [vmem:[#allocation5 + $0x828] sm:$0xff]  ;;  %v563_v4 = vld [vmem:[#allocation5 + $0xc18] sm:$0xff]  ;;  %v436_v12 = vld [vmem:[#allocation5 + $0x820] sm:$0xff]  ;;  %v1831_v27 = vcombine.high %v1829_v21, %v1829_v21 }
  0x8e   :  { %12322 = vmatpush1.bf16.xpose.msra.mxu0 %v12321_v38  ;;  %11820 = vmatprep.subr.bf16.mxu1 %v11819_v39  ;;  %v11827_v7 = vpack.c.bf16 %v437_v2, %v181_v1  ;;  %v12331_v8 = vpack.c.bf16 %v563_v4, %v307_v3  ;;  %v113_v9 = vld [vmem:[#allocation2 + $0x8] sm:$0xff]  ;;  %v306_v13 = vld [vmem:[#allocation5 + $0x410] sm:$0xff]  ;;  %v819_v19 = vld [vmem:[#allocation5 + $0x1418] sm:$0xff]  ;;  %v11829_v22 = vpack.c.bf16 %v436_v12, %v180_v11 }
  0x8f   :  { %7089 = vmatprep.mubr.f32.mxu0 %v1814_v43  ;;  %12324 = vmatprep.subr.bf16.mxu0 %v12323_v42  ;;  %v562_v14 = vld [vmem:[#allocation5 + $0xc10] sm:$0xff]  ;;  %v693_v15 = vld [vmem:[#allocation5 + $0x1028] sm:$0xff]  ;;  %v1295_v18 = vrot.slane %v113_v9, %v13505_v17  ;;  %v1075_v20 = vld [vmem:[#allocation5 + $0x1c18] sm:$0xff] }
  0x90   :  { %v949_v16 = vld [vmem:[#allocation5 + $0x1828] sm:$0xff]  ;;  %v12333_v23 = vpack.c.bf16 %v562_v14, %v306_v13  ;;  %v12335_v25 = vpack.c.bf16 %v1075_v20, %v819_v19  ;;  %v692_v28 = vld [vmem:[#allocation5 + $0x1020] sm:$0xff]  ;;  %v818_v30 = vld [vmem:[#allocation5 + $0x1410] sm:$0xff] }
  0x91   :  { %v11831_v24 = vpack.c.bf16 %v949_v16, %v693_v15  ;;  %v1303_v26 = vcombine.high %v1295_v18, %v1295_v18  ;;  %v1074_v31 = vld [vmem:[#allocation5 + $0x1c10] sm:$0xff]  ;;  %v183_v32 = vld [vmem:[#allocation5 + $0x38] sm:$0xff]  ;;  %v309_v34 = vld [vmem:[#allocation5 + $0x428] sm:$0xff] }
  0x92   :  { %v439_v33 = vld [vmem:[#allocation5 + $0x838] sm:$0xff]  ;;  %v565_v35 = vld [vmem:[#allocation5 + $0xc28] sm:$0xff]  ;;  %v12337_v37 = vpack.c.bf16 %v1074_v31, %v818_v30  ;;  %v182_v42 = vld [vmem:[#allocation5 + $0x30] sm:$0xff] }
  0x93   :  { %v11835_v38 = vpack.c.bf16 %v439_v33, %v183_v32  ;;  %v12339_v39 = vpack.c.bf16 %v565_v35, %v309_v34  ;;  %v145_v41 = vld [vmem:[#allocation2 + $0x108] sm:$0xff]  ;;  %v438_v43 = vld [vmem:[#allocation5 + $0x830] sm:$0xff]  ;;  %v308_v44 = vld [vmem:[#allocation5 + $0x420] sm:$0xff] }
  0x94   :  { %2680 = vmatmul.mubr.f32.vlgmr.msra.gmra.mrb[0].mxu1 %v1278_v29  ;;  %v948_v29 = vld [vmem:[#allocation5 + $0x1820] sm:$0xff]  ;;  %v695_v46 = vld [vmem:[#allocation5 + $0x1038] sm:$0xff]  ;;  %v821_v49 = vld [vmem:[#allocation5 + $0x1428] sm:$0xff]  ;;  %v11837_v52 = vpack.c.bf16 %v438_v43, %v182_v42 }
  0x95   :  { %11822 = vmatpush1.bf16.xpose.msra.mxu1 %v11821_v55  ;;  %7090 = vmatmul.mubr.f32.vlgmr.msra.gmra.mrb[0].mxu0 %v1812_v40  ;;  %v11833_v36 = vpack.c.bf16 %v948_v29, %v692_v28  ;;  %v1288_v40 = vcombine.high %v113_v9, %v113_v9  ;;  %v564_v45 = vld [vmem:[#allocation5 + $0xc20] sm:$0xff]  ;;  %v951_v47 = vld [vmem:[#allocation5 + $0x1838] sm:$0xff]  ;;  %v1077_v50 = vld [vmem:[#allocation5 + $0x1c28] sm:$0xff] }
  0x96   :  { %12326 = vmatpush1.bf16.xpose.msra.mxu0 %v12325_v56  ;;  %11824 = vmatprep.subr.bf16.mxu1 %v11823_v57  ;;  %v12341_v53 = vpack.c.bf16 %v564_v45, %v308_v44  ;;  %v12343_v55 = vpack.c.bf16 %v1077_v50, %v821_v49  ;;  %v1076_v61 = vld [vmem:[#allocation5 + $0x1c20] sm:$0xff]  ;;  %v185_v62 = vld [vmem:[#allocation5 + $0x48] sm:$0xff]  ;;  %v311_v0 = vld [vmem:[#allocation5 + $0x438] sm:$0xff] }
  0x97   :  { %12328 = vmatprep.subr.bf16.mxu0 %v12327_v58  ;;  %2749 = vmatprep.mubr.f32.mxu1 %v1287_v59  ;;  %v1302_v48 = vrot.slane %v1288_v40, %v13505_v17  ;;  %v694_v58 = vld [vmem:[#allocation5 + $0x1030] sm:$0xff]  ;;  %v441_v63 = vld [vmem:[#allocation5 + $0x848] sm:$0xff]  ;;  %v567_v1 = vld [vmem:[#allocation5 + $0xc38] sm:$0xff] }
  0x98   :  { %7159 = vmatprep.mubr.f32.mxu0 %v1830_v60  ;;  %v950_v59 = vld [vmem:[#allocation5 + $0x1830] sm:$0xff]  ;;  %v820_v60 = vld [vmem:[#allocation5 + $0x1420] sm:$0xff]  ;;  %v11843_v4 = vpack.c.bf16 %v441_v63, %v185_v62  ;;  %v697_v12 = vld [vmem:[#allocation5 + $0x1048] sm:$0xff] }
  0x99   :  { %v1304_v56 = vcombine.high %v1302_v48, %v1302_v48  ;;  %v11841_v2 = vpack.c.bf16 %v950_v59, %v694_v58  ;;  %v12345_v3 = vpack.c.bf16 %v1076_v61, %v820_v60  ;;  %v440_v9 = vld [vmem:[#allocation5 + $0x840] sm:$0xff]  ;;  %v310_v10 = vld [vmem:[#allocation5 + $0x430] sm:$0xff]  ;;  %v953_v13 = vld [vmem:[#allocation5 + $0x1848] sm:$0xff] }
  0x9a   :  { %v566_v11 = vld [vmem:[#allocation5 + $0xc30] sm:$0xff]  ;;  %v823_v15 = vld [vmem:[#allocation5 + $0x1438] sm:$0xff]  ;;  %v313_v31 = vld [vmem:[#allocation5 + $0x448] sm:$0xff] }
  0x9b   :  { %v1079_v16 = vld [vmem:[#allocation5 + $0x1c38] sm:$0xff]  ;;  %v12349_v20 = vpack.c.bf16 %v566_v11, %v310_v10  ;;  %v1078_v28 = vld [vmem:[#allocation5 + $0x1c30] sm:$0xff]  ;;  %v569_v32 = vld [vmem:[#allocation5 + $0xc48] sm:$0xff] }
  0x9c   :  { %v187_v29 = vld [vmem:[#allocation5 + $0x58] sm:$0xff]  ;;  %v442_v40 = vld [vmem:[#allocation5 + $0x850] sm:$0xff]  ;;  %v568_v42 = vld [vmem:[#allocation5 + $0xc40] sm:$0xff] }
  0x9d   :  { %11826 = vmatpush1.bf16.xpose.msra.mxu1 %v11825_v5  ;;  %v12347_v5 = vpack.c.bf16 %v567_v1, %v311_v0  ;;  %v443_v30 = vld [vmem:[#allocation5 + $0x858] sm:$0xff]  ;;  %v1080_v58 = vld [vmem:[#allocation5 + $0x1c40] sm:$0xff]  ;;  %v189_v59 = vld [vmem:[#allocation5 + $0x68] sm:$0xff] }
  0x9e   :  { %12330 = vmatpush1.bf16.xpose.msra.mxu0 %v12329_v6  ;;  %11828 = vmatprep.subr.bf16.mxu1 %v11827_v7  ;;  %v114_v6 = vld [vmem:[#allocation2 + $0x10] sm:$0xff]  ;;  %v1832_v7 = vcombine.high %v145_v41, %v145_v41  ;;  %v11851_v35 = vpack.c.bf16 %v443_v30, %v187_v29  ;;  %v699_v43 = vld [vmem:[#allocation5 + $0x1058] sm:$0xff]  ;;  %v445_v60 = vld [vmem:[#allocation5 + $0x868] sm:$0xff] }
  0x9f   :  { %12332 = vmatprep.subr.bf16.mxu0 %v12331_v8  ;;  %v184_v8 = vld [vmem:[#allocation5 + $0x40] sm:$0xff]  ;;  %v1312_v14 = vrot.slane %v114_v6, %v13505_v17  ;;  %v955_v44 = vld [vmem:[#allocation5 + $0x1858] sm:$0xff]  ;;  %v11859_v1 = vpack.c.bf16 %v445_v60, %v189_v59  ;;  %v957_v10 = vld [vmem:[#allocation5 + $0x1868] sm:$0xff] }
  0xa0   :  { %v11845_v19 = vpack.c.bf16 %v440_v9, %v184_v8  ;;  %v315_v61 = vld [vmem:[#allocation5 + $0x458] sm:$0xff]  ;;  %v570_v8 = vld [vmem:[#allocation5 + $0xc50] sm:$0xff]  ;;  %v701_v9 = vld [vmem:[#allocation5 + $0x1068] sm:$0xff] }
  0xa1   :  { %v571_v62 = vld [vmem:[#allocation5 + $0xc58] sm:$0xff]  ;;  %v573_v29 = vld [vmem:[#allocation5 + $0xc68] sm:$0xff]  ;;  %vm12837_vm1 = vmpackc.low %vm11587_vm0, %vm11587_vm0 }
  0xa2   :  { %v575_v59 = vld [vmem:[#allocation5 + $0xc78] sm:$0xff] }
  0xa4   :  { %2750 = vmatmul.mubr.f32.vlgmr.msra.gmra.mrb[0].mxu1 %v1285_v51  ;;  %v1839_v51 = vrot.slane %v145_v41, %v13505_v17  ;;  %v312_v41 = vld [vmem:[#allocation5 + $0x440] sm:$0xff] }
  0xa5   :  { %11830 = vmatpush1.bf16.xpose.msra.mxu1 %v11829_v22  ;;  %7160 = vmatmul.mubr.f32.vlgmr.msra.gmra.mrb[0].mxu0 %v1822_v54  ;;  %v11839_v54 = vpack.c.bf16 %v951_v47, %v695_v46  ;;  %v12351_v22 = vpack.c.bf16 %v1079_v16, %v823_v15  ;;  %v825_v46 = vld [vmem:[#allocation5 + $0x1448] sm:$0xff]  ;;  %v12357_v50 = vpack.c.bf16 %v568_v42, %v312_v41  ;;  %v959_v41 = vld [vmem:[#allocation5 + $0x1878] sm:$0xff] }
  0xa6   :  { %12334 = vmatpush1.bf16.xpose.msra.mxu0 %v12333_v23  ;;  %11832 = vmatprep.subr.bf16.mxu1 %v11831_v24  ;;  %v1847_v57 = vcombine.high %v1839_v51, %v1839_v51  ;;  %v1320_v23 = vcombine.high %v1312_v14, %v1312_v14  ;;  %v1081_v47 = vld [vmem:[#allocation5 + $0x1c48] sm:$0xff] }
  0xa7   :  { %12336 = vmatprep.subr.bf16.mxu0 %v12335_v25  ;;  %2819 = vmatprep.mubr.f32.mxu1 %v1303_v26  ;;  %v696_v25 = vld [vmem:[#allocation5 + $0x1040] sm:$0xff] }
  0xa8   :  { %7229 = vmatprep.mubr.f32.mxu0 %v1831_v27  ;;  %v952_v26 = vld [vmem:[#allocation5 + $0x1840] sm:$0xff]  ;;  %v822_v27 = vld [vmem:[#allocation5 + $0x1430] sm:$0xff] }
  0xa9   :  { %v11849_v33 = vpack.c.bf16 %v952_v26, %v696_v25  ;;  %v12353_v34 = vpack.c.bf16 %v1078_v28, %v822_v27  ;;  %v1082_v25 = vld [vmem:[#allocation5 + $0x1c50] sm:$0xff]  ;;  %v191_v26 = vld [vmem:[#allocation5 + $0x78] sm:$0xff]  ;;  %v317_v28 = vld [vmem:[#allocation5 + $0x468] sm:$0xff] }
  0xaa   :  { %v447_v27 = vld [vmem:[#allocation5 + $0x878] sm:$0xff] }
  0xad   :  { %11834 = vmatpush1.bf16.xpose.msra.mxu1 %v11833_v36  ;;  %v12355_v36 = vpack.c.bf16 %v569_v32, %v313_v31  ;;  %v11867_v32 = vpack.c.bf16 %v447_v27, %v191_v26  ;;  %v577_v26 = vld [vmem:[#allocation5 + $0xc88] sm:$0xff] }
  0xae   :  { %12338 = vmatpush1.bf16.xpose.msra.mxu0 %v12337_v37  ;;  %11836 = vmatprep.subr.bf16.mxu1 %v11835_v38  ;;  %v1305_v37 = vcombine.high %v114_v6, %v114_v6  ;;  %v146_v38 = vld [vmem:[#allocation2 + $0x110] sm:$0xff]  ;;  %v444_v6 = vld [vmem:[#allocation5 + $0x860] sm:$0xff] }
  0xaf   :  { %12340 = vmatprep.subr.bf16.mxu0 %v12339_v39  ;;  %v186_v39 = vld [vmem:[#allocation5 + $0x50] sm:$0xff] }
  0xb0   :  { %v1319_v45 = vrot.slane %v1305_v37, %v13505_v17  ;;  %v11853_v49 = vpack.c.bf16 %v442_v40, %v186_v39  ;;  %v446_v37 = vld [vmem:[#allocation5 + $0x870] sm:$0xff]  ;;  %v572_v39 = vld [vmem:[#allocation5 + $0xc60] sm:$0xff]  ;;  %v703_v40 = vld [vmem:[#allocation5 + $0x1078] sm:$0xff] }
  0xb4   :  { %2820 = vmatmul.mubr.f32.vlgmr.msra.gmra.mrb[0].mxu1 %v1295_v18  ;;  %v1846_v18 = vrot.slane %v1832_v7, %v13505_v17  ;;  %v314_v7 = vld [vmem:[#allocation5 + $0x450] sm:$0xff] }
  0xb5   :  { %11838 = vmatpush1.bf16.xpose.msra.mxu1 %v11837_v52  ;;  %7230 = vmatmul.mubr.f32.vlgmr.msra.gmra.mrb[0].mxu0 %v1829_v21  ;;  %v11847_v21 = vpack.c.bf16 %v953_v13, %v697_v12  ;;  %v12359_v52 = vpack.c.bf16 %v1081_v47, %v825_v46  ;;  %v827_v12 = vld [vmem:[#allocation5 + $0x1458] sm:$0xff]  ;;  %v12365_v16 = vpack.c.bf16 %v570_v8, %v314_v7  ;;  %v961_v7 = vld [vmem:[#allocation5 + $0x1888] sm:$0xff] }
  0xb6   :  { %12342 = vmatpush1.bf16.xpose.msra.mxu0 %v12341_v53  ;;  %11840 = vmatprep.subr.bf16.mxu1 %v11839_v54  ;;  %v1848_v24 = vcombine.high %v1846_v18, %v1846_v18  ;;  %v1321_v53 = vcombine.high %v1319_v45, %v1319_v45  ;;  %v1083_v13 = vld [vmem:[#allocation5 + $0x1c58] sm:$0xff] }
  0xb7   :  { %12344 = vmatprep.subr.bf16.mxu0 %v12343_v55  ;;  %2889 = vmatprep.mubr.f32.mxu1 %v1304_v56  ;;  %v698_v55 = vld [vmem:[#allocation5 + $0x1050] sm:$0xff] }
  0xb8   :  { %7299 = vmatprep.mubr.f32.mxu0 %v1847_v57  ;;  %v954_v56 = vld [vmem:[#allocation5 + $0x1850] sm:$0xff]  ;;  %v824_v57 = vld [vmem:[#allocation5 + $0x1440] sm:$0xff] }
  0xb9   :  { %v11857_v63 = vpack.c.bf16 %v954_v56, %v698_v55  ;;  %v12361_v0 = vpack.c.bf16 %v1080_v58, %v824_v57  ;;  %v1084_v55 = vld [vmem:[#allocation5 + $0x1c60] sm:$0xff]  ;;  %v193_v56 = vld [vmem:[#allocation5 + $0x88] sm:$0xff]  ;;  %v319_v58 = vld [vmem:[#allocation5 + $0x478] sm:$0xff] }
  0xba   :  { %v449_v57 = vld [vmem:[#allocation5 + $0x888] sm:$0xff] }
  0xbd   :  { %11842 = vmatpush1.bf16.xpose.msra.mxu1 %v11841_v2  ;;  %v12363_v2 = vpack.c.bf16 %v571_v62, %v315_v61  ;;  %v11875_v62 = vpack.c.bf16 %v449_v57, %v193_v56  ;;  %v579_v56 = vld [vmem:[#allocation5 + $0xc98] sm:$0xff] }
  0xbe   :  { %12346 = vmatpush1.bf16.xpose.msra.mxu0 %v12345_v3  ;;  %11844 = vmatprep.subr.bf16.mxu1 %v11843_v4  ;;  %v115_v3 = vld [vmem:[#allocation2 + $0x18] sm:$0xff]  ;;  %v1849_v4 = vcombine.high %v146_v38, %v146_v38 }
  0xbf   :  { %12348 = vmatprep.subr.bf16.mxu0 %v12347_v5  ;;  %v188_v5 = vld [vmem:[#allocation5 + $0x60] sm:$0xff]  ;;  %v1329_v11 = vrot.slane %v115_v3, %v13505_v17 }
  0xc0   :  { %v11861_v15 = vpack.c.bf16 %v444_v6, %v188_v5  ;;  %v574_v5 = vld [vmem:[#allocation5 + $0xc70] sm:$0xff]  ;;  %v705_v6 = vld [vmem:[#allocation5 + $0x1088] sm:$0xff] }
  0xc4   :  { %2890 = vmatmul.mubr.f32.vlgmr.msra.gmra.mrb[0].mxu1 %v1302_v48  ;;  %v1856_v48 = vrot.slane %v146_v38, %v13505_v17  ;;  %v316_v38 = vld [vmem:[#allocation5 + $0x460] sm:$0xff] }
  0xc5   :  { %11846 = vmatpush1.bf16.xpose.msra.mxu1 %v11845_v19  ;;  %7300 = vmatmul.mubr.f32.vlgmr.msra.gmra.mrb[0].mxu0 %v1839_v51  ;;  %v11855_v51 = vpack.c.bf16 %v955_v44, %v699_v43  ;;  %v12367_v19 = vpack.c.bf16 %v1083_v13, %v827_v12  ;;  %v829_v43 = vld [vmem:[#allocation5 + $0x1468] sm:$0xff]  ;;  %v12373_v47 = vpack.c.bf16 %v572_v39, %v316_v38  ;;  %v963_v38 = vld [vmem:[#allocation5 + $0x1898] sm:$0xff] }
  0xc6   :  { %12350 = vmatpush1.bf16.xpose.msra.mxu0 %v12349_v20  ;;  %11848 = vmatprep.subr.bf16.mxu1 %v11847_v21  ;;  %v1864_v54 = vcombine.high %v1856_v48, %v1856_v48  ;;  %v1337_v20 = vcombine.high %v1329_v11, %v1329_v11  ;;  %v1085_v44 = vld [vmem:[#allocation5 + $0x1c68] sm:$0xff] }
  0xc7   :  { %12352 = vmatprep.subr.bf16.mxu0 %v12351_v22  ;;  %2959 = vmatprep.mubr.f32.mxu1 %v1320_v23  ;;  %v700_v22 = vld [vmem:[#allocation5 + $0x1060] sm:$0xff] }
  0xc8   :  { %7369 = vmatprep.mubr.f32.mxu0 %v1848_v24  ;;  %v956_v23 = vld [vmem:[#allocation5 + $0x1860] sm:$0xff]  ;;  %v826_v24 = vld [vmem:[#allocation5 + $0x1450] sm:$0xff] }
  0xc9   :  { %v11865_v30 = vpack.c.bf16 %v956_v23, %v700_v22  ;;  %v12369_v31 = vpack.c.bf16 %v1082_v25, %v826_v24  ;;  %v1086_v22 = vld [vmem:[#allocation5 + $0x1c70] sm:$0xff]  ;;  %v195_v23 = vld [vmem:[#allocation5 + $0x98] sm:$0xff]  ;;  %v321_v25 = vld [vmem:[#allocation5 + $0x488] sm:$0xff] }
  0xca   :  { %v451_v24 = vld [vmem:[#allocation5 + $0x898] sm:$0xff] }
  0xcd   :  { %11850 = vmatpush1.bf16.xpose.msra.mxu1 %v11849_v33  ;;  %v12371_v33 = vpack.c.bf16 %v573_v29, %v317_v28  ;;  %v11883_v29 = vpack.c.bf16 %v451_v24, %v195_v23  ;;  %v581_v23 = vld [vmem:[#allocation5 + $0xca8] sm:$0xff] }
  0xce   :  { %12354 = vmatpush1.bf16.xpose.msra.mxu0 %v12353_v34  ;;  %11852 = vmatprep.subr.bf16.mxu1 %v11851_v35  ;;  %v1322_v34 = vcombine.high %v115_v3, %v115_v3  ;;  %v147_v35 = vld [vmem:[#allocation2 + $0x118] sm:$0xff]  ;;  %v448_v3 = vld [vmem:[#allocation5 + $0x880] sm:$0xff] }
  0xcf   :  { %12356 = vmatprep.subr.bf16.mxu0 %v12355_v36  ;;  %v190_v36 = vld [vmem:[#allocation5 + $0x70] sm:$0xff] }
  0xd0   :  { %v1336_v42 = vrot.slane %v1322_v34, %v13505_v17  ;;  %v11869_v46 = vpack.c.bf16 %v446_v37, %v190_v36  ;;  %v450_v34 = vld [vmem:[#allocation5 + $0x890] sm:$0xff]  ;;  %v576_v36 = vld [vmem:[#allocation5 + $0xc80] sm:$0xff]  ;;  %v707_v37 = vld [vmem:[#allocation5 + $0x1098] sm:$0xff] }
  0xd4   :  { %2960 = vmatmul.mubr.f32.vlgmr.msra.gmra.mrb[0].mxu1 %v1312_v14  ;;  %v1863_v14 = vrot.slane %v1849_v4, %v13505_v17  ;;  %v318_v4 = vld [vmem:[#allocation5 + $0x470] sm:$0xff] }
  0xd5   :  { %11854 = vmatpush1.bf16.xpose.msra.mxu1 %v11853_v49  ;;  %7370 = vmatmul.mubr.f32.vlgmr.msra.gmra.mrb[0].mxu0 %v1846_v18  ;;  %v11863_v18 = vpack.c.bf16 %v957_v10, %v701_v9  ;;  %v12375_v49 = vpack.c.bf16 %v1085_v44, %v829_v43  ;;  %v831_v9 = vld [vmem:[#allocation5 + $0x1478] sm:$0xff]  ;;  %v12381_v13 = vpack.c.bf16 %v574_v5, %v318_v4  ;;  %v965_v4 = vld [vmem:[#allocation5 + $0x18a8] sm:$0xff] }
  0xd6   :  { %12358 = vmatpush1.bf16.xpose.msra.mxu0 %v12357_v50  ;;  %11856 = vmatprep.subr.bf16.mxu1 %v11855_v51  ;;  %v1865_v21 = vcombine.high %v1863_v14, %v1863_v14  ;;  %v1338_v50 = vcombine.high %v1336_v42, %v1336_v42  ;;  %v1087_v10 = vld [vmem:[#allocation5 + $0x1c78] sm:$0xff] }
  0xd7   :  { %12360 = vmatprep.subr.bf16.mxu0 %v12359_v52  ;;  %3029 = vmatprep.mubr.f32.mxu1 %v1321_v53  ;;  %v702_v52 = vld [vmem:[#allocation5 + $0x1070] sm:$0xff] }
  0xd8   :  { %7439 = vmatprep.mubr.f32.mxu0 %v1864_v54  ;;  %v958_v53 = vld [vmem:[#allocation5 + $0x1870] sm:$0xff]  ;;  %v828_v54 = vld [vmem:[#allocation5 + $0x1460] sm:$0xff] }
  0xd9   :  { %v11873_v60 = vpack.c.bf16 %v958_v53, %v702_v52  ;;  %v12377_v61 = vpack.c.bf16 %v1084_v55, %v828_v54  ;;  %v1088_v52 = vld [vmem:[#allocation5 + $0x1c80] sm:$0xff]  ;;  %v197_v53 = vld [vmem:[#allocation5 + $0xa8] sm:$0xff]  ;;  %v323_v55 = vld [vmem:[#allocation5 + $0x498] sm:$0xff] }
  0xda   :  { %v453_v54 = vld [vmem:[#allocation5 + $0x8a8] sm:$0xff] }
  0xdd   :  { %11858 = vmatpush1.bf16.xpose.msra.mxu1 %v11857_v63  ;;  %v12379_v63 = vpack.c.bf16 %v575_v59, %v319_v58  ;;  %v11891_v59 = vpack.c.bf16 %v453_v54, %v197_v53  ;;  %v583_v53 = vld [vmem:[#allocation5 + $0xcb8] sm:$0xff] }
  0xde   :  { %12362 = vmatpush1.bf16.xpose.msra.mxu0 %v12361_v0  ;;  %11860 = vmatprep.subr.bf16.mxu1 %v11859_v1  ;;  %v116_v0 = vld [vmem:[#allocation2 + $0x20] sm:$0xff]  ;;  %v1866_v1 = vcombine.high %v147_v35, %v147_v35 }
  0xdf   :  { %12364 = vmatprep.subr.bf16.mxu0 %v12363_v2  ;;  %v192_v2 = vld [vmem:[#allocation5 + $0x80] sm:$0xff]  ;;  %v1346_v8 = vrot.slane %v116_v0, %v13505_v17 }
  0xe0   :  { %v11877_v12 = vpack.c.bf16 %v448_v3, %v192_v2  ;;  %v578_v2 = vld [vmem:[#allocation5 + $0xc90] sm:$0xff]  ;;  %v709_v3 = vld [vmem:[#allocation5 + $0x10a8] sm:$0xff] }
  0xe4   :  { %3030 = vmatmul.mubr.f32.vlgmr.msra.gmra.mrb[0].mxu1 %v1319_v45  ;;  %v1873_v45 = vrot.slane %v147_v35, %v13505_v17  ;;  %v320_v35 = vld [vmem:[#allocation5 + $0x480] sm:$0xff] }
  0xe5   :  { %11862 = vmatpush1.bf16.xpose.msra.mxu1 %v11861_v15  ;;  %7440 = vmatmul.mubr.f32.vlgmr.msra.gmra.mrb[0].mxu0 %v1856_v48  ;;  %v11871_v48 = vpack.c.bf16 %v959_v41, %v703_v40  ;;  %v12383_v15 = vpack.c.bf16 %v1087_v10, %v831_v9  ;;  %v833_v40 = vld [vmem:[#allocation5 + $0x1488] sm:$0xff]  ;;  %v12389_v44 = vpack.c.bf16 %v576_v36, %v320_v35  ;;  %v967_v35 = vld [vmem:[#allocation5 + $0x18b8] sm:$0xff] }
  0xe6   :  { %12366 = vmatpush1.bf16.xpose.msra.mxu0 %v12365_v16  ;;  %11864 = vmatprep.subr.bf16.mxu1 %v11863_v18  ;;  %v1881_v51 = vcombine.high %v1873_v45, %v1873_v45  ;;  %v1354_v16 = vcombine.high %v1346_v8, %v1346_v8  ;;  %v1089_v41 = vld [vmem:[#allocation5 + $0x1c88] sm:$0xff] }
  0xe7   :  { %12368 = vmatprep.subr.bf16.mxu0 %v12367_v19  ;;  %3099 = vmatprep.mubr.f32.mxu1 %v1337_v20  ;;  %v704_v19 = vld [vmem:[#allocation5 + $0x1080] sm:$0xff] }
  0xe8   :  { %7509 = vmatprep.mubr.f32.mxu0 %v1865_v21  ;;  %v960_v20 = vld [vmem:[#allocation5 + $0x1880] sm:$0xff]  ;;  %v830_v21 = vld [vmem:[#allocation5 + $0x1470] sm:$0xff] }
  0xe9   :  { %v11881_v27 = vpack.c.bf16 %v960_v20, %v704_v19  ;;  %v12385_v28 = vpack.c.bf16 %v1086_v22, %v830_v21  ;;  %v1090_v19 = vld [vmem:[#allocation5 + $0x1c90] sm:$0xff]  ;;  %v199_v20 = vld [vmem:[#allocation5 + $0xb8] sm:$0xff]  ;;  %v325_v22 = vld [vmem:[#allocation5 + $0x4a8] sm:$0xff] }
  0xea   :  { %v455_v21 = vld [vmem:[#allocation5 + $0x8b8] sm:$0xff] }
  0xed   :  { %11866 = vmatpush1.bf16.xpose.msra.mxu1 %v11865_v30  ;;  %v12387_v30 = vpack.c.bf16 %v577_v26, %v321_v25  ;;  %v11899_v26 = vpack.c.bf16 %v455_v21, %v199_v20  ;;  %v585_v20 = vld [vmem:[#allocation5 + $0xcc8] sm:$0xff] }
  0xee   :  { %12370 = vmatpush1.bf16.xpose.msra.mxu0 %v12369_v31  ;;  %11868 = vmatprep.subr.bf16.mxu1 %v11867_v32  ;;  %v1339_v31 = vcombine.high %v116_v0, %v116_v0  ;;  %v148_v32 = vld [vmem:[#allocation2 + $0x120] sm:$0xff] }
  0xef   :  { %12372 = vmatprep.subr.bf16.mxu0 %v12371_v33  ;;  %v194_v33 = vld [vmem:[#allocation5 + $0x90] sm:$0xff]  ;;  %v452_v0 = vld [vmem:[#allocation5 + $0x8a0] sm:$0xff] }
  0xf0   :  { %v1353_v39 = vrot.slane %v1339_v31, %v13505_v17  ;;  %v11885_v43 = vpack.c.bf16 %v450_v34, %v194_v33  ;;  %v454_v31 = vld [vmem:[#allocation5 + $0x8b0] sm:$0xff]  ;;  %v580_v33 = vld [vmem:[#allocation5 + $0xca0] sm:$0xff]  ;;  %v711_v34 = vld [vmem:[#allocation5 + $0x10b8] sm:$0xff] }
  0xf4   :  { %3100 = vmatmul.mubr.f32.vlgmr.msra.gmra.mrb[0].mxu1 %v1329_v11  ;;  %v1880_v11 = vrot.slane %v1866_v1, %v13505_v17  ;;  %v322_v1 = vld [vmem:[#allocation5 + $0x490] sm:$0xff] }
  0xf5   :  { %11870 = vmatpush1.bf16.xpose.msra.mxu1 %v11869_v46  ;;  %7510 = vmatmul.mubr.f32.vlgmr.msra.gmra.mrb[0].mxu0 %v1863_v14  ;;  %v11879_v14 = vpack.c.bf16 %v961_v7, %v705_v6  ;;  %v12391_v46 = vpack.c.bf16 %v1089_v41, %v833_v40  ;;  %v835_v6 = vld [vmem:[#allocation5 + $0x1498] sm:$0xff]  ;;  %v12397_v10 = vpack.c.bf16 %v578_v2, %v322_v1  ;;  %v969_v1 = vld [vmem:[#allocation5 + $0x18c8] sm:$0xff] }
  0xf6   :  { %12374 = vmatpush1.bf16.xpose.msra.mxu0 %v12373_v47  ;;  %11872 = vmatprep.subr.bf16.mxu1 %v11871_v48  ;;  %v1882_v18 = vcombine.high %v1880_v11, %v1880_v11  ;;  %v1355_v47 = vcombine.high %v1353_v39, %v1353_v39  ;;  %v1091_v7 = vld [vmem:[#allocation5 + $0x1c98] sm:$0xff] }
  0xf7   :  { %12376 = vmatprep.subr.bf16.mxu0 %v12375_v49  ;;  %3169 = vmatprep.mubr.f32.mxu1 %v1338_v50  ;;  %v706_v49 = vld [vmem:[#allocation5 + $0x1090] sm:$0xff] }
  0xf8   :  { %7579 = vmatprep.mubr.f32.mxu0 %v1881_v51  ;;  %v962_v50 = vld [vmem:[#allocation5 + $0x1890] sm:$0xff]  ;;  %v832_v51 = vld [vmem:[#allocation5 + $0x1480] sm:$0xff] }
  0xf9   :  { %v11889_v57 = vpack.c.bf16 %v962_v50, %v706_v49  ;;  %v12393_v58 = vpack.c.bf16 %v1088_v52, %v832_v51  ;;  %v1092_v49 = vld [vmem:[#allocation5 + $0x1ca0] sm:$0xff]  ;;  %v201_v50 = vld [vmem:[#allocation5 + $0xc8] sm:$0xff]  ;;  %v327_v52 = vld [vmem:[#allocation5 + $0x4b8] sm:$0xff] }
  0xfa   :  { %v457_v51 = vld [vmem:[#allocation5 + $0x8c8] sm:$0xff] }
  0xfd   :  { %11874 = vmatpush1.bf16.xpose.msra.mxu1 %v11873_v60  ;;  %v12395_v60 = vpack.c.bf16 %v579_v56, %v323_v55  ;;  %v11907_v56 = vpack.c.bf16 %v457_v51, %v201_v50  ;;  %v587_v50 = vld [vmem:[#allocation5 + $0xcd8] sm:$0xff] }
  0xfe   :  { %12378 = vmatpush1.bf16.xpose.msra.mxu0 %v12377_v61  ;;  %11876 = vmatprep.subr.bf16.mxu1 %v11875_v62  ;;  %v117_v61 = vld [vmem:[#allocation2 + $0x28] sm:$0xff]  ;;  %v1883_v62 = vcombine.high %v148_v32, %v148_v32 }
  0xff   :  { %12380 = vmatprep.subr.bf16.mxu0 %v12379_v63  ;;  %v196_v63 = vld [vmem:[#allocation5 + $0xa0] sm:$0xff]  ;;  %v1363_v5 = vrot.slane %v117_v61, %v13505_v17 }
 0x100   :  { %v11893_v9 = vpack.c.bf16 %v452_v0, %v196_v63  ;;  %v582_v63 = vld [vmem:[#allocation5 + $0xcb0] sm:$0xff]  ;;  %v713_v0 = vld [vmem:[#allocation5 + $0x10c8] sm:$0xff] }
 0x104   :  { %3170 = vmatmul.mubr.f32.vlgmr.msra.gmra.mrb[0].mxu1 %v1336_v42  ;;  %v1890_v42 = vrot.slane %v148_v32, %v13505_v17  ;;  %v324_v32 = vld [vmem:[#allocation5 + $0x4a0] sm:$0xff] }
 0x105   :  { %11878 = vmatpush1.bf16.xpose.msra.mxu1 %v11877_v12  ;;  %7580 = vmatmul.mubr.f32.vlgmr.msra.gmra.mrb[0].mxu0 %v1873_v45  ;;  %v11887_v45 = vpack.c.bf16 %v963_v38, %v707_v37  ;;  %v12399_v12 = vpack.c.bf16 %v1091_v7, %v835_v6  ;;  %v837_v37 = vld [vmem:[#allocation5 + $0x14a8] sm:$0xff]  ;;  %v12405_v41 = vpack.c.bf16 %v580_v33, %v324_v32  ;;  %v971_v32 = vld [vmem:[#allocation5 + $0x18d8] sm:$0xff] }
 0x106   :  { %12382 = vmatpush1.bf16.xpose.msra.mxu0 %v12381_v13  ;;  %11880 = vmatprep.subr.bf16.mxu1 %v11879_v14  ;;  %v1898_v48 = vcombine.high %v1890_v42, %v1890_v42  ;;  %v1371_v13 = vcombine.high %v1363_v5, %v1363_v5  ;;  %v1093_v38 = vld [vmem:[#allocation5 + $0x1ca8] sm:$0xff] }
 0x107   :  { %12384 = vmatprep.subr.bf16.mxu0 %v12383_v15  ;;  %3239 = vmatprep.mubr.f32.mxu1 %v1354_v16  ;;  %v708_v15 = vld [vmem:[#allocation5 + $0x10a0] sm:$0xff] }
 0x108   :  { %7649 = vmatprep.mubr.f32.mxu0 %v1882_v18  ;;  %v964_v16 = vld [vmem:[#allocation5 + $0x18a0] sm:$0xff]  ;;  %v834_v18 = vld [vmem:[#allocation5 + $0x1490] sm:$0xff] }
 0x109   :  { %v11897_v24 = vpack.c.bf16 %v964_v16, %v708_v15  ;;  %v12401_v25 = vpack.c.bf16 %v1090_v19, %v834_v18  ;;  %v1094_v15 = vld [vmem:[#allocation5 + $0x1cb0] sm:$0xff]  ;;  %v203_v16 = vld [vmem:[#allocation5 + $0xd8] sm:$0xff]  ;;  %v329_v19 = vld [vmem:[#allocation5 + $0x4c8] sm:$0xff] }
 0x10a   :  { %v459_v18 = vld [vmem:[#allocation5 + $0x8d8] sm:$0xff] }
 0x10d   :  { %11882 = vmatpush1.bf16.xpose.msra.mxu1 %v11881_v27  ;;  %v12403_v27 = vpack.c.bf16 %v581_v23, %v325_v22  ;;  %v11915_v23 = vpack.c.bf16 %v459_v18, %v203_v16  ;;  %v589_v16 = vld [vmem:[#allocation5 + $0xce8] sm:$0xff] }
 0x10e   :  { %12386 = vmatpush1.bf16.xpose.msra.mxu0 %v12385_v28  ;;  %11884 = vmatprep.subr.bf16.mxu1 %v11883_v29  ;;  %v1356_v28 = vcombine.high %v117_v61, %v117_v61  ;;  %v149_v29 = vld [vmem:[#allocation2 + $0x128] sm:$0xff]  ;;  %v456_v61 = vld [vmem:[#allocation5 + $0x8c0] sm:$0xff] }
 0x10f   :  { %12388 = vmatprep.subr.bf16.mxu0 %v12387_v30  ;;  %v198_v30 = vld [vmem:[#allocation5 + $0xb0] sm:$0xff] }
 0x110   :  { %v1370_v36 = vrot.slane %v1356_v28, %v13505_v17  ;;  %v11901_v40 = vpack.c.bf16 %v454_v31, %v198_v30  ;;  %v458_v28 = vld [vmem:[#allocation5 + $0x8d0] sm:$0xff]  ;;  %v584_v30 = vld [vmem:[#allocation5 + $0xcc0] sm:$0xff]  ;;  %v715_v31 = vld [vmem:[#allocation5 + $0x10d8] sm:$0xff] }
 0x114   :  { %3240 = vmatmul.mubr.f32.vlgmr.msra.gmra.mrb[0].mxu1 %v1346_v8  ;;  %v1897_v8 = vrot.slane %v1883_v62, %v13505_v17  ;;  %v326_v62 = vld [vmem:[#allocation5 + $0x4b0] sm:$0xff] }
 0x115   :  { %11886 = vmatpush1.bf16.xpose.msra.mxu1 %v11885_v43  ;;  %7650 = vmatmul.mubr.f32.vlgmr.msra.gmra.mrb[0].mxu0 %v1880_v11  ;;  %v11895_v11 = vpack.c.bf16 %v965_v4, %v709_v3  ;;  %v12407_v43 = vpack.c.bf16 %v1093_v38, %v837_v37  ;;  %v839_v3 = vld [vmem:[#allocation5 + $0x14b8] sm:$0xff]  ;;  %v12413_v7 = vpack.c.bf16 %v582_v63, %v326_v62  ;;  %v973_v62 = vld [vmem:[#allocation5 + $0x18e8] sm:$0xff] }
 0x116   :  { %12390 = vmatpush1.bf16.xpose.msra.mxu0 %v12389_v44  ;;  %11888 = vmatprep.subr.bf16.mxu1 %v11887_v45  ;;  %v1899_v14 = vcombine.high %v1897_v8, %v1897_v8  ;;  %v1372_v44 = vcombine.high %v1370_v36, %v1370_v36  ;;  %v1095_v4 = vld [vmem:[#allocation5 + $0x1cb8] sm:$0xff] }
 0x117   :  { %12392 = vmatprep.subr.bf16.mxu0 %v12391_v46  ;;  %3309 = vmatprep.mubr.f32.mxu1 %v1355_v47  ;;  %v710_v46 = vld [vmem:[#allocation5 + $0x10b0] sm:$0xff] }
 0x118   :  { %7719 = vmatprep.mubr.f32.mxu0 %v1898_v48  ;;  %v966_v47 = vld [vmem:[#allocation5 + $0x18b0] sm:$0xff]  ;;  %v836_v48 = vld [vmem:[#allocation5 + $0x14a0] sm:$0xff] }
 0x119   :  { %v11905_v54 = vpack.c.bf16 %v966_v47, %v710_v46  ;;  %v12409_v55 = vpack.c.bf16 %v1092_v49, %v836_v48  ;;  %v1096_v46 = vld [vmem:[#allocation5 + $0x1cc0] sm:$0xff]  ;;  %v205_v47 = vld [vmem:[#allocation5 + $0xe8] sm:$0xff]  ;;  %v331_v49 = vld [vmem:[#allocation5 + $0x4d8] sm:$0xff] }
 0x11a   :  { %v461_v48 = vld [vmem:[#allocation5 + $0x8e8] sm:$0xff] }
 0x11d   :  { %11890 = vmatpush1.bf16.xpose.msra.mxu1 %v11889_v57  ;;  %v12411_v57 = vpack.c.bf16 %v583_v53, %v327_v52  ;;  %v11923_v53 = vpack.c.bf16 %v461_v48, %v205_v47  ;;  %v591_v47 = vld [vmem:[#allocation5 + $0xcf8] sm:$0xff] }
 0x11e   :  { %12394 = vmatpush1.bf16.xpose.msra.mxu0 %v12393_v58  ;;  %11892 = vmatprep.subr.bf16.mxu1 %v11891_v59  ;;  %v118_v58 = vld [vmem:[#allocation2 + $0x30] sm:$0xff]  ;;  %v1900_v59 = vcombine.high %v149_v29, %v149_v29 }
 0x11f   :  { %12396 = vmatprep.subr.bf16.mxu0 %v12395_v60  ;;  %v200_v60 = vld [vmem:[#allocation5 + $0xc0] sm:$0xff]  ;;  %v1380_v2 = vrot.slane %v118_v58, %v13505_v17 }
 0x120   :  { %v11909_v6 = vpack.c.bf16 %v456_v61, %v200_v60  ;;  %v586_v60 = vld [vmem:[#allocation5 + $0xcd0] sm:$0xff]  ;;  %v717_v61 = vld [vmem:[#allocation5 + $0x10e8] sm:$0xff] }
 0x124   :  { %3310 = vmatmul.mubr.f32.vlgmr.msra.gmra.mrb[0].mxu1 %v1353_v39  ;;  %v1907_v39 = vrot.slane %v149_v29, %v13505_v17  ;;  %v328_v29 = vld [vmem:[#allocation5 + $0x4c0] sm:$0xff] }
 0x125   :  { %11894 = vmatpush1.bf16.xpose.msra.mxu1 %v11893_v9  ;;  %7720 = vmatmul.mubr.f32.vlgmr.msra.gmra.mrb[0].mxu0 %v1890_v42  ;;  %v11903_v42 = vpack.c.bf16 %v967_v35, %v711_v34  ;;  %v12415_v9 = vpack.c.bf16 %v1095_v4, %v839_v3  ;;  %v841_v34 = vld [vmem:[#allocation5 + $0x14c8] sm:$0xff]  ;;  %v12421_v38 = vpack.c.bf16 %v584_v30, %v328_v29  ;;  %v975_v29 = vld [vmem:[#allocation5 + $0x18f8] sm:$0xff] }
 0x126   :  { %12398 = vmatpush1.bf16.xpose.msra.mxu0 %v12397_v10  ;;  %11896 = vmatprep.subr.bf16.mxu1 %v11895_v11  ;;  %v1915_v45 = vcombine.high %v1907_v39, %v1907_v39  ;;  %v1388_v10 = vcombine.high %v1380_v2, %v1380_v2  ;;  %v1097_v35 = vld [vmem:[#allocation5 + $0x1cc8] sm:$0xff] }
 0x127   :  { %12400 = vmatprep.subr.bf16.mxu0 %v12399_v12  ;;  %3379 = vmatprep.mubr.f32.mxu1 %v1371_v13  ;;  %v712_v12 = vld [vmem:[#allocation5 + $0x10c0] sm:$0xff] }
 0x128   :  { %7789 = vmatprep.mubr.f32.mxu0 %v1899_v14  ;;  %v968_v13 = vld [vmem:[#allocation5 + $0x18c0] sm:$0xff]  ;;  %v838_v14 = vld [vmem:[#allocation5 + $0x14b0] sm:$0xff] }
 0x129   :  { %v11913_v21 = vpack.c.bf16 %v968_v13, %v712_v12  ;;  %v12417_v22 = vpack.c.bf16 %v1094_v15, %v838_v14  ;;  %v1098_v12 = vld [vmem:[#allocation5 + $0x1cd0] sm:$0xff]  ;;  %v207_v13 = vld [vmem:[#allocation5 + $0xf8] sm:$0xff]  ;;  %v333_v15 = vld [vmem:[#allocation5 + $0x4e8] sm:$0xff] }
 0x12a   :  { %v463_v14 = vld [vmem:[#allocation5 + $0x8f8] sm:$0xff] }
 0x12d   :  { %11898 = vmatpush1.bf16.xpose.msra.mxu1 %v11897_v24  ;;  %v12419_v24 = vpack.c.bf16 %v585_v20, %v329_v19  ;;  %v11931_v20 = vpack.c.bf16 %v463_v14, %v207_v13  ;;  %v593_v13 = vld [vmem:[#allocation5 + $0xd08] sm:$0xff] }
 0x12e   :  { %12402 = vmatpush1.bf16.xpose.msra.mxu0 %v12401_v25  ;;  %11900 = vmatprep.subr.bf16.mxu1 %v11899_v26  ;;  %v1373_v25 = vcombine.high %v118_v58, %v118_v58  ;;  %v150_v26 = vld [vmem:[#allocation2 + $0x130] sm:$0xff]  ;;  %v460_v58 = vld [vmem:[#allocation5 + $0x8e0] sm:$0xff] }
 0x12f   :  { %12404 = vmatprep.subr.bf16.mxu0 %v12403_v27  ;;  %v202_v27 = vld [vmem:[#allocation5 + $0xd0] sm:$0xff] }
 0x130   :  { %v1387_v33 = vrot.slane %v1373_v25, %v13505_v17  ;;  %v11917_v37 = vpack.c.bf16 %v458_v28, %v202_v27  ;;  %v462_v25 = vld [vmem:[#allocation5 + $0x8f0] sm:$0xff]  ;;  %v588_v27 = vld [vmem:[#allocation5 + $0xce0] sm:$0xff]  ;;  %v719_v28 = vld [vmem:[#allocation5 + $0x10f8] sm:$0xff] }
 0x134   :  { %3380 = vmatmul.mubr.f32.vlgmr.msra.gmra.mrb[0].mxu1 %v1363_v5  ;;  %v1914_v5 = vrot.slane %v1900_v59, %v13505_v17  ;;  %v330_v59 = vld [vmem:[#allocation5 + $0x4d0] sm:$0xff] }
 0x135   :  { %11902 = vmatpush1.bf16.xpose.msra.mxu1 %v11901_v40  ;;  %7790 = vmatmul.mubr.f32.vlgmr.msra.gmra.mrb[0].mxu0 %v1897_v8  ;;  %v11911_v8 = vpack.c.bf16 %v969_v1, %v713_v0  ;;  %v12423_v40 = vpack.c.bf16 %v1097_v35, %v841_v34  ;;  %v843_v0 = vld [vmem:[#allocation5 + $0x14d8] sm:$0xff]  ;;  %v12429_v4 = vpack.c.bf16 %v586_v60, %v330_v59  ;;  %v977_v59 = vld [vmem:[#allocation5 + $0x1908] sm:$0xff] }
 0x136   :  { %12406 = vmatpush1.bf16.xpose.msra.mxu0 %v12405_v41  ;;  %11904 = vmatprep.subr.bf16.mxu1 %v11903_v42  ;;  %v1916_v11 = vcombine.high %v1914_v5, %v1914_v5  ;;  %v1389_v41 = vcombine.high %v1387_v33, %v1387_v33  ;;  %v1099_v1 = vld [vmem:[#allocation5 + $0x1cd8] sm:$0xff] }
 0x137   :  { %12408 = vmatprep.subr.bf16.mxu0 %v12407_v43  ;;  %3449 = vmatprep.mubr.f32.mxu1 %v1372_v44  ;;  %v714_v43 = vld [vmem:[#allocation5 + $0x10d0] sm:$0xff] }
 0x138   :  { %7859 = vmatprep.mubr.f32.mxu0 %v1915_v45  ;;  %v970_v44 = vld [vmem:[#allocation5 + $0x18d0] sm:$0xff]  ;;  %v840_v45 = vld [vmem:[#allocation5 + $0x14c0] sm:$0xff] }
 0x139   :  { %v11921_v51 = vpack.c.bf16 %v970_v44, %v714_v43  ;;  %v12425_v52 = vpack.c.bf16 %v1096_v46, %v840_v45  ;;  %v1100_v43 = vld [vmem:[#allocation5 + $0x1ce0] sm:$0xff]  ;;  %v209_v44 = vld [vmem:[#allocation5 + $0x108] sm:$0xff]  ;;  %v335_v46 = vld [vmem:[#allocation5 + $0x4f8] sm:$0xff] }
 0x13a   :  { %v465_v45 = vld [vmem:[#allocation5 + $0x908] sm:$0xff] }
 0x13d   :  { %11906 = vmatpush1.bf16.xpose.msra.mxu1 %v11905_v54  ;;  %v12427_v54 = vpack.c.bf16 %v587_v50, %v331_v49  ;;  %v11939_v50 = vpack.c.bf16 %v465_v45, %v209_v44  ;;  %v595_v44 = vld [vmem:[#allocation5 + $0xd18] sm:$0xff] }
 0x13e   :  { %12410 = vmatpush1.bf16.xpose.msra.mxu0 %v12409_v55  ;;  %11908 = vmatprep.subr.bf16.mxu1 %v11907_v56  ;;  %v119_v55 = vld [vmem:[#allocation2 + $0x38] sm:$0xff]  ;;  %v1917_v56 = vcombine.high %v150_v26, %v150_v26 }
 0x13f   :  { %12412 = vmatprep.subr.bf16.mxu0 %v12411_v57  ;;  %v204_v57 = vld [vmem:[#allocation5 + $0xe0] sm:$0xff]  ;;  %v1397_v63 = vrot.slane %v119_v55, %v13505_v17 }
 0x140   :  { %v11925_v3 = vpack.c.bf16 %v460_v58, %v204_v57  ;;  %v590_v57 = vld [vmem:[#allocation5 + $0xcf0] sm:$0xff]  ;;  %v721_v58 = vld [vmem:[#allocation5 + $0x1108] sm:$0xff] }
 0x144   :  { %3450 = vmatmul.mubr.f32.vlgmr.msra.gmra.mrb[0].mxu1 %v1370_v36  ;;  %v1924_v36 = vrot.slane %v150_v26, %v13505_v17  ;;  %v332_v26 = vld [vmem:[#allocation5 + $0x4e0] sm:$0xff] }
 0x145   :  { %11910 = vmatpush1.bf16.xpose.msra.mxu1 %v11909_v6  ;;  %7860 = vmatmul.mubr.f32.vlgmr.msra.gmra.mrb[0].mxu0 %v1907_v39  ;;  %v11919_v39 = vpack.c.bf16 %v971_v32, %v715_v31  ;;  %v12431_v6 = vpack.c.bf16 %v1099_v1, %v843_v0  ;;  %v845_v31 = vld [vmem:[#allocation5 + $0x14e8] sm:$0xff]  ;;  %v12437_v35 = vpack.c.bf16 %v588_v27, %v332_v26  ;;  %v979_v26 = vld [vmem:[#allocation5 + $0x1918] sm:$0xff] }
 0x146   :  { %12414 = vmatpush1.bf16.xpose.msra.mxu0 %v12413_v7  ;;  %11912 = vmatprep.subr.bf16.mxu1 %v11911_v8  ;;  %v1932_v42 = vcombine.high %v1924_v36, %v1924_v36  ;;  %v1405_v7 = vcombine.high %v1397_v63, %v1397_v63  ;;  %v1101_v32 = vld [vmem:[#allocation5 + $0x1ce8] sm:$0xff] }
 0x147   :  { %12416 = vmatprep.subr.bf16.mxu0 %v12415_v9  ;;  %3519 = vmatprep.mubr.f32.mxu1 %v1388_v10  ;;  %v716_v9 = vld [vmem:[#allocation5 + $0x10e0] sm:$0xff] }
 0x148   :  { %7929 = vmatprep.mubr.f32.mxu0 %v1916_v11  ;;  %v972_v10 = vld [vmem:[#allocation5 + $0x18e0] sm:$0xff]  ;;  %v842_v11 = vld [vmem:[#allocation5 + $0x14d0] sm:$0xff] }
 0x149   :  { %v11929_v18 = vpack.c.bf16 %v972_v10, %v716_v9  ;;  %v12433_v19 = vpack.c.bf16 %v1098_v12, %v842_v11  ;;  %v1102_v9 = vld [vmem:[#allocation5 + $0x1cf0] sm:$0xff]  ;;  %v211_v10 = vld [vmem:[#allocation5 + $0x118] sm:$0xff]  ;;  %v337_v12 = vld [vmem:[#allocation5 + $0x508] sm:$0xff] }
 0x14a   :  { %v467_v11 = vld [vmem:[#allocation5 + $0x918] sm:$0xff] }
 0x14d   :  { %11914 = vmatpush1.bf16.xpose.msra.mxu1 %v11913_v21  ;;  %v12435_v21 = vpack.c.bf16 %v589_v16, %v333_v15  ;;  %v11947_v16 = vpack.c.bf16 %v467_v11, %v211_v10  ;;  %v597_v10 = vld [vmem:[#allocation5 + $0xd28] sm:$0xff] }
 0x14e   :  { %12418 = vmatpush1.bf16.xpose.msra.mxu0 %v12417_v22  ;;  %11916 = vmatprep.subr.bf16.mxu1 %v11915_v23  ;;  %v1390_v22 = vcombine.high %v119_v55, %v119_v55  ;;  %v151_v23 = vld [vmem:[#allocation2 + $0x138] sm:$0xff]  ;;  %v464_v55 = vld [vmem:[#allocation5 + $0x900] sm:$0xff] }
 0x14f   :  { %12420 = vmatprep.subr.bf16.mxu0 %v12419_v24  ;;  %v206_v24 = vld [vmem:[#allocation5 + $0xf0] sm:$0xff] }
 0x150   :  { %v1404_v30 = vrot.slane %v1390_v22, %v13505_v17  ;;  %v11933_v34 = vpack.c.bf16 %v462_v25, %v206_v24  ;;  %v466_v22 = vld [vmem:[#allocation5 + $0x910] sm:$0xff]  ;;  %v592_v24 = vld [vmem:[#allocation5 + $0xd00] sm:$0xff]  ;;  %v723_v25 = vld [vmem:[#allocation5 + $0x1118] sm:$0xff] }
 0x154   :  { %3520 = vmatmul.mubr.f32.vlgmr.msra.gmra.mrb[0].mxu1 %v1380_v2  ;;  %v1931_v2 = vrot.slane %v1917_v56, %v13505_v17  ;;  %v334_v56 = vld [vmem:[#allocation5 + $0x4f0] sm:$0xff] }
 0x155   :  { %11918 = vmatpush1.bf16.xpose.msra.mxu1 %v11917_v37  ;;  %7930 = vmatmul.mubr.f32.vlgmr.msra.gmra.mrb[0].mxu0 %v1914_v5  ;;  %v11927_v5 = vpack.c.bf16 %v973_v62, %v717_v61  ;;  %v12439_v37 = vpack.c.bf16 %v1101_v32, %v845_v31  ;;  %v847_v61 = vld [vmem:[#allocation5 + $0x14f8] sm:$0xff]  ;;  %v12445_v1 = vpack.c.bf16 %v590_v57, %v334_v56  ;;  %v981_v56 = vld [vmem:[#allocation5 + $0x1928] sm:$0xff] }
 0x156   :  { %12422 = vmatpush1.bf16.xpose.msra.mxu0 %v12421_v38  ;;  %11920 = vmatprep.subr.bf16.mxu1 %v11919_v39  ;;  %v1933_v8 = vcombine.high %v1931_v2, %v1931_v2  ;;  %v1406_v38 = vcombine.high %v1404_v30, %v1404_v30  ;;  %v1103_v62 = vld [vmem:[#allocation5 + $0x1cf8] sm:$0xff] }
 0x157   :  { %12424 = vmatprep.subr.bf16.mxu0 %v12423_v40  ;;  %3589 = vmatprep.mubr.f32.mxu1 %v1389_v41  ;;  %v718_v40 = vld [vmem:[#allocation5 + $0x10f0] sm:$0xff] }
 0x158   :  { %7999 = vmatprep.mubr.f32.mxu0 %v1932_v42  ;;  %v974_v41 = vld [vmem:[#allocation5 + $0x18f0] sm:$0xff]  ;;  %v844_v42 = vld [vmem:[#allocation5 + $0x14e0] sm:$0xff] }
 0x159   :  { %v11937_v48 = vpack.c.bf16 %v974_v41, %v718_v40  ;;  %v12441_v49 = vpack.c.bf16 %v1100_v43, %v844_v42  ;;  %v1104_v40 = vld [vmem:[#allocation5 + $0x1d00] sm:$0xff]  ;;  %v213_v41 = vld [vmem:[#allocation5 + $0x128] sm:$0xff]  ;;  %v339_v43 = vld [vmem:[#allocation5 + $0x518] sm:$0xff] }
 0x15a   :  { %v469_v42 = vld [vmem:[#allocation5 + $0x928] sm:$0xff] }
 0x15d   :  { %11922 = vmatpush1.bf16.xpose.msra.mxu1 %v11921_v51  ;;  %v12443_v51 = vpack.c.bf16 %v591_v47, %v335_v46  ;;  %v11955_v47 = vpack.c.bf16 %v469_v42, %v213_v41  ;;  %v599_v41 = vld [vmem:[#allocation5 + $0xd38] sm:$0xff] }
 0x15e   :  { %12426 = vmatpush1.bf16.xpose.msra.mxu0 %v12425_v52  ;;  %11924 = vmatprep.subr.bf16.mxu1 %v11923_v53  ;;  %v120_v52 = vld [vmem:[#allocation2 + $0x40] sm:$0xff]  ;;  %v1934_v53 = vcombine.high %v151_v23, %v151_v23 }
 0x15f   :  { %12428 = vmatprep.subr.bf16.mxu0 %v12427_v54  ;;  %v208_v54 = vld [vmem:[#allocation5 + $0x100] sm:$0xff]  ;;  %v1414_v60 = vrot.slane %v120_v52, %v13505_v17 }
 0x160   :  { %v11941_v0 = vpack.c.bf16 %v464_v55, %v208_v54  ;;  %v594_v54 = vld [vmem:[#allocation5 + $0xd10] sm:$0xff]  ;;  %v725_v55 = vld [vmem:[#allocation5 + $0x1128] sm:$0xff] }
 0x164   :  { %3590 = vmatmul.mubr.f32.vlgmr.msra.gmra.mrb[0].mxu1 %v1387_v33  ;;  %v1941_v33 = vrot.slane %v151_v23, %v13505_v17  ;;  %v336_v23 = vld [vmem:[#allocation5 + $0x500] sm:$0xff] }
 0x165   :  { %11926 = vmatpush1.bf16.xpose.msra.mxu1 %v11925_v3  ;;  %8000 = vmatmul.mubr.f32.vlgmr.msra.gmra.mrb[0].mxu0 %v1924_v36  ;;  %v11935_v36 = vpack.c.bf16 %v975_v29, %v719_v28  ;;  %v12447_v3 = vpack.c.bf16 %v1103_v62, %v847_v61  ;;  %v849_v28 = vld [vmem:[#allocation5 + $0x1508] sm:$0xff]  ;;  %v12453_v32 = vpack.c.bf16 %v592_v24, %v336_v23  ;;  %v983_v23 = vld [vmem:[#allocation5 + $0x1938] sm:$0xff] }
 0x166   :  { %12430 = vmatpush1.bf16.xpose.msra.mxu0 %v12429_v4  ;;  %11928 = vmatprep.subr.bf16.mxu1 %v11927_v5  ;;  %v1949_v39 = vcombine.high %v1941_v33, %v1941_v33  ;;  %v1422_v4 = vcombine.high %v1414_v60, %v1414_v60  ;;  %v1105_v29 = vld [vmem:[#allocation5 + $0x1d08] sm:$0xff] }
 0x167   :  { %12432 = vmatprep.subr.bf16.mxu0 %v12431_v6  ;;  %3659 = vmatprep.mubr.f32.mxu1 %v1405_v7  ;;  %v720_v6 = vld [vmem:[#allocation5 + $0x1100] sm:$0xff] }
 0x168   :  { %8069 = vmatprep.mubr.f32.mxu0 %v1933_v8  ;;  %v976_v7 = vld [vmem:[#allocation5 + $0x1900] sm:$0xff]  ;;  %v846_v8 = vld [vmem:[#allocation5 + $0x14f0] sm:$0xff] }
 0x169   :  { %v11945_v14 = vpack.c.bf16 %v976_v7, %v720_v6  ;;  %v12449_v15 = vpack.c.bf16 %v1102_v9, %v846_v8  ;;  %v1106_v6 = vld [vmem:[#allocation5 + $0x1d10] sm:$0xff]  ;;  %v215_v7 = vld [vmem:[#allocation5 + $0x138] sm:$0xff]  ;;  %v341_v9 = vld [vmem:[#allocation5 + $0x528] sm:$0xff] }
 0x16a   :  { %v471_v8 = vld [vmem:[#allocation5 + $0x938] sm:$0xff] }
 0x16d   :  { %11930 = vmatpush1.bf16.xpose.msra.mxu1 %v11929_v18  ;;  %v12451_v18 = vpack.c.bf16 %v593_v13, %v337_v12  ;;  %v11963_v13 = vpack.c.bf16 %v471_v8, %v215_v7  ;;  %v601_v7 = vld [vmem:[#allocation5 + $0xd48] sm:$0xff] }
 0x16e   :  { %12434 = vmatpush1.bf16.xpose.msra.mxu0 %v12433_v19  ;;  %11932 = vmatprep.subr.bf16.mxu1 %v11931_v20  ;;  %v1407_v19 = vcombine.high %v120_v52, %v120_v52  ;;  %v152_v20 = vld [vmem:[#allocation2 + $0x140] sm:$0xff] }
 0x16f   :  { %12436 = vmatprep.subr.bf16.mxu0 %v12435_v21  ;;  %v210_v21 = vld [vmem:[#allocation5 + $0x110] sm:$0xff]  ;;  %v468_v52 = vld [vmem:[#allocation5 + $0x920] sm:$0xff] }
 0x170   :  { %v1421_v27 = vrot.slane %v1407_v19, %v13505_v17  ;;  %v11949_v31 = vpack.c.bf16 %v466_v22, %v210_v21  ;;  %v470_v19 = vld [vmem:[#allocation5 + $0x930] sm:$0xff]  ;;  %v596_v21 = vld [vmem:[#allocation5 + $0xd20] sm:$0xff]  ;;  %v727_v22 = vld [vmem:[#allocation5 + $0x1138] sm:$0xff] }
 0x174   :  { %3660 = vmatmul.mubr.f32.vlgmr.msra.gmra.mrb[0].mxu1 %v1397_v63  ;;  %v1948_v63 = vrot.slane %v1934_v53, %v13505_v17  ;;  %v338_v53 = vld [vmem:[#allocation5 + $0x510] sm:$0xff] }
 0x175   :  { %11934 = vmatpush1.bf16.xpose.msra.mxu1 %v11933_v34  ;;  %8070 = vmatmul.mubr.f32.vlgmr.msra.gmra.mrb[0].mxu0 %v1931_v2  ;;  %v11943_v2 = vpack.c.bf16 %v977_v59, %v721_v58  ;;  %v12455_v34 = vpack.c.bf16 %v1105_v29, %v849_v28  ;;  %v851_v58 = vld [vmem:[#allocation5 + $0x1518] sm:$0xff]  ;;  %v12461_v62 = vpack.c.bf16 %v594_v54, %v338_v53  ;;  %v985_v53 = vld [vmem:[#allocation5 + $0x1948] sm:$0xff] }
 0x176   :  { %12438 = vmatpush1.bf16.xpose.msra.mxu0 %v12437_v35  ;;  %11936 = vmatprep.subr.bf16.mxu1 %v11935_v36  ;;  %v1950_v5 = vcombine.high %v1948_v63, %v1948_v63  ;;  %v1423_v35 = vcombine.high %v1421_v27, %v1421_v27  ;;  %v1107_v59 = vld [vmem:[#allocation5 + $0x1d18] sm:$0xff] }
 0x177   :  { %12440 = vmatprep.subr.bf16.mxu0 %v12439_v37  ;;  %3729 = vmatprep.mubr.f32.mxu1 %v1406_v38  ;;  %v722_v37 = vld [vmem:[#allocation5 + $0x1110] sm:$0xff] }
 0x178   :  { %8139 = vmatprep.mubr.f32.mxu0 %v1949_v39  ;;  %v978_v38 = vld [vmem:[#allocation5 + $0x1910] sm:$0xff]  ;;  %v848_v39 = vld [vmem:[#allocation5 + $0x1500] sm:$0xff] }
 0x179   :  { %v11953_v45 = vpack.c.bf16 %v978_v38, %v722_v37  ;;  %v12457_v46 = vpack.c.bf16 %v1104_v40, %v848_v39  ;;  %v1108_v37 = vld [vmem:[#allocation5 + $0x1d20] sm:$0xff]  ;;  %v217_v38 = vld [vmem:[#allocation5 + $0x148] sm:$0xff]  ;;  %v343_v40 = vld [vmem:[#allocation5 + $0x538] sm:$0xff] }
 0x17a   :  { %v473_v39 = vld [vmem:[#allocation5 + $0x948] sm:$0xff] }
 0x17d   :  { %11938 = vmatpush1.bf16.xpose.msra.mxu1 %v11937_v48  ;;  %v12459_v48 = vpack.c.bf16 %v595_v44, %v339_v43  ;;  %v11971_v44 = vpack.c.bf16 %v473_v39, %v217_v38  ;;  %v603_v38 = vld [vmem:[#allocation5 + $0xd58] sm:$0xff] }
 0x17e   :  { %12442 = vmatpush1.bf16.xpose.msra.mxu0 %v12441_v49  ;;  %11940 = vmatprep.subr.bf16.mxu1 %v11939_v50  ;;  %v121_v49 = vld [vmem:[#allocation2 + $0x48] sm:$0xff]  ;;  %v1951_v50 = vcombine.high %v152_v20, %v152_v20 }
 0x17f   :  { %12444 = vmatprep.subr.bf16.mxu0 %v12443_v51  ;;  %v212_v51 = vld [vmem:[#allocation5 + $0x120] sm:$0xff]  ;;  %v1431_v57 = vrot.slane %v121_v49, %v13505_v17 }
 0x180   :  { %v11957_v61 = vpack.c.bf16 %v468_v52, %v212_v51  ;;  %v598_v51 = vld [vmem:[#allocation5 + $0xd30] sm:$0xff]  ;;  %v729_v52 = vld [vmem:[#allocation5 + $0x1148] sm:$0xff] }
 0x184   :  { %3730 = vmatmul.mubr.f32.vlgmr.msra.gmra.mrb[0].mxu1 %v1404_v30  ;;  %v1958_v30 = vrot.slane %v152_v20, %v13505_v17  ;;  %v340_v20 = vld [vmem:[#allocation5 + $0x520] sm:$0xff] }
 0x185   :  { %11942 = vmatpush1.bf16.xpose.msra.mxu1 %v11941_v0  ;;  %8140 = vmatmul.mubr.f32.vlgmr.msra.gmra.mrb[0].mxu0 %v1941_v33  ;;  %v11951_v33 = vpack.c.bf16 %v979_v26, %v723_v25  ;;  %v12463_v0 = vpack.c.bf16 %v1107_v59, %v851_v58  ;;  %v853_v25 = vld [vmem:[#allocation5 + $0x1528] sm:$0xff]  ;;  %v12469_v29 = vpack.c.bf16 %v596_v21, %v340_v20  ;;  %v987_v20 = vld [vmem:[#allocation5 + $0x1958] sm:$0xff] }
 0x186   :  { %12446 = vmatpush1.bf16.xpose.msra.mxu0 %v12445_v1  ;;  %11944 = vmatprep.subr.bf16.mxu1 %v11943_v2  ;;  %v1966_v36 = vcombine.high %v1958_v30, %v1958_v30  ;;  %v1439_v1 = vcombine.high %v1431_v57, %v1431_v57  ;;  %v1109_v26 = vld [vmem:[#allocation5 + $0x1d28] sm:$0xff] }
 0x187   :  { %12448 = vmatprep.subr.bf16.mxu0 %v12447_v3  ;;  %3799 = vmatprep.mubr.f32.mxu1 %v1422_v4  ;;  %v724_v3 = vld [vmem:[#allocation5 + $0x1120] sm:$0xff] }
 0x188   :  { %8209 = vmatprep.mubr.f32.mxu0 %v1950_v5  ;;  %v980_v4 = vld [vmem:[#allocation5 + $0x1920] sm:$0xff]  ;;  %v850_v5 = vld [vmem:[#allocation5 + $0x1510] sm:$0xff] }
 0x189   :  { %v11961_v11 = vpack.c.bf16 %v980_v4, %v724_v3  ;;  %v12465_v12 = vpack.c.bf16 %v1106_v6, %v850_v5  ;;  %v1110_v3 = vld [vmem:[#allocation5 + $0x1d30] sm:$0xff]  ;;  %v219_v4 = vld [vmem:[#allocation5 + $0x158] sm:$0xff]  ;;  %v345_v6 = vld [vmem:[#allocation5 + $0x548] sm:$0xff] }
 0x18a   :  { %v475_v5 = vld [vmem:[#allocation5 + $0x958] sm:$0xff] }
 0x18d   :  { %11946 = vmatpush1.bf16.xpose.msra.mxu1 %v11945_v14  ;;  %v12467_v14 = vpack.c.bf16 %v597_v10, %v341_v9  ;;  %v11979_v10 = vpack.c.bf16 %v475_v5, %v219_v4  ;;  %v605_v4 = vld [vmem:[#allocation5 + $0xd68] sm:$0xff] }
 0x18e   :  { %12450 = vmatpush1.bf16.xpose.msra.mxu0 %v12449_v15  ;;  %11948 = vmatprep.subr.bf16.mxu1 %v11947_v16  ;;  %v1424_v15 = vcombine.high %v121_v49, %v121_v49  ;;  %v153_v16 = vld [vmem:[#allocation2 + $0x148] sm:$0xff]  ;;  %v472_v49 = vld [vmem:[#allocation5 + $0x940] sm:$0xff] }
 0x18f   :  { %12452 = vmatprep.subr.bf16.mxu0 %v12451_v18  ;;  %v214_v18 = vld [vmem:[#allocation5 + $0x130] sm:$0xff] }
 0x190   :  { %v1438_v24 = vrot.slane %v1424_v15, %v13505_v17  ;;  %v11965_v28 = vpack.c.bf16 %v470_v19, %v214_v18  ;;  %v474_v15 = vld [vmem:[#allocation5 + $0x950] sm:$0xff]  ;;  %v600_v18 = vld [vmem:[#allocation5 + $0xd40] sm:$0xff]  ;;  %v731_v19 = vld [vmem:[#allocation5 + $0x1158] sm:$0xff] }
 0x194   :  { %3800 = vmatmul.mubr.f32.vlgmr.msra.gmra.mrb[0].mxu1 %v1414_v60  ;;  %v1965_v60 = vrot.slane %v1951_v50, %v13505_v17  ;;  %v342_v50 = vld [vmem:[#allocation5 + $0x530] sm:$0xff] }
 0x195   :  { %11950 = vmatpush1.bf16.xpose.msra.mxu1 %v11949_v31  ;;  %8210 = vmatmul.mubr.f32.vlgmr.msra.gmra.mrb[0].mxu0 %v1948_v63  ;;  %v11959_v63 = vpack.c.bf16 %v981_v56, %v725_v55  ;;  %v12471_v31 = vpack.c.bf16 %v1109_v26, %v853_v25  ;;  %v855_v55 = vld [vmem:[#allocation5 + $0x1538] sm:$0xff]  ;;  %v12477_v59 = vpack.c.bf16 %v598_v51, %v342_v50  ;;  %v989_v50 = vld [vmem:[#allocation5 + $0x1968] sm:$0xff] }
 0x196   :  { %12454 = vmatpush1.bf16.xpose.msra.mxu0 %v12453_v32  ;;  %11952 = vmatprep.subr.bf16.mxu1 %v11951_v33  ;;  %v1967_v2 = vcombine.high %v1965_v60, %v1965_v60  ;;  %v1440_v32 = vcombine.high %v1438_v24, %v1438_v24  ;;  %v1111_v56 = vld [vmem:[#allocation5 + $0x1d38] sm:$0xff] }
 0x197   :  { %12456 = vmatprep.subr.bf16.mxu0 %v12455_v34  ;;  %3869 = vmatprep.mubr.f32.mxu1 %v1423_v35  ;;  %v726_v34 = vld [vmem:[#allocation5 + $0x1130] sm:$0xff] }
 0x198   :  { %8279 = vmatprep.mubr.f32.mxu0 %v1966_v36  ;;  %v982_v35 = vld [vmem:[#allocation5 + $0x1930] sm:$0xff]  ;;  %v852_v36 = vld [vmem:[#allocation5 + $0x1520] sm:$0xff] }
 0x199   :  { %v11969_v42 = vpack.c.bf16 %v982_v35, %v726_v34  ;;  %v12473_v43 = vpack.c.bf16 %v1108_v37, %v852_v36  ;;  %v1112_v34 = vld [vmem:[#allocation5 + $0x1d40] sm:$0xff]  ;;  %v221_v35 = vld [vmem:[#allocation5 + $0x168] sm:$0xff]  ;;  %v347_v37 = vld [vmem:[#allocation5 + $0x558] sm:$0xff] }
 0x19a   :  { %v477_v36 = vld [vmem:[#allocation5 + $0x968] sm:$0xff] }
 0x19d   :  { %11954 = vmatpush1.bf16.xpose.msra.mxu1 %v11953_v45  ;;  %v12475_v45 = vpack.c.bf16 %v599_v41, %v343_v40  ;;  %v11987_v41 = vpack.c.bf16 %v477_v36, %v221_v35  ;;  %v607_v35 = vld [vmem:[#allocation5 + $0xd78] sm:$0xff] }
 0x19e   :  { %12458 = vmatpush1.bf16.xpose.msra.mxu0 %v12457_v46  ;;  %11956 = vmatprep.subr.bf16.mxu1 %v11955_v47  ;;  %v122_v46 = vld [vmem:[#allocation2 + $0x50] sm:$0xff]  ;;  %v1968_v47 = vcombine.high %v153_v16, %v153_v16 }
 0x19f   :  { %12460 = vmatprep.subr.bf16.mxu0 %v12459_v48  ;;  %v216_v48 = vld [vmem:[#allocation5 + $0x140] sm:$0xff]  ;;  %v1448_v54 = vrot.slane %v122_v46, %v13505_v17 }
 0x1a0   :  { %v11973_v58 = vpack.c.bf16 %v472_v49, %v216_v48  ;;  %v602_v48 = vld [vmem:[#allocation5 + $0xd50] sm:$0xff]  ;;  %v733_v49 = vld [vmem:[#allocation5 + $0x1168] sm:$0xff] }
 0x1a4   :  { %3870 = vmatmul.mubr.f32.vlgmr.msra.gmra.mrb[0].mxu1 %v1421_v27  ;;  %v1975_v27 = vrot.slane %v153_v16, %v13505_v17  ;;  %v344_v16 = vld [vmem:[#allocation5 + $0x540] sm:$0xff] }
 0x1a5   :  { %11958 = vmatpush1.bf16.xpose.msra.mxu1 %v11957_v61  ;;  %8280 = vmatmul.mubr.f32.vlgmr.msra.gmra.mrb[0].mxu0 %v1958_v30  ;;  %v11967_v30 = vpack.c.bf16 %v983_v23, %v727_v22  ;;  %v12479_v61 = vpack.c.bf16 %v1111_v56, %v855_v55  ;;  %v857_v22 = vld [vmem:[#allocation5 + $0x1548] sm:$0xff]  ;;  %v12485_v26 = vpack.c.bf16 %v600_v18, %v344_v16  ;;  %v991_v16 = vld [vmem:[#allocation5 + $0x1978] sm:$0xff] }
 0x1a6   :  { %12462 = vmatpush1.bf16.xpose.msra.mxu0 %v12461_v62  ;;  %11960 = vmatprep.subr.bf16.mxu1 %v11959_v63  ;;  %v1983_v33 = vcombine.high %v1975_v27, %v1975_v27  ;;  %v1456_v62 = vcombine.high %v1448_v54, %v1448_v54  ;;  %v1113_v23 = vld [vmem:[#allocation5 + $0x1d48] sm:$0xff] }
 0x1a7   :  { %12464 = vmatprep.subr.bf16.mxu0 %v12463_v0  ;;  %3939 = vmatprep.mubr.f32.mxu1 %v1439_v1  ;;  %v728_v0 = vld [vmem:[#allocation5 + $0x1140] sm:$0xff] }
 0x1a8   :  { %8349 = vmatprep.mubr.f32.mxu0 %v1967_v2  ;;  %v984_v1 = vld [vmem:[#allocation5 + $0x1940] sm:$0xff]  ;;  %v854_v2 = vld [vmem:[#allocation5 + $0x1530] sm:$0xff] }
 0x1a9   :  { %v11977_v8 = vpack.c.bf16 %v984_v1, %v728_v0  ;;  %v12481_v9 = vpack.c.bf16 %v1110_v3, %v854_v2  ;;  %v1114_v0 = vld [vmem:[#allocation5 + $0x1d50] sm:$0xff]  ;;  %v223_v1 = vld [vmem:[#allocation5 + $0x178] sm:$0xff]  ;;  %v349_v3 = vld [vmem:[#allocation5 + $0x568] sm:$0xff] }
 0x1aa   :  { %v479_v2 = vld [vmem:[#allocation5 + $0x978] sm:$0xff] }
 0x1ad   :  { %11962 = vmatpush1.bf16.xpose.msra.mxu1 %v11961_v11  ;;  %v12483_v11 = vpack.c.bf16 %v601_v7, %v345_v6  ;;  %v11995_v7 = vpack.c.bf16 %v479_v2, %v223_v1  ;;  %v609_v1 = vld [vmem:[#allocation5 + $0xd88] sm:$0xff] }
 0x1ae   :  { %12466 = vmatpush1.bf16.xpose.msra.mxu0 %v12465_v12  ;;  %11964 = vmatprep.subr.bf16.mxu1 %v11963_v13  ;;  %v1441_v12 = vcombine.high %v122_v46, %v122_v46  ;;  %v154_v13 = vld [vmem:[#allocation2 + $0x150] sm:$0xff]  ;;  %v476_v46 = vld [vmem:[#allocation5 + $0x960] sm:$0xff] }
 0x1af   :  { %12468 = vmatprep.subr.bf16.mxu0 %v12467_v14  ;;  %v218_v14 = vld [vmem:[#allocation5 + $0x150] sm:$0xff] }
 0x1b0   :  { %v1455_v21 = vrot.slane %v1441_v12, %v13505_v17  ;;  %v11981_v25 = vpack.c.bf16 %v474_v15, %v218_v14  ;;  %v478_v12 = vld [vmem:[#allocation5 + $0x970] sm:$0xff]  ;;  %v604_v14 = vld [vmem:[#allocation5 + $0xd60] sm:$0xff]  ;;  %v735_v15 = vld [vmem:[#allocation5 + $0x1178] sm:$0xff] }
 0x1b4   :  { %3940 = vmatmul.mubr.f32.vlgmr.msra.gmra.mrb[0].mxu1 %v1431_v57  ;;  %v1982_v57 = vrot.slane %v1968_v47, %v13505_v17  ;;  %v346_v47 = vld [vmem:[#allocation5 + $0x550] sm:$0xff] }
 0x1b5   :  { %11966 = vmatpush1.bf16.xpose.msra.mxu1 %v11965_v28  ;;  %8350 = vmatmul.mubr.f32.vlgmr.msra.gmra.mrb[0].mxu0 %v1965_v60  ;;  %v11975_v60 = vpack.c.bf16 %v985_v53, %v729_v52  ;;  %v12487_v28 = vpack.c.bf16 %v1113_v23, %v857_v22  ;;  %v859_v52 = vld [vmem:[#allocation5 + $0x1558] sm:$0xff]  ;;  %v12493_v56 = vpack.c.bf16 %v602_v48, %v346_v47  ;;  %v993_v47 = vld [vmem:[#allocation5 + $0x1988] sm:$0xff] }
 0x1b6   :  { %12470 = vmatpush1.bf16.xpose.msra.mxu0 %v12469_v29  ;;  %11968 = vmatprep.subr.bf16.mxu1 %v11967_v30  ;;  %v1984_v63 = vcombine.high %v1982_v57, %v1982_v57  ;;  %v1457_v29 = vcombine.high %v1455_v21, %v1455_v21  ;;  %v1115_v53 = vld [vmem:[#allocation5 + $0x1d58] sm:$0xff] }
 0x1b7   :  { %12472 = vmatprep.subr.bf16.mxu0 %v12471_v31  ;;  %4009 = vmatprep.mubr.f32.mxu1 %v1440_v32  ;;  %v730_v31 = vld [vmem:[#allocation5 + $0x1150] sm:$0xff] }
 0x1b8   :  { %8419 = vmatprep.mubr.f32.mxu0 %v1983_v33  ;;  %v986_v32 = vld [vmem:[#allocation5 + $0x1950] sm:$0xff]  ;;  %v856_v33 = vld [vmem:[#allocation5 + $0x1540] sm:$0xff] }
 0x1b9   :  { %v11985_v39 = vpack.c.bf16 %v986_v32, %v730_v31  ;;  %v12489_v40 = vpack.c.bf16 %v1112_v34, %v856_v33  ;;  %v1116_v31 = vld [vmem:[#allocation5 + $0x1d60] sm:$0xff]  ;;  %v225_v32 = vld [vmem:[#allocation5 + $0x188] sm:$0xff]  ;;  %v351_v34 = vld [vmem:[#allocation5 + $0x578] sm:$0xff] }
 0x1ba   :  { %v481_v33 = vld [vmem:[#allocation5 + $0x988] sm:$0xff] }
 0x1bd   :  { %11970 = vmatpush1.bf16.xpose.msra.mxu1 %v11969_v42  ;;  %v12491_v42 = vpack.c.bf16 %v603_v38, %v347_v37  ;;  %v12003_v38 = vpack.c.bf16 %v481_v33, %v225_v32  ;;  %v611_v32 = vld [vmem:[#allocation5 + $0xd98] sm:$0xff] }
 0x1be   :  { %12474 = vmatpush1.bf16.xpose.msra.mxu0 %v12473_v43  ;;  %11972 = vmatprep.subr.bf16.mxu1 %v11971_v44  ;;  %v123_v43 = vld [vmem:[#allocation2 + $0x58] sm:$0xff]  ;;  %v1985_v44 = vcombine.high %v154_v13, %v154_v13 }
 0x1bf   :  { %12476 = vmatprep.subr.bf16.mxu0 %v12475_v45  ;;  %v220_v45 = vld [vmem:[#allocation5 + $0x160] sm:$0xff]  ;;  %v1465_v51 = vrot.slane %v123_v43, %v13505_v17 }
 0x1c0   :  { %v11989_v55 = vpack.c.bf16 %v476_v46, %v220_v45  ;;  %v606_v45 = vld [vmem:[#allocation5 + $0xd70] sm:$0xff]  ;;  %v737_v46 = vld [vmem:[#allocation5 + $0x1188] sm:$0xff] }
 0x1c4   :  { %4010 = vmatmul.mubr.f32.vlgmr.msra.gmra.mrb[0].mxu1 %v1438_v24  ;;  %v1992_v24 = vrot.slane %v154_v13, %v13505_v17  ;;  %v348_v13 = vld [vmem:[#allocation5 + $0x560] sm:$0xff] }
 0x1c5   :  { %11974 = vmatpush1.bf16.xpose.msra.mxu1 %v11973_v58  ;;  %8420 = vmatmul.mubr.f32.vlgmr.msra.gmra.mrb[0].mxu0 %v1975_v27  ;;  %v11983_v27 = vpack.c.bf16 %v987_v20, %v731_v19  ;;  %v12495_v58 = vpack.c.bf16 %v1115_v53, %v859_v52  ;;  %v861_v19 = vld [vmem:[#allocation5 + $0x1568] sm:$0xff]  ;;  %v12501_v23 = vpack.c.bf16 %v604_v14, %v348_v13  ;;  %v995_v13 = vld [vmem:[#allocation5 + $0x1998] sm:$0xff] }
 0x1c6   :  { %12478 = vmatpush1.bf16.xpose.msra.mxu0 %v12477_v59  ;;  %11976 = vmatprep.subr.bf16.mxu1 %v11975_v60  ;;  %v2000_v30 = vcombine.high %v1992_v24, %v1992_v24  ;;  %v1473_v59 = vcombine.high %v1465_v51, %v1465_v51  ;;  %v1117_v20 = vld [vmem:[#allocation5 + $0x1d68] sm:$0xff] }
 0x1c7   :  { %12480 = vmatprep.subr.bf16.mxu0 %v12479_v61  ;;  %4079 = vmatprep.mubr.f32.mxu1 %v1456_v62  ;;  %v732_v61 = vld [vmem:[#allocation5 + $0x1160] sm:$0xff] }
 0x1c8   :  { %8489 = vmatprep.mubr.f32.mxu0 %v1984_v63  ;;  %v988_v62 = vld [vmem:[#allocation5 + $0x1960] sm:$0xff]  ;;  %v858_v63 = vld [vmem:[#allocation5 + $0x1550] sm:$0xff] }
 0x1c9   :  { %v11993_v5 = vpack.c.bf16 %v988_v62, %v732_v61  ;;  %v12497_v6 = vpack.c.bf16 %v1114_v0, %v858_v63  ;;  %v1118_v61 = vld [vmem:[#allocation5 + $0x1d70] sm:$0xff]  ;;  %v227_v62 = vld [vmem:[#allocation5 + $0x198] sm:$0xff]  ;;  %v353_v0 = vld [vmem:[#allocation5 + $0x588] sm:$0xff] }
 0x1ca   :  { %v483_v63 = vld [vmem:[#allocation5 + $0x998] sm:$0xff] }
 0x1cd   :  { %11978 = vmatpush1.bf16.xpose.msra.mxu1 %v11977_v8  ;;  %v12499_v8 = vpack.c.bf16 %v605_v4, %v349_v3  ;;  %v12011_v4 = vpack.c.bf16 %v483_v63, %v227_v62  ;;  %v613_v62 = vld [vmem:[#allocation5 + $0xda8] sm:$0xff] }
 0x1ce   :  { %12482 = vmatpush1.bf16.xpose.msra.mxu0 %v12481_v9  ;;  %11980 = vmatprep.subr.bf16.mxu1 %v11979_v10  ;;  %v1458_v9 = vcombine.high %v123_v43, %v123_v43  ;;  %v155_v10 = vld [vmem:[#allocation2 + $0x158] sm:$0xff]  ;;  %v480_v43 = vld [vmem:[#allocation5 + $0x980] sm:$0xff] }
 0x1cf   :  { %12484 = vmatprep.subr.bf16.mxu0 %v12483_v11  ;;  %v222_v11 = vld [vmem:[#allocation5 + $0x170] sm:$0xff] }
 0x1d0   :  { %v1472_v18 = vrot.slane %v1458_v9, %v13505_v17  ;;  %v11997_v22 = vpack.c.bf16 %v478_v12, %v222_v11  ;;  %v482_v9 = vld [vmem:[#allocation5 + $0x990] sm:$0xff]  ;;  %v608_v11 = vld [vmem:[#allocation5 + $0xd80] sm:$0xff]  ;;  %v739_v12 = vld [vmem:[#allocation5 + $0x1198] sm:$0xff] }
 0x1d4   :  { %4080 = vmatmul.mubr.f32.vlgmr.msra.gmra.mrb[0].mxu1 %v1448_v54  ;;  %v1999_v54 = vrot.slane %v1985_v44, %v13505_v17  ;;  %v350_v44 = vld [vmem:[#allocation5 + $0x570] sm:$0xff] }
 0x1d5   :  { %11982 = vmatpush1.bf16.xpose.msra.mxu1 %v11981_v25  ;;  %8490 = vmatmul.mubr.f32.vlgmr.msra.gmra.mrb[0].mxu0 %v1982_v57  ;;  %v11991_v57 = vpack.c.bf16 %v989_v50, %v733_v49  ;;  %v12503_v25 = vpack.c.bf16 %v1117_v20, %v861_v19  ;;  %v863_v49 = vld [vmem:[#allocation5 + $0x1578] sm:$0xff]  ;;  %v12509_v53 = vpack.c.bf16 %v606_v45, %v350_v44  ;;  %v997_v44 = vld [vmem:[#allocation5 + $0x19a8] sm:$0xff] }
 0x1d6   :  { %12486 = vmatpush1.bf16.xpose.msra.mxu0 %v12485_v26  ;;  %11984 = vmatprep.subr.bf16.mxu1 %v11983_v27  ;;  %v2001_v60 = vcombine.high %v1999_v54, %v1999_v54  ;;  %v1474_v26 = vcombine.high %v1472_v18, %v1472_v18  ;;  %v1119_v50 = vld [vmem:[#allocation5 + $0x1d78] sm:$0xff] }
 0x1d7   :  { %12488 = vmatprep.subr.bf16.mxu0 %v12487_v28  ;;  %4149 = vmatprep.mubr.f32.mxu1 %v1457_v29  ;;  %v734_v28 = vld [vmem:[#allocation5 + $0x1170] sm:$0xff] }
 0x1d8   :  { %8559 = vmatprep.mubr.f32.mxu0 %v2000_v30  ;;  %v990_v29 = vld [vmem:[#allocation5 + $0x1970] sm:$0xff]  ;;  %v860_v30 = vld [vmem:[#allocation5 + $0x1560] sm:$0xff] }
 0x1d9   :  { %v12001_v36 = vpack.c.bf16 %v990_v29, %v734_v28  ;;  %v12505_v37 = vpack.c.bf16 %v1116_v31, %v860_v30  ;;  %v1120_v28 = vld [vmem:[#allocation5 + $0x1d80] sm:$0xff]  ;;  %v229_v29 = vld [vmem:[#allocation5 + $0x1a8] sm:$0xff]  ;;  %v355_v31 = vld [vmem:[#allocation5 + $0x598] sm:$0xff] }
 0x1da   :  { %v485_v30 = vld [vmem:[#allocation5 + $0x9a8] sm:$0xff] }
 0x1dd   :  { %11986 = vmatpush1.bf16.xpose.msra.mxu1 %v11985_v39  ;;  %v12507_v39 = vpack.c.bf16 %v607_v35, %v351_v34  ;;  %v12019_v35 = vpack.c.bf16 %v485_v30, %v229_v29  ;;  %v615_v29 = vld [vmem:[#allocation5 + $0xdb8] sm:$0xff] }
 0x1de   :  { %12490 = vmatpush1.bf16.xpose.msra.mxu0 %v12489_v40  ;;  %11988 = vmatprep.subr.bf16.mxu1 %v11987_v41  ;;  %v124_v40 = vld [vmem:[#allocation2 + $0x60] sm:$0xff]  ;;  %v2002_v41 = vcombine.high %v155_v10, %v155_v10 }
 0x1df   :  { %12492 = vmatprep.subr.bf16.mxu0 %v12491_v42  ;;  %v224_v42 = vld [vmem:[#allocation5 + $0x180] sm:$0xff]  ;;  %v1482_v48 = vrot.slane %v124_v40, %v13505_v17 }
 0x1e0   :  { %v12005_v52 = vpack.c.bf16 %v480_v43, %v224_v42  ;;  %v610_v42 = vld [vmem:[#allocation5 + $0xd90] sm:$0xff]  ;;  %v741_v43 = vld [vmem:[#allocation5 + $0x11a8] sm:$0xff] }
 0x1e4   :  { %4150 = vmatmul.mubr.f32.vlgmr.msra.gmra.mrb[0].mxu1 %v1455_v21  ;;  %v2009_v21 = vrot.slane %v155_v10, %v13505_v17  ;;  %v352_v10 = vld [vmem:[#allocation5 + $0x580] sm:$0xff] }
 0x1e5   :  { %11990 = vmatpush1.bf16.xpose.msra.mxu1 %v11989_v55  ;;  %8560 = vmatmul.mubr.f32.vlgmr.msra.gmra.mrb[0].mxu0 %v1992_v24  ;;  %v11999_v24 = vpack.c.bf16 %v991_v16, %v735_v15  ;;  %v12511_v55 = vpack.c.bf16 %v1119_v50, %v863_v49  ;;  %v865_v15 = vld [vmem:[#allocation5 + $0x1588] sm:$0xff]  ;;  %v12517_v20 = vpack.c.bf16 %v608_v11, %v352_v10  ;;  %v999_v10 = vld [vmem:[#allocation5 + $0x19b8] sm:$0xff] }
 0x1e6   :  { %12494 = vmatpush1.bf16.xpose.msra.mxu0 %v12493_v56  ;;  %11992 = vmatprep.subr.bf16.mxu1 %v11991_v57  ;;  %v2017_v27 = vcombine.high %v2009_v21, %v2009_v21  ;;  %v1490_v56 = vcombine.high %v1482_v48, %v1482_v48  ;;  %v1121_v16 = vld [vmem:[#allocation5 + $0x1d88] sm:$0xff] }
 0x1e7   :  { %12496 = vmatprep.subr.bf16.mxu0 %v12495_v58  ;;  %4219 = vmatprep.mubr.f32.mxu1 %v1473_v59  ;;  %v736_v58 = vld [vmem:[#allocation5 + $0x1180] sm:$0xff] }
 0x1e8   :  { %8629 = vmatprep.mubr.f32.mxu0 %v2001_v60  ;;  %v992_v59 = vld [vmem:[#allocation5 + $0x1980] sm:$0xff]  ;;  %v862_v60 = vld [vmem:[#allocation5 + $0x1570] sm:$0xff] }
 0x1e9   :  { %v12009_v2 = vpack.c.bf16 %v992_v59, %v736_v58  ;;  %v12513_v3 = vpack.c.bf16 %v1118_v61, %v862_v60  ;;  %v1122_v58 = vld [vmem:[#allocation5 + $0x1d90] sm:$0xff]  ;;  %v231_v59 = vld [vmem:[#allocation5 + $0x1b8] sm:$0xff]  ;;  %v357_v61 = vld [vmem:[#allocation5 + $0x5a8] sm:$0xff] }
 0x1ea   :  { %v487_v60 = vld [vmem:[#allocation5 + $0x9b8] sm:$0xff] }
 0x1ed   :  { %11994 = vmatpush1.bf16.xpose.msra.mxu1 %v11993_v5  ;;  %v12515_v5 = vpack.c.bf16 %v609_v1, %v353_v0  ;;  %v12027_v1 = vpack.c.bf16 %v487_v60, %v231_v59  ;;  %v617_v59 = vld [vmem:[#allocation5 + $0xdc8] sm:$0xff] }
 0x1ee   :  { %12498 = vmatpush1.bf16.xpose.msra.mxu0 %v12497_v6  ;;  %11996 = vmatprep.subr.bf16.mxu1 %v11995_v7  ;;  %v1475_v6 = vcombine.high %v124_v40, %v124_v40  ;;  %v156_v7 = vld [vmem:[#allocation2 + $0x160] sm:$0xff] }
 0x1ef   :  { %12500 = vmatprep.subr.bf16.mxu0 %v12499_v8  ;;  %v226_v8 = vld [vmem:[#allocation5 + $0x190] sm:$0xff]  ;;  %v484_v40 = vld [vmem:[#allocation5 + $0x9a0] sm:$0xff] }
 0x1f0   :  { %v1489_v14 = vrot.slane %v1475_v6, %v13505_v17  ;;  %v12013_v19 = vpack.c.bf16 %v482_v9, %v226_v8  ;;  %v486_v6 = vld [vmem:[#allocation5 + $0x9b0] sm:$0xff]  ;;  %v612_v8 = vld [vmem:[#allocation5 + $0xda0] sm:$0xff]  ;;  %v743_v9 = vld [vmem:[#allocation5 + $0x11b8] sm:$0xff] }
 0x1f4   :  { %4220 = vmatmul.mubr.f32.vlgmr.msra.gmra.mrb[0].mxu1 %v1465_v51  ;;  %v2016_v51 = vrot.slane %v2002_v41, %v13505_v17  ;;  %v354_v41 = vld [vmem:[#allocation5 + $0x590] sm:$0xff] }
 0x1f5   :  { %11998 = vmatpush1.bf16.xpose.msra.mxu1 %v11997_v22  ;;  %8630 = vmatmul.mubr.f32.vlgmr.msra.gmra.mrb[0].mxu0 %v1999_v54  ;;  %v12007_v54 = vpack.c.bf16 %v993_v47, %v737_v46  ;;  %v12519_v22 = vpack.c.bf16 %v1121_v16, %v865_v15  ;;  %v867_v46 = vld [vmem:[#allocation5 + $0x1598] sm:$0xff]  ;;  %v12525_v50 = vpack.c.bf16 %v610_v42, %v354_v41  ;;  %v1001_v41 = vld [vmem:[#allocation5 + $0x19c8] sm:$0xff] }
 0x1f6   :  { %12502 = vmatpush1.bf16.xpose.msra.mxu0 %v12501_v23  ;;  %12000 = vmatprep.subr.bf16.mxu1 %v11999_v24  ;;  %v2018_v57 = vcombine.high %v2016_v51, %v2016_v51  ;;  %v1491_v23 = vcombine.high %v1489_v14, %v1489_v14  ;;  %v1123_v47 = vld [vmem:[#allocation5 + $0x1d98] sm:$0xff] }
 0x1f7   :  { %12504 = vmatprep.subr.bf16.mxu0 %v12503_v25  ;;  %4289 = vmatprep.mubr.f32.mxu1 %v1474_v26  ;;  %v738_v25 = vld [vmem:[#allocation5 + $0x1190] sm:$0xff] }
 0x1f8   :  { %8699 = vmatprep.mubr.f32.mxu0 %v2017_v27  ;;  %v994_v26 = vld [vmem:[#allocation5 + $0x1990] sm:$0xff]  ;;  %v864_v27 = vld [vmem:[#allocation5 + $0x1580] sm:$0xff] }
 0x1f9   :  { %v12017_v33 = vpack.c.bf16 %v994_v26, %v738_v25  ;;  %v12521_v34 = vpack.c.bf16 %v1120_v28, %v864_v27  ;;  %v1124_v25 = vld [vmem:[#allocation5 + $0x1da0] sm:$0xff]  ;;  %v233_v26 = vld [vmem:[#allocation5 + $0x1c8] sm:$0xff]  ;;  %v359_v28 = vld [vmem:[#allocation5 + $0x5b8] sm:$0xff] }
 0x1fa   :  { %v489_v27 = vld [vmem:[#allocation5 + $0x9c8] sm:$0xff] }
 0x1fd   :  { %12002 = vmatpush1.bf16.xpose.msra.mxu1 %v12001_v36  ;;  %v12523_v36 = vpack.c.bf16 %v611_v32, %v355_v31  ;;  %v12035_v32 = vpack.c.bf16 %v489_v27, %v233_v26  ;;  %v619_v26 = vld [vmem:[#allocation5 + $0xdd8] sm:$0xff] }
 0x1fe   :  { %12506 = vmatpush1.bf16.xpose.msra.mxu0 %v12505_v37  ;;  %12004 = vmatprep.subr.bf16.mxu1 %v12003_v38  ;;  %v125_v37 = vld [vmem:[#allocation2 + $0x68] sm:$0xff]  ;;  %v2019_v38 = vcombine.high %v156_v7, %v156_v7 }
 0x1ff   :  { %12508 = vmatprep.subr.bf16.mxu0 %v12507_v39  ;;  %v228_v39 = vld [vmem:[#allocation5 + $0x1a0] sm:$0xff]  ;;  %v1499_v45 = vrot.slane %v125_v37, %v13505_v17 }
 0x200   :  { %v12021_v49 = vpack.c.bf16 %v484_v40, %v228_v39  ;;  %v614_v39 = vld [vmem:[#allocation5 + $0xdb0] sm:$0xff]  ;;  %v745_v40 = vld [vmem:[#allocation5 + $0x11c8] sm:$0xff] }
 0x204   :  { %4290 = vmatmul.mubr.f32.vlgmr.msra.gmra.mrb[0].mxu1 %v1472_v18  ;;  %v2026_v18 = vrot.slane %v156_v7, %v13505_v17  ;;  %v356_v7 = vld [vmem:[#allocation5 + $0x5a0] sm:$0xff] }
 0x205   :  { %12006 = vmatpush1.bf16.xpose.msra.mxu1 %v12005_v52  ;;  %8700 = vmatmul.mubr.f32.vlgmr.msra.gmra.mrb[0].mxu0 %v2009_v21  ;;  %v12015_v21 = vpack.c.bf16 %v995_v13, %v739_v12  ;;  %v12527_v52 = vpack.c.bf16 %v1123_v47, %v867_v46  ;;  %v869_v12 = vld [vmem:[#allocation5 + $0x15a8] sm:$0xff]  ;;  %v12533_v16 = vpack.c.bf16 %v612_v8, %v356_v7  ;;  %v1003_v7 = vld [vmem:[#allocation5 + $0x19d8] sm:$0xff] }
 0x206   :  { %12510 = vmatpush1.bf16.xpose.msra.mxu0 %v12509_v53  ;;  %12008 = vmatprep.subr.bf16.mxu1 %v12007_v54  ;;  %v2034_v24 = vcombine.high %v2026_v18, %v2026_v18  ;;  %v1507_v53 = vcombine.high %v1499_v45, %v1499_v45  ;;  %v1125_v13 = vld [vmem:[#allocation5 + $0x1da8] sm:$0xff] }
 0x207   :  { %12512 = vmatprep.subr.bf16.mxu0 %v12511_v55  ;;  %4359 = vmatprep.mubr.f32.mxu1 %v1490_v56  ;;  %v740_v55 = vld [vmem:[#allocation5 + $0x11a0] sm:$0xff] }
 0x208   :  { %8769 = vmatprep.mubr.f32.mxu0 %v2018_v57  ;;  %v996_v56 = vld [vmem:[#allocation5 + $0x19a0] sm:$0xff]  ;;  %v866_v57 = vld [vmem:[#allocation5 + $0x1590] sm:$0xff] }
 0x209   :  { %v12025_v63 = vpack.c.bf16 %v996_v56, %v740_v55  ;;  %v12529_v0 = vpack.c.bf16 %v1122_v58, %v866_v57  ;;  %v1126_v55 = vld [vmem:[#allocation5 + $0x1db0] sm:$0xff]  ;;  %v235_v56 = vld [vmem:[#allocation5 + $0x1d8] sm:$0xff]  ;;  %v361_v58 = vld [vmem:[#allocation5 + $0x5c8] sm:$0xff] }
 0x20a   :  { %v491_v57 = vld [vmem:[#allocation5 + $0x9d8] sm:$0xff] }
 0x20d   :  { %12010 = vmatpush1.bf16.xpose.msra.mxu1 %v12009_v2  ;;  %v12531_v2 = vpack.c.bf16 %v613_v62, %v357_v61  ;;  %v12043_v62 = vpack.c.bf16 %v491_v57, %v235_v56  ;;  %v621_v56 = vld [vmem:[#allocation5 + $0xde8] sm:$0xff] }
 0x20e   :  { %12514 = vmatpush1.bf16.xpose.msra.mxu0 %v12513_v3  ;;  %12012 = vmatprep.subr.bf16.mxu1 %v12011_v4  ;;  %v1492_v3 = vcombine.high %v125_v37, %v125_v37  ;;  %v157_v4 = vld [vmem:[#allocation2 + $0x168] sm:$0xff]  ;;  %v488_v37 = vld [vmem:[#allocation5 + $0x9c0] sm:$0xff] }
 0x20f   :  { %12516 = vmatprep.subr.bf16.mxu0 %v12515_v5  ;;  %v230_v5 = vld [vmem:[#allocation5 + $0x1b0] sm:$0xff] }
 0x210   :  { %v1506_v11 = vrot.slane %v1492_v3, %v13505_v17  ;;  %v12029_v15 = vpack.c.bf16 %v486_v6, %v230_v5  ;;  %v490_v3 = vld [vmem:[#allocation5 + $0x9d0] sm:$0xff]  ;;  %v616_v5 = vld [vmem:[#allocation5 + $0xdc0] sm:$0xff]  ;;  %v747_v6 = vld [vmem:[#allocation5 + $0x11d8] sm:$0xff] }
 0x214   :  { %4360 = vmatmul.mubr.f32.vlgmr.msra.gmra.mrb[0].mxu1 %v1482_v48  ;;  %v2033_v48 = vrot.slane %v2019_v38, %v13505_v17  ;;  %v358_v38 = vld [vmem:[#allocation5 + $0x5b0] sm:$0xff] }
 0x215   :  { %12014 = vmatpush1.bf16.xpose.msra.mxu1 %v12013_v19  ;;  %8770 = vmatmul.mubr.f32.vlgmr.msra.gmra.mrb[0].mxu0 %v2016_v51  ;;  %v12023_v51 = vpack.c.bf16 %v997_v44, %v741_v43  ;;  %v12535_v19 = vpack.c.bf16 %v1125_v13, %v869_v12  ;;  %v871_v43 = vld [vmem:[#allocation5 + $0x15b8] sm:$0xff]  ;;  %v12541_v47 = vpack.c.bf16 %v614_v39, %v358_v38  ;;  %v1005_v38 = vld [vmem:[#allocation5 + $0x19e8] sm:$0xff] }
 0x216   :  { %12518 = vmatpush1.bf16.xpose.msra.mxu0 %v12517_v20  ;;  %12016 = vmatprep.subr.bf16.mxu1 %v12015_v21  ;;  %v2035_v54 = vcombine.high %v2033_v48, %v2033_v48  ;;  %v1508_v20 = vcombine.high %v1506_v11, %v1506_v11  ;;  %v1127_v44 = vld [vmem:[#allocation5 + $0x1db8] sm:$0xff] }
 0x217   :  { %12520 = vmatprep.subr.bf16.mxu0 %v12519_v22  ;;  %4429 = vmatprep.mubr.f32.mxu1 %v1491_v23  ;;  %v742_v22 = vld [vmem:[#allocation5 + $0x11b0] sm:$0xff] }
 0x218   :  { %8839 = vmatprep.mubr.f32.mxu0 %v2034_v24  ;;  %v998_v23 = vld [vmem:[#allocation5 + $0x19b0] sm:$0xff]  ;;  %v868_v24 = vld [vmem:[#allocation5 + $0x15a0] sm:$0xff] }
 0x219   :  { %v12033_v30 = vpack.c.bf16 %v998_v23, %v742_v22  ;;  %v12537_v31 = vpack.c.bf16 %v1124_v25, %v868_v24  ;;  %v1128_v22 = vld [vmem:[#allocation5 + $0x1dc0] sm:$0xff]  ;;  %v237_v23 = vld [vmem:[#allocation5 + $0x1e8] sm:$0xff]  ;;  %v363_v25 = vld [vmem:[#allocation5 + $0x5d8] sm:$0xff] }
 0x21a   :  { %v493_v24 = vld [vmem:[#allocation5 + $0x9e8] sm:$0xff] }
 0x21d   :  { %12018 = vmatpush1.bf16.xpose.msra.mxu1 %v12017_v33  ;;  %v12539_v33 = vpack.c.bf16 %v615_v29, %v359_v28  ;;  %v12051_v29 = vpack.c.bf16 %v493_v24, %v237_v23  ;;  %v623_v23 = vld [vmem:[#allocation5 + $0xdf8] sm:$0xff] }
 0x21e   :  { %12522 = vmatpush1.bf16.xpose.msra.mxu0 %v12521_v34  ;;  %12020 = vmatprep.subr.bf16.mxu1 %v12019_v35  ;;  %v126_v34 = vld [vmem:[#allocation2 + $0x70] sm:$0xff]  ;;  %v2036_v35 = vcombine.high %v157_v4, %v157_v4 }
 0x21f   :  { %12524 = vmatprep.subr.bf16.mxu0 %v12523_v36  ;;  %v232_v36 = vld [vmem:[#allocation5 + $0x1c0] sm:$0xff]  ;;  %v1516_v42 = vrot.slane %v126_v34, %v13505_v17 }
 0x220   :  { %v12037_v46 = vpack.c.bf16 %v488_v37, %v232_v36  ;;  %v618_v36 = vld [vmem:[#allocation5 + $0xdd0] sm:$0xff]  ;;  %v749_v37 = vld [vmem:[#allocation5 + $0x11e8] sm:$0xff] }
 0x224   :  { %4430 = vmatmul.mubr.f32.vlgmr.msra.gmra.mrb[0].mxu1 %v1489_v14  ;;  %v2043_v14 = vrot.slane %v157_v4, %v13505_v17  ;;  %v360_v4 = vld [vmem:[#allocation5 + $0x5c0] sm:$0xff] }
 0x225   :  { %12022 = vmatpush1.bf16.xpose.msra.mxu1 %v12021_v49  ;;  %8840 = vmatmul.mubr.f32.vlgmr.msra.gmra.mrb[0].mxu0 %v2026_v18  ;;  %v12031_v18 = vpack.c.bf16 %v999_v10, %v743_v9  ;;  %v12543_v49 = vpack.c.bf16 %v1127_v44, %v871_v43  ;;  %v873_v9 = vld [vmem:[#allocation5 + $0x15c8] sm:$0xff]  ;;  %v12549_v13 = vpack.c.bf16 %v616_v5, %v360_v4  ;;  %v1007_v4 = vld [vmem:[#allocation5 + $0x19f8] sm:$0xff] }
 0x226   :  { %12526 = vmatpush1.bf16.xpose.msra.mxu0 %v12525_v50  ;;  %12024 = vmatprep.subr.bf16.mxu1 %v12023_v51  ;;  %v2051_v21 = vcombine.high %v2043_v14, %v2043_v14  ;;  %v1524_v50 = vcombine.high %v1516_v42, %v1516_v42  ;;  %v1129_v10 = vld [vmem:[#allocation5 + $0x1dc8] sm:$0xff] }
 0x227   :  { %12528 = vmatprep.subr.bf16.mxu0 %v12527_v52  ;;  %4499 = vmatprep.mubr.f32.mxu1 %v1507_v53  ;;  %v744_v52 = vld [vmem:[#allocation5 + $0x11c0] sm:$0xff] }
 0x228   :  { %8909 = vmatprep.mubr.f32.mxu0 %v2035_v54  ;;  %v1000_v53 = vld [vmem:[#allocation5 + $0x19c0] sm:$0xff]  ;;  %v870_v54 = vld [vmem:[#allocation5 + $0x15b0] sm:$0xff] }
 0x229   :  { %v12041_v60 = vpack.c.bf16 %v1000_v53, %v744_v52  ;;  %v12545_v61 = vpack.c.bf16 %v1126_v55, %v870_v54  ;;  %v1130_v52 = vld [vmem:[#allocation5 + $0x1dd0] sm:$0xff]  ;;  %v239_v53 = vld [vmem:[#allocation5 + $0x1f8] sm:$0xff]  ;;  %v365_v55 = vld [vmem:[#allocation5 + $0x5e8] sm:$0xff] }
 0x22a   :  { %v495_v54 = vld [vmem:[#allocation5 + $0x9f8] sm:$0xff] }
 0x22d   :  { %12026 = vmatpush1.bf16.xpose.msra.mxu1 %v12025_v63  ;;  %v12547_v63 = vpack.c.bf16 %v617_v59, %v361_v58  ;;  %v12059_v59 = vpack.c.bf16 %v495_v54, %v239_v53  ;;  %v625_v53 = vld [vmem:[#allocation5 + $0xe08] sm:$0xff] }
 0x22e   :  { %12530 = vmatpush1.bf16.xpose.msra.mxu0 %v12529_v0  ;;  %12028 = vmatprep.subr.bf16.mxu1 %v12027_v1  ;;  %v1509_v0 = vcombine.high %v126_v34, %v126_v34  ;;  %v158_v1 = vld [vmem:[#allocation2 + $0x170] sm:$0xff]  ;;  %v492_v34 = vld [vmem:[#allocation5 + $0x9e0] sm:$0xff] }
 0x22f   :  { %12532 = vmatprep.subr.bf16.mxu0 %v12531_v2  ;;  %v234_v2 = vld [vmem:[#allocation5 + $0x1d0] sm:$0xff] }
 0x230   :  { %v1523_v8 = vrot.slane %v1509_v0, %v13505_v17  ;;  %v12045_v12 = vpack.c.bf16 %v490_v3, %v234_v2  ;;  %v494_v0 = vld [vmem:[#allocation5 + $0x9f0] sm:$0xff]  ;;  %v620_v2 = vld [vmem:[#allocation5 + $0xde0] sm:$0xff]  ;;  %v751_v3 = vld [vmem:[#allocation5 + $0x11f8] sm:$0xff] }
 0x234   :  { %4500 = vmatmul.mubr.f32.vlgmr.msra.gmra.mrb[0].mxu1 %v1499_v45  ;;  %v2050_v45 = vrot.slane %v2036_v35, %v13505_v17  ;;  %v362_v35 = vld [vmem:[#allocation5 + $0x5d0] sm:$0xff] }
 0x235   :  { %12030 = vmatpush1.bf16.xpose.msra.mxu1 %v12029_v15  ;;  %8910 = vmatmul.mubr.f32.vlgmr.msra.gmra.mrb[0].mxu0 %v2033_v48  ;;  %v12039_v48 = vpack.c.bf16 %v1001_v41, %v745_v40  ;;  %v12551_v15 = vpack.c.bf16 %v1129_v10, %v873_v9  ;;  %v875_v40 = vld [vmem:[#allocation5 + $0x15d8] sm:$0xff]  ;;  %v12557_v44 = vpack.c.bf16 %v618_v36, %v362_v35  ;;  %v1009_v35 = vld [vmem:[#allocation5 + $0x1a08] sm:$0xff] }
 0x236   :  { %12534 = vmatpush1.bf16.xpose.msra.mxu0 %v12533_v16  ;;  %12032 = vmatprep.subr.bf16.mxu1 %v12031_v18  ;;  %v2052_v51 = vcombine.high %v2050_v45, %v2050_v45  ;;  %v1525_v16 = vcombine.high %v1523_v8, %v1523_v8  ;;  %v1131_v41 = vld [vmem:[#allocation5 + $0x1dd8] sm:$0xff] }
 0x237   :  { %12536 = vmatprep.subr.bf16.mxu0 %v12535_v19  ;;  %4569 = vmatprep.mubr.f32.mxu1 %v1508_v20  ;;  %v746_v19 = vld [vmem:[#allocation5 + $0x11d0] sm:$0xff] }
 0x238   :  { %8979 = vmatprep.mubr.f32.mxu0 %v2051_v21  ;;  %v1002_v20 = vld [vmem:[#allocation5 + $0x19d0] sm:$0xff]  ;;  %v872_v21 = vld [vmem:[#allocation5 + $0x15c0] sm:$0xff] }
 0x239   :  { %v12049_v27 = vpack.c.bf16 %v1002_v20, %v746_v19  ;;  %v12553_v28 = vpack.c.bf16 %v1128_v22, %v872_v21  ;;  %v1132_v19 = vld [vmem:[#allocation5 + $0x1de0] sm:$0xff]  ;;  %v241_v20 = vld [vmem:[#allocation5 + $0x208] sm:$0xff]  ;;  %v367_v22 = vld [vmem:[#allocation5 + $0x5f8] sm:$0xff] }
 0x23a   :  { %v497_v21 = vld [vmem:[#allocation5 + $0xa08] sm:$0xff] }
 0x23d   :  { %12034 = vmatpush1.bf16.xpose.msra.mxu1 %v12033_v30  ;;  %v12555_v30 = vpack.c.bf16 %v619_v26, %v363_v25  ;;  %v12067_v26 = vpack.c.bf16 %v497_v21, %v241_v20  ;;  %v627_v20 = vld [vmem:[#allocation5 + $0xe18] sm:$0xff] }
 0x23e   :  { %12538 = vmatpush1.bf16.xpose.msra.mxu0 %v12537_v31  ;;  %12036 = vmatprep.subr.bf16.mxu1 %v12035_v32  ;;  %v127_v31 = vld [vmem:[#allocation2 + $0x78] sm:$0xff]  ;;  %v2053_v32 = vcombine.high %v158_v1, %v158_v1 }
 0x23f   :  { %12540 = vmatprep.subr.bf16.mxu0 %v12539_v33  ;;  %v236_v33 = vld [vmem:[#allocation5 + $0x1e0] sm:$0xff]  ;;  %v1533_v39 = vrot.slane %v127_v31, %v13505_v17 }
 0x240   :  { %v12053_v43 = vpack.c.bf16 %v492_v34, %v236_v33  ;;  %v622_v33 = vld [vmem:[#allocation5 + $0xdf0] sm:$0xff]  ;;  %v753_v34 = vld [vmem:[#allocation5 + $0x1208] sm:$0xff] }
 0x244   :  { %4570 = vmatmul.mubr.f32.vlgmr.msra.gmra.mrb[0].mxu1 %v1506_v11  ;;  %v2060_v11 = vrot.slane %v158_v1, %v13505_v17  ;;  %v364_v1 = vld [vmem:[#allocation5 + $0x5e0] sm:$0xff] }
 0x245   :  { %12038 = vmatpush1.bf16.xpose.msra.mxu1 %v12037_v46  ;;  %8980 = vmatmul.mubr.f32.vlgmr.msra.gmra.mrb[0].mxu0 %v2043_v14  ;;  %v12047_v14 = vpack.c.bf16 %v1003_v7, %v747_v6  ;;  %v12559_v46 = vpack.c.bf16 %v1131_v41, %v875_v40  ;;  %v877_v6 = vld [vmem:[#allocation5 + $0x15e8] sm:$0xff]  ;;  %v12565_v10 = vpack.c.bf16 %v620_v2, %v364_v1  ;;  %v1011_v1 = vld [vmem:[#allocation5 + $0x1a18] sm:$0xff] }
 0x246   :  { %12542 = vmatpush1.bf16.xpose.msra.mxu0 %v12541_v47  ;;  %12040 = vmatprep.subr.bf16.mxu1 %v12039_v48  ;;  %v2068_v18 = vcombine.high %v2060_v11, %v2060_v11  ;;  %v1541_v47 = vcombine.high %v1533_v39, %v1533_v39  ;;  %v1133_v7 = vld [vmem:[#allocation5 + $0x1de8] sm:$0xff] }
 0x247   :  { %12544 = vmatprep.subr.bf16.mxu0 %v12543_v49  ;;  %4639 = vmatprep.mubr.f32.mxu1 %v1524_v50  ;;  %v748_v49 = vld [vmem:[#allocation5 + $0x11e0] sm:$0xff] }
 0x248   :  { %9049 = vmatprep.mubr.f32.mxu0 %v2052_v51  ;;  %v1004_v50 = vld [vmem:[#allocation5 + $0x19e0] sm:$0xff]  ;;  %v874_v51 = vld [vmem:[#allocation5 + $0x15d0] sm:$0xff] }
 0x249   :  { %v12057_v57 = vpack.c.bf16 %v1004_v50, %v748_v49  ;;  %v12561_v58 = vpack.c.bf16 %v1130_v52, %v874_v51  ;;  %v1134_v49 = vld [vmem:[#allocation5 + $0x1df0] sm:$0xff]  ;;  %v243_v50 = vld [vmem:[#allocation5 + $0x218] sm:$0xff]  ;;  %v369_v52 = vld [vmem:[#allocation5 + $0x608] sm:$0xff] }
 0x24a   :  { %v499_v51 = vld [vmem:[#allocation5 + $0xa18] sm:$0xff] }
 0x24d   :  { %12042 = vmatpush1.bf16.xpose.msra.mxu1 %v12041_v60  ;;  %v12563_v60 = vpack.c.bf16 %v621_v56, %v365_v55  ;;  %v12075_v56 = vpack.c.bf16 %v499_v51, %v243_v50  ;;  %v629_v50 = vld [vmem:[#allocation5 + $0xe28] sm:$0xff] }
 0x24e   :  { %12546 = vmatpush1.bf16.xpose.msra.mxu0 %v12545_v61  ;;  %12044 = vmatprep.subr.bf16.mxu1 %v12043_v62  ;;  %v1526_v61 = vcombine.high %v127_v31, %v127_v31  ;;  %v159_v62 = vld [vmem:[#allocation2 + $0x178] sm:$0xff]  ;;  %v496_v31 = vld [vmem:[#allocation5 + $0xa00] sm:$0xff] }
 0x24f   :  { %12548 = vmatprep.subr.bf16.mxu0 %v12547_v63  ;;  %v238_v63 = vld [vmem:[#allocation5 + $0x1f0] sm:$0xff] }
 0x250   :  { %v1540_v5 = vrot.slane %v1526_v61, %v13505_v17  ;;  %v12061_v9 = vpack.c.bf16 %v494_v0, %v238_v63  ;;  %v498_v61 = vld [vmem:[#allocation5 + $0xa10] sm:$0xff]  ;;  %v624_v63 = vld [vmem:[#allocation5 + $0xe00] sm:$0xff]  ;;  %v755_v0 = vld [vmem:[#allocation5 + $0x1218] sm:$0xff] }
 0x254   :  { %4640 = vmatmul.mubr.f32.vlgmr.msra.gmra.mrb[0].mxu1 %v1516_v42  ;;  %v2067_v42 = vrot.slane %v2053_v32, %v13505_v17  ;;  %v366_v32 = vld [vmem:[#allocation5 + $0x5f0] sm:$0xff] }
 0x255   :  { %12046 = vmatpush1.bf16.xpose.msra.mxu1 %v12045_v12  ;;  %9050 = vmatmul.mubr.f32.vlgmr.msra.gmra.mrb[0].mxu0 %v2050_v45  ;;  %v12055_v45 = vpack.c.bf16 %v1005_v38, %v749_v37  ;;  %v12567_v12 = vpack.c.bf16 %v1133_v7, %v877_v6  ;;  %v879_v37 = vld [vmem:[#allocation5 + $0x15f8] sm:$0xff]  ;;  %v12573_v41 = vpack.c.bf16 %v622_v33, %v366_v32  ;;  %v1013_v32 = vld [vmem:[#allocation5 + $0x1a28] sm:$0xff] }
 0x256   :  { %12550 = vmatpush1.bf16.xpose.msra.mxu0 %v12549_v13  ;;  %12048 = vmatprep.subr.bf16.mxu1 %v12047_v14  ;;  %v2069_v48 = vcombine.high %v2067_v42, %v2067_v42  ;;  %v1542_v13 = vcombine.high %v1540_v5, %v1540_v5  ;;  %v1135_v38 = vld [vmem:[#allocation5 + $0x1df8] sm:$0xff] }
 0x257   :  { %12552 = vmatprep.subr.bf16.mxu0 %v12551_v15  ;;  %4709 = vmatprep.mubr.f32.mxu1 %v1525_v16  ;;  %v750_v15 = vld [vmem:[#allocation5 + $0x11f0] sm:$0xff] }
 0x258   :  { %9119 = vmatprep.mubr.f32.mxu0 %v2068_v18  ;;  %v1006_v16 = vld [vmem:[#allocation5 + $0x19f0] sm:$0xff]  ;;  %v876_v18 = vld [vmem:[#allocation5 + $0x15e0] sm:$0xff] }
 0x259   :  { %v12065_v24 = vpack.c.bf16 %v1006_v16, %v750_v15  ;;  %v12569_v25 = vpack.c.bf16 %v1132_v19, %v876_v18  ;;  %v1136_v15 = vld [vmem:[#allocation5 + $0x1e00] sm:$0xff]  ;;  %v245_v16 = vld [vmem:[#allocation5 + $0x228] sm:$0xff]  ;;  %v371_v19 = vld [vmem:[#allocation5 + $0x618] sm:$0xff] }
 0x25a   :  { %v501_v18 = vld [vmem:[#allocation5 + $0xa28] sm:$0xff] }
 0x25d   :  { %12050 = vmatpush1.bf16.xpose.msra.mxu1 %v12049_v27  ;;  %v12571_v27 = vpack.c.bf16 %v623_v23, %v367_v22  ;;  %v12083_v23 = vpack.c.bf16 %v501_v18, %v245_v16  ;;  %v631_v16 = vld [vmem:[#allocation5 + $0xe38] sm:$0xff] }
 0x25e   :  { %12554 = vmatpush1.bf16.xpose.msra.mxu0 %v12553_v28  ;;  %12052 = vmatprep.subr.bf16.mxu1 %v12051_v29  ;;  %v128_v28 = vld [vmem:[#allocation2 + $0x80] sm:$0xff]  ;;  %v2070_v29 = vcombine.high %v159_v62, %v159_v62 }
 0x25f   :  { %12556 = vmatprep.subr.bf16.mxu0 %v12555_v30  ;;  %v240_v30 = vld [vmem:[#allocation5 + $0x200] sm:$0xff]  ;;  %v1550_v36 = vrot.slane %v128_v28, %v13505_v17 }
 0x260   :  { %v12069_v40 = vpack.c.bf16 %v496_v31, %v240_v30  ;;  %v626_v30 = vld [vmem:[#allocation5 + $0xe10] sm:$0xff]  ;;  %v757_v31 = vld [vmem:[#allocation5 + $0x1228] sm:$0xff] }
 0x264   :  { %4710 = vmatmul.mubr.f32.vlgmr.msra.gmra.mrb[0].mxu1 %v1523_v8  ;;  %v2077_v8 = vrot.slane %v159_v62, %v13505_v17  ;;  %v368_v62 = vld [vmem:[#allocation5 + $0x600] sm:$0xff] }
 0x265   :  { %12054 = vmatpush1.bf16.xpose.msra.mxu1 %v12053_v43  ;;  %9120 = vmatmul.mubr.f32.vlgmr.msra.gmra.mrb[0].mxu0 %v2060_v11  ;;  %v12063_v11 = vpack.c.bf16 %v1007_v4, %v751_v3  ;;  %v12575_v43 = vpack.c.bf16 %v1135_v38, %v879_v37  ;;  %v881_v3 = vld [vmem:[#allocation5 + $0x1608] sm:$0xff]  ;;  %v12581_v7 = vpack.c.bf16 %v624_v63, %v368_v62  ;;  %v1015_v62 = vld [vmem:[#allocation5 + $0x1a38] sm:$0xff] }
 0x266   :  { %12558 = vmatpush1.bf16.xpose.msra.mxu0 %v12557_v44  ;;  %12056 = vmatprep.subr.bf16.mxu1 %v12055_v45  ;;  %v2085_v14 = vcombine.high %v2077_v8, %v2077_v8  ;;  %v1558_v44 = vcombine.high %v1550_v36, %v1550_v36  ;;  %v1137_v4 = vld [vmem:[#allocation5 + $0x1e08] sm:$0xff] }
 0x267   :  { %12560 = vmatprep.subr.bf16.mxu0 %v12559_v46  ;;  %4779 = vmatprep.mubr.f32.mxu1 %v1541_v47  ;;  %v752_v46 = vld [vmem:[#allocation5 + $0x1200] sm:$0xff] }
 0x268   :  { %9189 = vmatprep.mubr.f32.mxu0 %v2069_v48  ;;  %v1008_v47 = vld [vmem:[#allocation5 + $0x1a00] sm:$0xff]  ;;  %v878_v48 = vld [vmem:[#allocation5 + $0x15f0] sm:$0xff] }
 0x269   :  { %v12073_v54 = vpack.c.bf16 %v1008_v47, %v752_v46  ;;  %v12577_v55 = vpack.c.bf16 %v1134_v49, %v878_v48  ;;  %v1138_v46 = vld [vmem:[#allocation5 + $0x1e10] sm:$0xff]  ;;  %v247_v47 = vld [vmem:[#allocation5 + $0x238] sm:$0xff]  ;;  %v373_v49 = vld [vmem:[#allocation5 + $0x628] sm:$0xff] }
 0x26a   :  { %v503_v48 = vld [vmem:[#allocation5 + $0xa38] sm:$0xff] }
 0x26d   :  { %12058 = vmatpush1.bf16.xpose.msra.mxu1 %v12057_v57  ;;  %v12579_v57 = vpack.c.bf16 %v625_v53, %v369_v52  ;;  %v12091_v53 = vpack.c.bf16 %v503_v48, %v247_v47  ;;  %v633_v47 = vld [vmem:[#allocation5 + $0xe48] sm:$0xff] }
 0x26e   :  { %12562 = vmatpush1.bf16.xpose.msra.mxu0 %v12561_v58  ;;  %12060 = vmatprep.subr.bf16.mxu1 %v12059_v59  ;;  %v1543_v58 = vcombine.high %v128_v28, %v128_v28  ;;  %v160_v59 = vld [vmem:[#allocation2 + $0x180] sm:$0xff] }
 0x26f   :  { %12564 = vmatprep.subr.bf16.mxu0 %v12563_v60  ;;  %v242_v60 = vld [vmem:[#allocation5 + $0x210] sm:$0xff]  ;;  %v500_v28 = vld [vmem:[#allocation5 + $0xa20] sm:$0xff] }
 0x270   :  { %v1557_v2 = vrot.slane %v1543_v58, %v13505_v17  ;;  %v12077_v6 = vpack.c.bf16 %v498_v61, %v242_v60  ;;  %v502_v58 = vld [vmem:[#allocation5 + $0xa30] sm:$0xff]  ;;  %v628_v60 = vld [vmem:[#allocation5 + $0xe20] sm:$0xff]  ;;  %v759_v61 = vld [vmem:[#allocation5 + $0x1238] sm:$0xff] }
 0x274   :  { %4780 = vmatmul.mubr.f32.vlgmr.msra.gmra.mrb[0].mxu1 %v1533_v39  ;;  %v2084_v39 = vrot.slane %v2070_v29, %v13505_v17  ;;  %v370_v29 = vld [vmem:[#allocation5 + $0x610] sm:$0xff] }
 0x275   :  { %12062 = vmatpush1.bf16.xpose.msra.mxu1 %v12061_v9  ;;  %9190 = vmatmul.mubr.f32.vlgmr.msra.gmra.mrb[0].mxu0 %v2067_v42  ;;  %v12071_v42 = vpack.c.bf16 %v1009_v35, %v753_v34  ;;  %v12583_v9 = vpack.c.bf16 %v1137_v4, %v881_v3  ;;  %v883_v34 = vld [vmem:[#allocation5 + $0x1618] sm:$0xff]  ;;  %v12589_v38 = vpack.c.bf16 %v626_v30, %v370_v29  ;;  %v1017_v29 = vld [vmem:[#allocation5 + $0x1a48] sm:$0xff] }
 0x276   :  { %12566 = vmatpush1.bf16.xpose.msra.mxu0 %v12565_v10  ;;  %12064 = vmatprep.subr.bf16.mxu1 %v12063_v11  ;;  %v2086_v45 = vcombine.high %v2084_v39, %v2084_v39  ;;  %v1559_v10 = vcombine.high %v1557_v2, %v1557_v2  ;;  %v1139_v35 = vld [vmem:[#allocation5 + $0x1e18] sm:$0xff] }
 0x277   :  { %12568 = vmatprep.subr.bf16.mxu0 %v12567_v12  ;;  %4849 = vmatprep.mubr.f32.mxu1 %v1542_v13  ;;  %v754_v12 = vld [vmem:[#allocation5 + $0x1210] sm:$0xff] }
 0x278   :  { %9259 = vmatprep.mubr.f32.mxu0 %v2085_v14  ;;  %v1010_v13 = vld [vmem:[#allocation5 + $0x1a10] sm:$0xff]  ;;  %v880_v14 = vld [vmem:[#allocation5 + $0x1600] sm:$0xff] }
 0x279   :  { %v12081_v21 = vpack.c.bf16 %v1010_v13, %v754_v12  ;;  %v12585_v22 = vpack.c.bf16 %v1136_v15, %v880_v14  ;;  %v1140_v12 = vld [vmem:[#allocation5 + $0x1e20] sm:$0xff]  ;;  %v249_v13 = vld [vmem:[#allocation5 + $0x248] sm:$0xff]  ;;  %v375_v15 = vld [vmem:[#allocation5 + $0x638] sm:$0xff] }
 0x27a   :  { %v505_v14 = vld [vmem:[#allocation5 + $0xa48] sm:$0xff] }
 0x27d   :  { %12066 = vmatpush1.bf16.xpose.msra.mxu1 %v12065_v24  ;;  %v12587_v24 = vpack.c.bf16 %v627_v20, %v371_v19  ;;  %v12099_v20 = vpack.c.bf16 %v505_v14, %v249_v13  ;;  %v635_v13 = vld [vmem:[#allocation5 + $0xe58] sm:$0xff] }
 0x27e   :  { %12570 = vmatpush1.bf16.xpose.msra.mxu0 %v12569_v25  ;;  %12068 = vmatprep.subr.bf16.mxu1 %v12067_v26  ;;  %v129_v25 = vld [vmem:[#allocation2 + $0x88] sm:$0xff]  ;;  %v2087_v26 = vcombine.high %v160_v59, %v160_v59 }
 0x27f   :  { %12572 = vmatprep.subr.bf16.mxu0 %v12571_v27  ;;  %v244_v27 = vld [vmem:[#allocation5 + $0x220] sm:$0xff]  ;;  %v1567_v33 = vrot.slane %v129_v25, %v13505_v17 }
 0x280   :  { %v12085_v37 = vpack.c.bf16 %v500_v28, %v244_v27  ;;  %v630_v27 = vld [vmem:[#allocation5 + $0xe30] sm:$0xff]  ;;  %v761_v28 = vld [vmem:[#allocation5 + $0x1248] sm:$0xff] }
 0x284   :  { %4850 = vmatmul.mubr.f32.vlgmr.msra.gmra.mrb[0].mxu1 %v1540_v5  ;;  %v2094_v5 = vrot.slane %v160_v59, %v13505_v17  ;;  %v372_v59 = vld [vmem:[#allocation5 + $0x620] sm:$0xff] }
 0x285   :  { %12070 = vmatpush1.bf16.xpose.msra.mxu1 %v12069_v40  ;;  %9260 = vmatmul.mubr.f32.vlgmr.msra.gmra.mrb[0].mxu0 %v2077_v8  ;;  %v12079_v8 = vpack.c.bf16 %v1011_v1, %v755_v0  ;;  %v12591_v40 = vpack.c.bf16 %v1139_v35, %v883_v34  ;;  %v885_v0 = vld [vmem:[#allocation5 + $0x1628] sm:$0xff]  ;;  %v12597_v4 = vpack.c.bf16 %v628_v60, %v372_v59  ;;  %v1019_v59 = vld [vmem:[#allocation5 + $0x1a58] sm:$0xff] }
 0x286   :  { %12574 = vmatpush1.bf16.xpose.msra.mxu0 %v12573_v41  ;;  %12072 = vmatprep.subr.bf16.mxu1 %v12071_v42  ;;  %v2102_v11 = vcombine.high %v2094_v5, %v2094_v5  ;;  %v1575_v41 = vcombine.high %v1567_v33, %v1567_v33  ;;  %v1141_v1 = vld [vmem:[#allocation5 + $0x1e28] sm:$0xff] }
 0x287   :  { %12576 = vmatprep.subr.bf16.mxu0 %v12575_v43  ;;  %4919 = vmatprep.mubr.f32.mxu1 %v1558_v44  ;;  %v756_v43 = vld [vmem:[#allocation5 + $0x1220] sm:$0xff] }
 0x288   :  { %9329 = vmatprep.mubr.f32.mxu0 %v2086_v45  ;;  %v1012_v44 = vld [vmem:[#allocation5 + $0x1a20] sm:$0xff]  ;;  %v882_v45 = vld [vmem:[#allocation5 + $0x1610] sm:$0xff] }
 0x289   :  { %v12089_v51 = vpack.c.bf16 %v1012_v44, %v756_v43  ;;  %v12593_v52 = vpack.c.bf16 %v1138_v46, %v882_v45  ;;  %v1142_v43 = vld [vmem:[#allocation5 + $0x1e30] sm:$0xff]  ;;  %v251_v44 = vld [vmem:[#allocation5 + $0x258] sm:$0xff]  ;;  %v377_v46 = vld [vmem:[#allocation5 + $0x648] sm:$0xff] }
 0x28a   :  { %v507_v45 = vld [vmem:[#allocation5 + $0xa58] sm:$0xff] }
 0x28d   :  { %12074 = vmatpush1.bf16.xpose.msra.mxu1 %v12073_v54  ;;  %v12595_v54 = vpack.c.bf16 %v629_v50, %v373_v49  ;;  %v12107_v50 = vpack.c.bf16 %v507_v45, %v251_v44  ;;  %v637_v44 = vld [vmem:[#allocation5 + $0xe68] sm:$0xff] }
 0x28e   :  { %12578 = vmatpush1.bf16.xpose.msra.mxu0 %v12577_v55  ;;  %12076 = vmatprep.subr.bf16.mxu1 %v12075_v56  ;;  %v1560_v55 = vcombine.high %v129_v25, %v129_v25  ;;  %v161_v56 = vld [vmem:[#allocation2 + $0x188] sm:$0xff]  ;;  %v504_v25 = vld [vmem:[#allocation5 + $0xa40] sm:$0xff] }
 0x28f   :  { %12580 = vmatprep.subr.bf16.mxu0 %v12579_v57  ;;  %v246_v57 = vld [vmem:[#allocation5 + $0x230] sm:$0xff] }
 0x290   :  { %v1574_v63 = vrot.slane %v1560_v55, %v13505_v17  ;;  %v12093_v3 = vpack.c.bf16 %v502_v58, %v246_v57  ;;  %v506_v55 = vld [vmem:[#allocation5 + $0xa50] sm:$0xff]  ;;  %v632_v57 = vld [vmem:[#allocation5 + $0xe40] sm:$0xff]  ;;  %v763_v58 = vld [vmem:[#allocation5 + $0x1258] sm:$0xff] }
 0x294   :  { %4920 = vmatmul.mubr.f32.vlgmr.msra.gmra.mrb[0].mxu1 %v1550_v36  ;;  %v2101_v36 = vrot.slane %v2087_v26, %v13505_v17  ;;  %v374_v26 = vld [vmem:[#allocation5 + $0x630] sm:$0xff] }
 0x295   :  { %12078 = vmatpush1.bf16.xpose.msra.mxu1 %v12077_v6  ;;  %9330 = vmatmul.mubr.f32.vlgmr.msra.gmra.mrb[0].mxu0 %v2084_v39  ;;  %v12087_v39 = vpack.c.bf16 %v1013_v32, %v757_v31  ;;  %v12599_v6 = vpack.c.bf16 %v1141_v1, %v885_v0  ;;  %v887_v31 = vld [vmem:[#allocation5 + $0x1638] sm:$0xff]  ;;  %v12605_v35 = vpack.c.bf16 %v630_v27, %v374_v26  ;;  %v1021_v26 = vld [vmem:[#allocation5 + $0x1a68] sm:$0xff] }
 0x296   :  { %12582 = vmatpush1.bf16.xpose.msra.mxu0 %v12581_v7  ;;  %12080 = vmatprep.subr.bf16.mxu1 %v12079_v8  ;;  %v2103_v42 = vcombine.high %v2101_v36, %v2101_v36  ;;  %v1576_v7 = vcombine.high %v1574_v63, %v1574_v63  ;;  %v1143_v32 = vld [vmem:[#allocation5 + $0x1e38] sm:$0xff] }
 0x297   :  { %12584 = vmatprep.subr.bf16.mxu0 %v12583_v9  ;;  %4989 = vmatprep.mubr.f32.mxu1 %v1559_v10  ;;  %v758_v9 = vld [vmem:[#allocation5 + $0x1230] sm:$0xff] }
 0x298   :  { %9399 = vmatprep.mubr.f32.mxu0 %v2102_v11  ;;  %v1014_v10 = vld [vmem:[#allocation5 + $0x1a30] sm:$0xff]  ;;  %v884_v11 = vld [vmem:[#allocation5 + $0x1620] sm:$0xff] }
 0x299   :  { %v12097_v18 = vpack.c.bf16 %v1014_v10, %v758_v9  ;;  %v12601_v19 = vpack.c.bf16 %v1140_v12, %v884_v11  ;;  %v1144_v9 = vld [vmem:[#allocation5 + $0x1e40] sm:$0xff]  ;;  %v253_v10 = vld [vmem:[#allocation5 + $0x268] sm:$0xff]  ;;  %v379_v12 = vld [vmem:[#allocation5 + $0x658] sm:$0xff] }
 0x29a   :  { %v509_v11 = vld [vmem:[#allocation5 + $0xa68] sm:$0xff] }
 0x29d   :  { %12082 = vmatpush1.bf16.xpose.msra.mxu1 %v12081_v21  ;;  %v12603_v21 = vpack.c.bf16 %v631_v16, %v375_v15  ;;  %v12115_v16 = vpack.c.bf16 %v509_v11, %v253_v10  ;;  %v639_v10 = vld [vmem:[#allocation5 + $0xe78] sm:$0xff] }
 0x29e   :  { %12586 = vmatpush1.bf16.xpose.msra.mxu0 %v12585_v22  ;;  %12084 = vmatprep.subr.bf16.mxu1 %v12083_v23  ;;  %v130_v22 = vld [vmem:[#allocation2 + $0x90] sm:$0xff]  ;;  %v2104_v23 = vcombine.high %v161_v56, %v161_v56 }
 0x29f   :  { %12588 = vmatprep.subr.bf16.mxu0 %v12587_v24  ;;  %v248_v24 = vld [vmem:[#allocation5 + $0x240] sm:$0xff]  ;;  %v1584_v30 = vrot.slane %v130_v22, %v13505_v17 }
 0x2a0   :  { %v12101_v34 = vpack.c.bf16 %v504_v25, %v248_v24  ;;  %v634_v24 = vld [vmem:[#allocation5 + $0xe50] sm:$0xff]  ;;  %v765_v25 = vld [vmem:[#allocation5 + $0x1268] sm:$0xff] }
 0x2a4   :  { %4990 = vmatmul.mubr.f32.vlgmr.msra.gmra.mrb[0].mxu1 %v1557_v2  ;;  %v2111_v2 = vrot.slane %v161_v56, %v13505_v17  ;;  %v376_v56 = vld [vmem:[#allocation5 + $0x640] sm:$0xff] }
 0x2a5   :  { %12086 = vmatpush1.bf16.xpose.msra.mxu1 %v12085_v37  ;;  %9400 = vmatmul.mubr.f32.vlgmr.msra.gmra.mrb[0].mxu0 %v2094_v5  ;;  %v12095_v5 = vpack.c.bf16 %v1015_v62, %v759_v61  ;;  %v12607_v37 = vpack.c.bf16 %v1143_v32, %v887_v31  ;;  %v889_v61 = vld [vmem:[#allocation5 + $0x1648] sm:$0xff]  ;;  %v12613_v1 = vpack.c.bf16 %v632_v57, %v376_v56  ;;  %v1023_v56 = vld [vmem:[#allocation5 + $0x1a78] sm:$0xff] }
 0x2a6   :  { %12590 = vmatpush1.bf16.xpose.msra.mxu0 %v12589_v38  ;;  %12088 = vmatprep.subr.bf16.mxu1 %v12087_v39  ;;  %v2119_v8 = vcombine.high %v2111_v2, %v2111_v2  ;;  %v1592_v38 = vcombine.high %v1584_v30, %v1584_v30  ;;  %v1145_v62 = vld [vmem:[#allocation5 + $0x1e48] sm:$0xff] }
 0x2a7   :  { %12592 = vmatprep.subr.bf16.mxu0 %v12591_v40  ;;  %5059 = vmatprep.mubr.f32.mxu1 %v1575_v41  ;;  %v760_v40 = vld [vmem:[#allocation5 + $0x1240] sm:$0xff] }
 0x2a8   :  { %9469 = vmatprep.mubr.f32.mxu0 %v2103_v42  ;;  %v1016_v41 = vld [vmem:[#allocation5 + $0x1a40] sm:$0xff]  ;;  %v886_v42 = vld [vmem:[#allocation5 + $0x1630] sm:$0xff] }
 0x2a9   :  { %v12105_v48 = vpack.c.bf16 %v1016_v41, %v760_v40  ;;  %v12609_v49 = vpack.c.bf16 %v1142_v43, %v886_v42  ;;  %v1146_v40 = vld [vmem:[#allocation5 + $0x1e50] sm:$0xff]  ;;  %v255_v41 = vld [vmem:[#allocation5 + $0x278] sm:$0xff]  ;;  %v381_v43 = vld [vmem:[#allocation5 + $0x668] sm:$0xff] }
 0x2aa   :  { %v511_v42 = vld [vmem:[#allocation5 + $0xa78] sm:$0xff] }
 0x2ad   :  { %12090 = vmatpush1.bf16.xpose.msra.mxu1 %v12089_v51  ;;  %v12611_v51 = vpack.c.bf16 %v633_v47, %v377_v46  ;;  %v12123_v47 = vpack.c.bf16 %v511_v42, %v255_v41  ;;  %v641_v41 = vld [vmem:[#allocation5 + $0xe88] sm:$0xff] }
 0x2ae   :  { %12594 = vmatpush1.bf16.xpose.msra.mxu0 %v12593_v52  ;;  %12092 = vmatprep.subr.bf16.mxu1 %v12091_v53  ;;  %v1577_v52 = vcombine.high %v130_v22, %v130_v22  ;;  %v162_v53 = vld [vmem:[#allocation2 + $0x190] sm:$0xff]  ;;  %v508_v22 = vld [vmem:[#allocation5 + $0xa60] sm:$0xff] }
 0x2af   :  { %12596 = vmatprep.subr.bf16.mxu0 %v12595_v54  ;;  %v250_v54 = vld [vmem:[#allocation5 + $0x250] sm:$0xff] }
 0x2b0   :  { %v1591_v60 = vrot.slane %v1577_v52, %v13505_v17  ;;  %v12109_v0 = vpack.c.bf16 %v506_v55, %v250_v54  ;;  %v510_v52 = vld [vmem:[#allocation5 + $0xa70] sm:$0xff]  ;;  %v636_v54 = vld [vmem:[#allocation5 + $0xe60] sm:$0xff]  ;;  %v767_v55 = vld [vmem:[#allocation5 + $0x1278] sm:$0xff] }
 0x2b4   :  { %5060 = vmatmul.mubr.f32.vlgmr.msra.gmra.mrb[0].mxu1 %v1567_v33  ;;  %v2118_v33 = vrot.slane %v2104_v23, %v13505_v17  ;;  %v378_v23 = vld [vmem:[#allocation5 + $0x650] sm:$0xff] }
 0x2b5   :  { %12094 = vmatpush1.bf16.xpose.msra.mxu1 %v12093_v3  ;;  %9470 = vmatmul.mubr.f32.vlgmr.msra.gmra.mrb[0].mxu0 %v2101_v36  ;;  %v12103_v36 = vpack.c.bf16 %v1017_v29, %v761_v28  ;;  %v12615_v3 = vpack.c.bf16 %v1145_v62, %v889_v61  ;;  %v891_v28 = vld [vmem:[#allocation5 + $0x1658] sm:$0xff]  ;;  %v12621_v32 = vpack.c.bf16 %v634_v24, %v378_v23  ;;  %v1025_v23 = vld [vmem:[#allocation5 + $0x1a88] sm:$0xff] }
 0x2b6   :  { %12598 = vmatpush1.bf16.xpose.msra.mxu0 %v12597_v4  ;;  %12096 = vmatprep.subr.bf16.mxu1 %v12095_v5  ;;  %v2120_v39 = vcombine.high %v2118_v33, %v2118_v33  ;;  %v1593_v4 = vcombine.high %v1591_v60, %v1591_v60  ;;  %v1147_v29 = vld [vmem:[#allocation5 + $0x1e58] sm:$0xff] }
 0x2b7   :  { %12600 = vmatprep.subr.bf16.mxu0 %v12599_v6  ;;  %5129 = vmatprep.mubr.f32.mxu1 %v1576_v7  ;;  %v762_v6 = vld [vmem:[#allocation5 + $0x1250] sm:$0xff] }
 0x2b8   :  { %9539 = vmatprep.mubr.f32.mxu0 %v2119_v8  ;;  %v1018_v7 = vld [vmem:[#allocation5 + $0x1a50] sm:$0xff]  ;;  %v888_v8 = vld [vmem:[#allocation5 + $0x1640] sm:$0xff] }
 0x2b9   :  { %v12113_v14 = vpack.c.bf16 %v1018_v7, %v762_v6  ;;  %v12617_v15 = vpack.c.bf16 %v1144_v9, %v888_v8  ;;  %v1148_v6 = vld [vmem:[#allocation5 + $0x1e60] sm:$0xff]  ;;  %v257_v7 = vld [vmem:[#allocation5 + $0x288] sm:$0xff]  ;;  %v383_v9 = vld [vmem:[#allocation5 + $0x678] sm:$0xff] }
 0x2ba   :  { %v513_v8 = vld [vmem:[#allocation5 + $0xa88] sm:$0xff] }
 0x2bd   :  { %12098 = vmatpush1.bf16.xpose.msra.mxu1 %v12097_v18  ;;  %v12619_v18 = vpack.c.bf16 %v635_v13, %v379_v12  ;;  %v12131_v13 = vpack.c.bf16 %v513_v8, %v257_v7  ;;  %v643_v7 = vld [vmem:[#allocation5 + $0xe98] sm:$0xff] }
 0x2be   :  { %12602 = vmatpush1.bf16.xpose.msra.mxu0 %v12601_v19  ;;  %12100 = vmatprep.subr.bf16.mxu1 %v12099_v20  ;;  %v131_v19 = vld [vmem:[#allocation2 + $0x98] sm:$0xff]  ;;  %v2121_v20 = vcombine.high %v162_v53, %v162_v53 }
 0x2bf   :  { %12604 = vmatprep.subr.bf16.mxu0 %v12603_v21  ;;  %v252_v21 = vld [vmem:[#allocation5 + $0x260] sm:$0xff]  ;;  %v1601_v27 = vrot.slane %v131_v19, %v13505_v17 }
 0x2c0   :  { %v12117_v31 = vpack.c.bf16 %v508_v22, %v252_v21  ;;  %v638_v21 = vld [vmem:[#allocation5 + $0xe70] sm:$0xff]  ;;  %v769_v22 = vld [vmem:[#allocation5 + $0x1288] sm:$0xff] }
 0x2c4   :  { %5130 = vmatmul.mubr.f32.vlgmr.msra.gmra.mrb[0].mxu1 %v1574_v63  ;;  %v2128_v63 = vrot.slane %v162_v53, %v13505_v17  ;;  %v380_v53 = vld [vmem:[#allocation5 + $0x660] sm:$0xff] }
 0x2c5   :  { %12102 = vmatpush1.bf16.xpose.msra.mxu1 %v12101_v34  ;;  %9540 = vmatmul.mubr.f32.vlgmr.msra.gmra.mrb[0].mxu0 %v2111_v2  ;;  %v12111_v2 = vpack.c.bf16 %v1019_v59, %v763_v58  ;;  %v12623_v34 = vpack.c.bf16 %v1147_v29, %v891_v28  ;;  %v893_v58 = vld [vmem:[#allocation5 + $0x1668] sm:$0xff]  ;;  %v12629_v62 = vpack.c.bf16 %v636_v54, %v380_v53  ;;  %v1027_v53 = vld [vmem:[#allocation5 + $0x1a98] sm:$0xff] }
 0x2c6   :  { %12606 = vmatpush1.bf16.xpose.msra.mxu0 %v12605_v35  ;;  %12104 = vmatprep.subr.bf16.mxu1 %v12103_v36  ;;  %v2136_v5 = vcombine.high %v2128_v63, %v2128_v63  ;;  %v1609_v35 = vcombine.high %v1601_v27, %v1601_v27  ;;  %v1149_v59 = vld [vmem:[#allocation5 + $0x1e68] sm:$0xff] }
 0x2c7   :  { %12608 = vmatprep.subr.bf16.mxu0 %v12607_v37  ;;  %5199 = vmatprep.mubr.f32.mxu1 %v1592_v38  ;;  %v764_v37 = vld [vmem:[#allocation5 + $0x1260] sm:$0xff] }
 0x2c8   :  { %9609 = vmatprep.mubr.f32.mxu0 %v2120_v39  ;;  %v1020_v38 = vld [vmem:[#allocation5 + $0x1a60] sm:$0xff]  ;;  %v890_v39 = vld [vmem:[#allocation5 + $0x1650] sm:$0xff] }
 0x2c9   :  { %v12121_v45 = vpack.c.bf16 %v1020_v38, %v764_v37  ;;  %v12625_v46 = vpack.c.bf16 %v1146_v40, %v890_v39  ;;  %v1150_v37 = vld [vmem:[#allocation5 + $0x1e70] sm:$0xff]  ;;  %v259_v38 = vld [vmem:[#allocation5 + $0x298] sm:$0xff]  ;;  %v385_v40 = vld [vmem:[#allocation5 + $0x688] sm:$0xff] }
 0x2ca   :  { %v515_v39 = vld [vmem:[#allocation5 + $0xa98] sm:$0xff] }
 0x2cd   :  { %12106 = vmatpush1.bf16.xpose.msra.mxu1 %v12105_v48  ;;  %v12627_v48 = vpack.c.bf16 %v637_v44, %v381_v43  ;;  %v12139_v44 = vpack.c.bf16 %v515_v39, %v259_v38  ;;  %v645_v38 = vld [vmem:[#allocation5 + $0xea8] sm:$0xff] }
 0x2ce   :  { %12610 = vmatpush1.bf16.xpose.msra.mxu0 %v12609_v49  ;;  %12108 = vmatprep.subr.bf16.mxu1 %v12107_v50  ;;  %v1594_v49 = vcombine.high %v131_v19, %v131_v19  ;;  %v163_v50 = vld [vmem:[#allocation2 + $0x198] sm:$0xff]  ;;  %v512_v19 = vld [vmem:[#allocation5 + $0xa80] sm:$0xff] }
 0x2cf   :  { %12612 = vmatprep.subr.bf16.mxu0 %v12611_v51  ;;  %v254_v51 = vld [vmem:[#allocation5 + $0x270] sm:$0xff] }
 0x2d0   :  { %v1608_v57 = vrot.slane %v1594_v49, %v13505_v17  ;;  %v12125_v61 = vpack.c.bf16 %v510_v52, %v254_v51  ;;  %v514_v49 = vld [vmem:[#allocation5 + $0xa90] sm:$0xff]  ;;  %v640_v51 = vld [vmem:[#allocation5 + $0xe80] sm:$0xff]  ;;  %v771_v52 = vld [vmem:[#allocation5 + $0x1298] sm:$0xff] }
 0x2d4   :  { %5200 = vmatmul.mubr.f32.vlgmr.msra.gmra.mrb[0].mxu1 %v1584_v30  ;;  %v2135_v30 = vrot.slane %v2121_v20, %v13505_v17  ;;  %v382_v20 = vld [vmem:[#allocation5 + $0x670] sm:$0xff] }
 0x2d5   :  { %12110 = vmatpush1.bf16.xpose.msra.mxu1 %v12109_v0  ;;  %9610 = vmatmul.mubr.f32.vlgmr.msra.gmra.mrb[0].mxu0 %v2118_v33  ;;  %v12119_v33 = vpack.c.bf16 %v1021_v26, %v765_v25  ;;  %v12631_v0 = vpack.c.bf16 %v1149_v59, %v893_v58  ;;  %v895_v25 = vld [vmem:[#allocation5 + $0x1678] sm:$0xff]  ;;  %v12637_v29 = vpack.c.bf16 %v638_v21, %v382_v20  ;;  %v1029_v20 = vld [vmem:[#allocation5 + $0x1aa8] sm:$0xff] }
 0x2d6   :  { %12614 = vmatpush1.bf16.xpose.msra.mxu0 %v12613_v1  ;;  %12112 = vmatprep.subr.bf16.mxu1 %v12111_v2  ;;  %v2137_v36 = vcombine.high %v2135_v30, %v2135_v30  ;;  %v1610_v1 = vcombine.high %v1608_v57, %v1608_v57  ;;  %v1151_v26 = vld [vmem:[#allocation5 + $0x1e78] sm:$0xff] }
 0x2d7   :  { %12616 = vmatprep.subr.bf16.mxu0 %v12615_v3  ;;  %5269 = vmatprep.mubr.f32.mxu1 %v1593_v4  ;;  %v766_v3 = vld [vmem:[#allocation5 + $0x1270] sm:$0xff] }
 0x2d8   :  { %9679 = vmatprep.mubr.f32.mxu0 %v2136_v5  ;;  %v1022_v4 = vld [vmem:[#allocation5 + $0x1a70] sm:$0xff]  ;;  %v892_v5 = vld [vmem:[#allocation5 + $0x1660] sm:$0xff] }
 0x2d9   :  { %v12129_v11 = vpack.c.bf16 %v1022_v4, %v766_v3  ;;  %v12633_v12 = vpack.c.bf16 %v1148_v6, %v892_v5  ;;  %v1152_v3 = vld [vmem:[#allocation5 + $0x1e80] sm:$0xff]  ;;  %v261_v4 = vld [vmem:[#allocation5 + $0x2a8] sm:$0xff]  ;;  %v387_v6 = vld [vmem:[#allocation5 + $0x698] sm:$0xff] }
 0x2da   :  { %v517_v5 = vld [vmem:[#allocation5 + $0xaa8] sm:$0xff] }
 0x2dd   :  { %12114 = vmatpush1.bf16.xpose.msra.mxu1 %v12113_v14  ;;  %v12635_v14 = vpack.c.bf16 %v639_v10, %v383_v9  ;;  %v12147_v10 = vpack.c.bf16 %v517_v5, %v261_v4  ;;  %v647_v4 = vld [vmem:[#allocation5 + $0xeb8] sm:$0xff] }
 0x2de   :  { %12618 = vmatpush1.bf16.xpose.msra.mxu0 %v12617_v15  ;;  %12116 = vmatprep.subr.bf16.mxu1 %v12115_v16  ;;  %v132_v15 = vld [vmem:[#allocation2 + $0xa0] sm:$0xff]  ;;  %v2138_v16 = vcombine.high %v163_v50, %v163_v50 }
 0x2df   :  { %12620 = vmatprep.subr.bf16.mxu0 %v12619_v18  ;;  %v256_v18 = vld [vmem:[#allocation5 + $0x280] sm:$0xff]  ;;  %v1618_v24 = vrot.slane %v132_v15, %v13505_v17 }
 0x2e0   :  { %v12133_v28 = vpack.c.bf16 %v512_v19, %v256_v18  ;;  %v642_v18 = vld [vmem:[#allocation5 + $0xe90] sm:$0xff]  ;;  %v773_v19 = vld [vmem:[#allocation5 + $0x12a8] sm:$0xff] }
 0x2e4   :  { %5270 = vmatmul.mubr.f32.vlgmr.msra.gmra.mrb[0].mxu1 %v1591_v60  ;;  %v2145_v60 = vrot.slane %v163_v50, %v13505_v17  ;;  %v384_v50 = vld [vmem:[#allocation5 + $0x680] sm:$0xff] }
 0x2e5   :  { %12118 = vmatpush1.bf16.xpose.msra.mxu1 %v12117_v31  ;;  %9680 = vmatmul.mubr.f32.vlgmr.msra.gmra.mrb[0].mxu0 %v2128_v63  ;;  %v12127_v63 = vpack.c.bf16 %v1023_v56, %v767_v55  ;;  %v12639_v31 = vpack.c.bf16 %v1151_v26, %v895_v25  ;;  %v897_v55 = vld [vmem:[#allocation5 + $0x1688] sm:$0xff]  ;;  %v12645_v59 = vpack.c.bf16 %v640_v51, %v384_v50  ;;  %v1031_v50 = vld [vmem:[#allocation5 + $0x1ab8] sm:$0xff] }
 0x2e6   :  { %12622 = vmatpush1.bf16.xpose.msra.mxu0 %v12621_v32  ;;  %12120 = vmatprep.subr.bf16.mxu1 %v12119_v33  ;;  %v2153_v2 = vcombine.high %v2145_v60, %v2145_v60  ;;  %v1626_v32 = vcombine.high %v1618_v24, %v1618_v24  ;;  %v1153_v56 = vld [vmem:[#allocation5 + $0x1e88] sm:$0xff] }
 0x2e7   :  { %12624 = vmatprep.subr.bf16.mxu0 %v12623_v34  ;;  %5339 = vmatprep.mubr.f32.mxu1 %v1609_v35  ;;  %v768_v34 = vld [vmem:[#allocation5 + $0x1280] sm:$0xff] }
 0x2e8   :  { %9749 = vmatprep.mubr.f32.mxu0 %v2137_v36  ;;  %v1024_v35 = vld [vmem:[#allocation5 + $0x1a80] sm:$0xff]  ;;  %v894_v36 = vld [vmem:[#allocation5 + $0x1670] sm:$0xff] }
 0x2e9   :  { %v12137_v42 = vpack.c.bf16 %v1024_v35, %v768_v34  ;;  %v12641_v43 = vpack.c.bf16 %v1150_v37, %v894_v36  ;;  %v1154_v34 = vld [vmem:[#allocation5 + $0x1e90] sm:$0xff]  ;;  %v263_v35 = vld [vmem:[#allocation5 + $0x2b8] sm:$0xff]  ;;  %v389_v37 = vld [vmem:[#allocation5 + $0x6a8] sm:$0xff] }
 0x2ea   :  { %v519_v36 = vld [vmem:[#allocation5 + $0xab8] sm:$0xff] }
 0x2ed   :  { %12122 = vmatpush1.bf16.xpose.msra.mxu1 %v12121_v45  ;;  %v12643_v45 = vpack.c.bf16 %v641_v41, %v385_v40  ;;  %v12155_v41 = vpack.c.bf16 %v519_v36, %v263_v35  ;;  %v649_v35 = vld [vmem:[#allocation5 + $0xec8] sm:$0xff] }
 0x2ee   :  { %12626 = vmatpush1.bf16.xpose.msra.mxu0 %v12625_v46  ;;  %12124 = vmatprep.subr.bf16.mxu1 %v12123_v47  ;;  %v1611_v46 = vcombine.high %v132_v15, %v132_v15  ;;  %v164_v47 = vld [vmem:[#allocation2 + $0x1a0] sm:$0xff] }
 0x2ef   :  { %12628 = vmatprep.subr.bf16.mxu0 %v12627_v48  ;;  %v258_v48 = vld [vmem:[#allocation5 + $0x290] sm:$0xff]  ;;  %v516_v15 = vld [vmem:[#allocation5 + $0xaa0] sm:$0xff] }
 0x2f0   :  { %v1625_v54 = vrot.slane %v1611_v46, %v13505_v17  ;;  %v12141_v58 = vpack.c.bf16 %v514_v49, %v258_v48  ;;  %v518_v46 = vld [vmem:[#allocation5 + $0xab0] sm:$0xff]  ;;  %v644_v48 = vld [vmem:[#allocation5 + $0xea0] sm:$0xff]  ;;  %v775_v49 = vld [vmem:[#allocation5 + $0x12b8] sm:$0xff] }
 0x2f4   :  { %5340 = vmatmul.mubr.f32.vlgmr.msra.gmra.mrb[0].mxu1 %v1601_v27  ;;  %v2152_v27 = vrot.slane %v2138_v16, %v13505_v17  ;;  %v386_v16 = vld [vmem:[#allocation5 + $0x690] sm:$0xff] }
 0x2f5   :  { %12126 = vmatpush1.bf16.xpose.msra.mxu1 %v12125_v61  ;;  %9750 = vmatmul.mubr.f32.vlgmr.msra.gmra.mrb[0].mxu0 %v2135_v30  ;;  %v12135_v30 = vpack.c.bf16 %v1025_v23, %v769_v22  ;;  %v12647_v61 = vpack.c.bf16 %v1153_v56, %v897_v55  ;;  %v899_v22 = vld [vmem:[#allocation5 + $0x1698] sm:$0xff]  ;;  %v12653_v26 = vpack.c.bf16 %v642_v18, %v386_v16  ;;  %v1033_v16 = vld [vmem:[#allocation5 + $0x1ac8] sm:$0xff] }
 0x2f6   :  { %12630 = vmatpush1.bf16.xpose.msra.mxu0 %v12629_v62  ;;  %12128 = vmatprep.subr.bf16.mxu1 %v12127_v63  ;;  %v2154_v33 = vcombine.high %v2152_v27, %v2152_v27  ;;  %v1627_v62 = vcombine.high %v1625_v54, %v1625_v54  ;;  %v1155_v23 = vld [vmem:[#allocation5 + $0x1e98] sm:$0xff] }
 0x2f7   :  { %12632 = vmatprep.subr.bf16.mxu0 %v12631_v0  ;;  %5409 = vmatprep.mubr.f32.mxu1 %v1610_v1  ;;  %v770_v0 = vld [vmem:[#allocation5 + $0x1290] sm:$0xff] }
 0x2f8   :  { %9819 = vmatprep.mubr.f32.mxu0 %v2153_v2  ;;  %v1026_v1 = vld [vmem:[#allocation5 + $0x1a90] sm:$0xff]  ;;  %v896_v2 = vld [vmem:[#allocation5 + $0x1680] sm:$0xff] }
 0x2f9   :  { %v12145_v8 = vpack.c.bf16 %v1026_v1, %v770_v0  ;;  %v12649_v9 = vpack.c.bf16 %v1152_v3, %v896_v2  ;;  %v1156_v0 = vld [vmem:[#allocation5 + $0x1ea0] sm:$0xff]  ;;  %v265_v1 = vld [vmem:[#allocation5 + $0x2c8] sm:$0xff]  ;;  %v391_v3 = vld [vmem:[#allocation5 + $0x6b8] sm:$0xff] }
 0x2fa   :  { %v521_v2 = vld [vmem:[#allocation5 + $0xac8] sm:$0xff] }
 0x2fd   :  { %12130 = vmatpush1.bf16.xpose.msra.mxu1 %v12129_v11  ;;  %v12651_v11 = vpack.c.bf16 %v643_v7, %v387_v6  ;;  %v12163_v7 = vpack.c.bf16 %v521_v2, %v265_v1  ;;  %v651_v1 = vld [vmem:[#allocation5 + $0xed8] sm:$0xff] }
 0x2fe   :  { %12634 = vmatpush1.bf16.xpose.msra.mxu0 %v12633_v12  ;;  %12132 = vmatprep.subr.bf16.mxu1 %v12131_v13  ;;  %v133_v12 = vld [vmem:[#allocation2 + $0xa8] sm:$0xff]  ;;  %v2155_v13 = vcombine.high %v164_v47, %v164_v47 }
 0x2ff   :  { %12636 = vmatprep.subr.bf16.mxu0 %v12635_v14  ;;  %v260_v14 = vld [vmem:[#allocation5 + $0x2a0] sm:$0xff]  ;;  %v1635_v21 = vrot.slane %v133_v12, %v13505_v17 }
 0x300   :  { %v12149_v25 = vpack.c.bf16 %v516_v15, %v260_v14  ;;  %v646_v14 = vld [vmem:[#allocation5 + $0xeb0] sm:$0xff]  ;;  %v777_v15 = vld [vmem:[#allocation5 + $0x12c8] sm:$0xff] }
 0x304   :  { %5410 = vmatmul.mubr.f32.vlgmr.msra.gmra.mrb[0].mxu1 %v1608_v57  ;;  %v2162_v57 = vrot.slane %v164_v47, %v13505_v17  ;;  %v388_v47 = vld [vmem:[#allocation5 + $0x6a0] sm:$0xff] }
 0x305   :  { %12134 = vmatpush1.bf16.xpose.msra.mxu1 %v12133_v28  ;;  %9820 = vmatmul.mubr.f32.vlgmr.msra.gmra.mrb[0].mxu0 %v2145_v60  ;;  %v12143_v60 = vpack.c.bf16 %v1027_v53, %v771_v52  ;;  %v12655_v28 = vpack.c.bf16 %v1155_v23, %v899_v22  ;;  %v901_v52 = vld [vmem:[#allocation5 + $0x16a8] sm:$0xff]  ;;  %v12661_v56 = vpack.c.bf16 %v644_v48, %v388_v47  ;;  %v1035_v47 = vld [vmem:[#allocation5 + $0x1ad8] sm:$0xff] }
 0x306   :  { %12638 = vmatpush1.bf16.xpose.msra.mxu0 %v12637_v29  ;;  %12136 = vmatprep.subr.bf16.mxu1 %v12135_v30  ;;  %v2170_v63 = vcombine.high %v2162_v57, %v2162_v57  ;;  %v1643_v29 = vcombine.high %v1635_v21, %v1635_v21  ;;  %v1157_v53 = vld [vmem:[#allocation5 + $0x1ea8] sm:$0xff] }
 0x307   :  { %12640 = vmatprep.subr.bf16.mxu0 %v12639_v31  ;;  %5479 = vmatprep.mubr.f32.mxu1 %v1626_v32  ;;  %v772_v31 = vld [vmem:[#allocation5 + $0x12a0] sm:$0xff] }
 0x308   :  { %9889 = vmatprep.mubr.f32.mxu0 %v2154_v33  ;;  %v1028_v32 = vld [vmem:[#allocation5 + $0x1aa0] sm:$0xff]  ;;  %v898_v33 = vld [vmem:[#allocation5 + $0x1690] sm:$0xff] }
 0x309   :  { %v12153_v39 = vpack.c.bf16 %v1028_v32, %v772_v31  ;;  %v12657_v40 = vpack.c.bf16 %v1154_v34, %v898_v33  ;;  %v1158_v31 = vld [vmem:[#allocation5 + $0x1eb0] sm:$0xff]  ;;  %v267_v32 = vld [vmem:[#allocation5 + $0x2d8] sm:$0xff]  ;;  %v393_v34 = vld [vmem:[#allocation5 + $0x6c8] sm:$0xff] }
 0x30a   :  { %v523_v33 = vld [vmem:[#allocation5 + $0xad8] sm:$0xff] }
 0x30d   :  { %12138 = vmatpush1.bf16.xpose.msra.mxu1 %v12137_v42  ;;  %v12659_v42 = vpack.c.bf16 %v645_v38, %v389_v37  ;;  %v12171_v38 = vpack.c.bf16 %v523_v33, %v267_v32  ;;  %v653_v32 = vld [vmem:[#allocation5 + $0xee8] sm:$0xff] }
 0x30e   :  { %12642 = vmatpush1.bf16.xpose.msra.mxu0 %v12641_v43  ;;  %12140 = vmatprep.subr.bf16.mxu1 %v12139_v44  ;;  %v1628_v43 = vcombine.high %v133_v12, %v133_v12  ;;  %v165_v44 = vld [vmem:[#allocation2 + $0x1a8] sm:$0xff]  ;;  %v520_v12 = vld [vmem:[#allocation5 + $0xac0] sm:$0xff] }
 0x30f   :  { %12644 = vmatprep.subr.bf16.mxu0 %v12643_v45  ;;  %v262_v45 = vld [vmem:[#allocation5 + $0x2b0] sm:$0xff] }
 0x310   :  { %v1642_v51 = vrot.slane %v1628_v43, %v13505_v17  ;;  %v12157_v55 = vpack.c.bf16 %v518_v46, %v262_v45  ;;  %v522_v43 = vld [vmem:[#allocation5 + $0xad0] sm:$0xff]  ;;  %v648_v45 = vld [vmem:[#allocation5 + $0xec0] sm:$0xff]  ;;  %v779_v46 = vld [vmem:[#allocation5 + $0x12d8] sm:$0xff] }
 0x314   :  { %5480 = vmatmul.mubr.f32.vlgmr.msra.gmra.mrb[0].mxu1 %v1618_v24  ;;  %v2169_v24 = vrot.slane %v2155_v13, %v13505_v17  ;;  %v390_v13 = vld [vmem:[#allocation5 + $0x6b0] sm:$0xff] }
 0x315   :  { %12142 = vmatpush1.bf16.xpose.msra.mxu1 %v12141_v58  ;;  %9890 = vmatmul.mubr.f32.vlgmr.msra.gmra.mrb[0].mxu0 %v2152_v27  ;;  %v12151_v27 = vpack.c.bf16 %v1029_v20, %v773_v19  ;;  %v12663_v58 = vpack.c.bf16 %v1157_v53, %v901_v52  ;;  %v903_v19 = vld [vmem:[#allocation5 + $0x16b8] sm:$0xff]  ;;  %v12669_v23 = vpack.c.bf16 %v646_v14, %v390_v13  ;;  %v1037_v13 = vld [vmem:[#allocation5 + $0x1ae8] sm:$0xff] }
 0x316   :  { %12646 = vmatpush1.bf16.xpose.msra.mxu0 %v12645_v59  ;;  %12144 = vmatprep.subr.bf16.mxu1 %v12143_v60  ;;  %v2171_v30 = vcombine.high %v2169_v24, %v2169_v24  ;;  %v1644_v59 = vcombine.high %v1642_v51, %v1642_v51  ;;  %v1159_v20 = vld [vmem:[#allocation5 + $0x1eb8] sm:$0xff] }
 0x317   :  { %12648 = vmatprep.subr.bf16.mxu0 %v12647_v61  ;;  %5549 = vmatprep.mubr.f32.mxu1 %v1627_v62  ;;  %v774_v61 = vld [vmem:[#allocation5 + $0x12b0] sm:$0xff] }
 0x318   :  { %9959 = vmatprep.mubr.f32.mxu0 %v2170_v63  ;;  %v1030_v62 = vld [vmem:[#allocation5 + $0x1ab0] sm:$0xff]  ;;  %v900_v63 = vld [vmem:[#allocation5 + $0x16a0] sm:$0xff] }
 0x319   :  { %v12161_v5 = vpack.c.bf16 %v1030_v62, %v774_v61  ;;  %v12665_v6 = vpack.c.bf16 %v1156_v0, %v900_v63  ;;  %v1160_v61 = vld [vmem:[#allocation5 + $0x1ec0] sm:$0xff]  ;;  %v269_v62 = vld [vmem:[#allocation5 + $0x2e8] sm:$0xff]  ;;  %v395_v0 = vld [vmem:[#allocation5 + $0x6d8] sm:$0xff] }
 0x31a   :  { %v525_v63 = vld [vmem:[#allocation5 + $0xae8] sm:$0xff] }
 0x31d   :  { %12146 = vmatpush1.bf16.xpose.msra.mxu1 %v12145_v8  ;;  %v12667_v8 = vpack.c.bf16 %v647_v4, %v391_v3  ;;  %v12179_v4 = vpack.c.bf16 %v525_v63, %v269_v62  ;;  %v655_v62 = vld [vmem:[#allocation5 + $0xef8] sm:$0xff] }
 0x31e   :  { %12650 = vmatpush1.bf16.xpose.msra.mxu0 %v12649_v9  ;;  %12148 = vmatprep.subr.bf16.mxu1 %v12147_v10  ;;  %v134_v9 = vld [vmem:[#allocation2 + $0xb0] sm:$0xff]  ;;  %v2172_v10 = vcombine.high %v165_v44, %v165_v44 }
 0x31f   :  { %12652 = vmatprep.subr.bf16.mxu0 %v12651_v11  ;;  %v264_v11 = vld [vmem:[#allocation5 + $0x2c0] sm:$0xff]  ;;  %v1652_v18 = vrot.slane %v134_v9, %v13505_v17 }
 0x320   :  { %v12165_v22 = vpack.c.bf16 %v520_v12, %v264_v11  ;;  %v650_v11 = vld [vmem:[#allocation5 + $0xed0] sm:$0xff]  ;;  %v781_v12 = vld [vmem:[#allocation5 + $0x12e8] sm:$0xff] }
 0x324   :  { %5550 = vmatmul.mubr.f32.vlgmr.msra.gmra.mrb[0].mxu1 %v1625_v54  ;;  %v2179_v54 = vrot.slane %v165_v44, %v13505_v17  ;;  %v392_v44 = vld [vmem:[#allocation5 + $0x6c0] sm:$0xff] }
 0x325   :  { %12150 = vmatpush1.bf16.xpose.msra.mxu1 %v12149_v25  ;;  %9960 = vmatmul.mubr.f32.vlgmr.msra.gmra.mrb[0].mxu0 %v2162_v57  ;;  %v12159_v57 = vpack.c.bf16 %v1031_v50, %v775_v49  ;;  %v12671_v25 = vpack.c.bf16 %v1159_v20, %v903_v19  ;;  %v905_v49 = vld [vmem:[#allocation5 + $0x16c8] sm:$0xff]  ;;  %v12677_v53 = vpack.c.bf16 %v648_v45, %v392_v44  ;;  %v1039_v44 = vld [vmem:[#allocation5 + $0x1af8] sm:$0xff] }
 0x326   :  { %12654 = vmatpush1.bf16.xpose.msra.mxu0 %v12653_v26  ;;  %12152 = vmatprep.subr.bf16.mxu1 %v12151_v27  ;;  %v2187_v60 = vcombine.high %v2179_v54, %v2179_v54  ;;  %v1660_v26 = vcombine.high %v1652_v18, %v1652_v18  ;;  %v1161_v50 = vld [vmem:[#allocation5 + $0x1ec8] sm:$0xff] }
 0x327   :  { %12656 = vmatprep.subr.bf16.mxu0 %v12655_v28  ;;  %5619 = vmatprep.mubr.f32.mxu1 %v1643_v29  ;;  %v776_v28 = vld [vmem:[#allocation5 + $0x12c0] sm:$0xff] }
 0x328   :  { %10029 = vmatprep.mubr.f32.mxu0 %v2171_v30  ;;  %v1032_v29 = vld [vmem:[#allocation5 + $0x1ac0] sm:$0xff]  ;;  %v902_v30 = vld [vmem:[#allocation5 + $0x16b0] sm:$0xff] }
 0x329   :  { %v12169_v36 = vpack.c.bf16 %v1032_v29, %v776_v28  ;;  %v12673_v37 = vpack.c.bf16 %v1158_v31, %v902_v30  ;;  %v1162_v28 = vld [vmem:[#allocation5 + $0x1ed0] sm:$0xff]  ;;  %v271_v29 = vld [vmem:[#allocation5 + $0x2f8] sm:$0xff]  ;;  %v397_v31 = vld [vmem:[#allocation5 + $0x6e8] sm:$0xff] }
 0x32a   :  { %v527_v30 = vld [vmem:[#allocation5 + $0xaf8] sm:$0xff] }
 0x32d   :  { %12154 = vmatpush1.bf16.xpose.msra.mxu1 %v12153_v39  ;;  %v12675_v39 = vpack.c.bf16 %v649_v35, %v393_v34  ;;  %v12187_v35 = vpack.c.bf16 %v527_v30, %v271_v29  ;;  %v657_v29 = vld [vmem:[#allocation5 + $0xf08] sm:$0xff] }
 0x32e   :  { %12658 = vmatpush1.bf16.xpose.msra.mxu0 %v12657_v40  ;;  %12156 = vmatprep.subr.bf16.mxu1 %v12155_v41  ;;  %v1645_v40 = vcombine.high %v134_v9, %v134_v9  ;;  %v166_v41 = vld [vmem:[#allocation2 + $0x1b0] sm:$0xff]  ;;  %v524_v9 = vld [vmem:[#allocation5 + $0xae0] sm:$0xff] }
 0x32f   :  { %12660 = vmatprep.subr.bf16.mxu0 %v12659_v42  ;;  %v266_v42 = vld [vmem:[#allocation5 + $0x2d0] sm:$0xff] }
 0x330   :  { %v1659_v48 = vrot.slane %v1645_v40, %v13505_v17  ;;  %v12173_v52 = vpack.c.bf16 %v522_v43, %v266_v42  ;;  %v526_v40 = vld [vmem:[#allocation5 + $0xaf0] sm:$0xff]  ;;  %v652_v42 = vld [vmem:[#allocation5 + $0xee0] sm:$0xff]  ;;  %v783_v43 = vld [vmem:[#allocation5 + $0x12f8] sm:$0xff] }
 0x334   :  { %5620 = vmatmul.mubr.f32.vlgmr.msra.gmra.mrb[0].mxu1 %v1635_v21  ;;  %v2186_v21 = vrot.slane %v2172_v10, %v13505_v17  ;;  %v394_v10 = vld [vmem:[#allocation5 + $0x6d0] sm:$0xff] }
 0x335   :  { %12158 = vmatpush1.bf16.xpose.msra.mxu1 %v12157_v55  ;;  %10030 = vmatmul.mubr.f32.vlgmr.msra.gmra.mrb[0].mxu0 %v2169_v24  ;;  %v12167_v24 = vpack.c.bf16 %v1033_v16, %v777_v15  ;;  %v12679_v55 = vpack.c.bf16 %v1161_v50, %v905_v49  ;;  %v907_v15 = vld [vmem:[#allocation5 + $0x16d8] sm:$0xff]  ;;  %v12685_v20 = vpack.c.bf16 %v650_v11, %v394_v10  ;;  %v1041_v10 = vld [vmem:[#allocation5 + $0x1b08] sm:$0xff] }
 0x336   :  { %12662 = vmatpush1.bf16.xpose.msra.mxu0 %v12661_v56  ;;  %12160 = vmatprep.subr.bf16.mxu1 %v12159_v57  ;;  %v2188_v27 = vcombine.high %v2186_v21, %v2186_v21  ;;  %v1661_v56 = vcombine.high %v1659_v48, %v1659_v48  ;;  %v1163_v16 = vld [vmem:[#allocation5 + $0x1ed8] sm:$0xff] }
 0x337   :  { %12664 = vmatprep.subr.bf16.mxu0 %v12663_v58  ;;  %5689 = vmatprep.mubr.f32.mxu1 %v1644_v59  ;;  %v778_v58 = vld [vmem:[#allocation5 + $0x12d0] sm:$0xff] }
 0x338   :  { %10099 = vmatprep.mubr.f32.mxu0 %v2187_v60  ;;  %v1034_v59 = vld [vmem:[#allocation5 + $0x1ad0] sm:$0xff]  ;;  %v904_v60 = vld [vmem:[#allocation5 + $0x16c0] sm:$0xff] }
 0x339   :  { %v12177_v2 = vpack.c.bf16 %v1034_v59, %v778_v58  ;;  %v12681_v3 = vpack.c.bf16 %v1160_v61, %v904_v60  ;;  %v1164_v58 = vld [vmem:[#allocation5 + $0x1ee0] sm:$0xff]  ;;  %v273_v59 = vld [vmem:[#allocation5 + $0x308] sm:$0xff]  ;;  %v399_v61 = vld [vmem:[#allocation5 + $0x6f8] sm:$0xff] }
 0x33a   :  { %v529_v60 = vld [vmem:[#allocation5 + $0xb08] sm:$0xff] }
 0x33d   :  { %12162 = vmatpush1.bf16.xpose.msra.mxu1 %v12161_v5  ;;  %v12683_v5 = vpack.c.bf16 %v651_v1, %v395_v0  ;;  %v12195_v1 = vpack.c.bf16 %v529_v60, %v273_v59  ;;  %v659_v59 = vld [vmem:[#allocation5 + $0xf18] sm:$0xff] }
 0x33e   :  { %12666 = vmatpush1.bf16.xpose.msra.mxu0 %v12665_v6  ;;  %12164 = vmatprep.subr.bf16.mxu1 %v12163_v7  ;;  %v135_v6 = vld [vmem:[#allocation2 + $0xb8] sm:$0xff]  ;;  %v2189_v7 = vcombine.high %v166_v41, %v166_v41 }
 0x33f   :  { %12668 = vmatprep.subr.bf16.mxu0 %v12667_v8  ;;  %v268_v8 = vld [vmem:[#allocation5 + $0x2e0] sm:$0xff]  ;;  %v1669_v14 = vrot.slane %v135_v6, %v13505_v17 }
 0x340   :  { %v12181_v19 = vpack.c.bf16 %v524_v9, %v268_v8  ;;  %v654_v8 = vld [vmem:[#allocation5 + $0xef0] sm:$0xff]  ;;  %v785_v9 = vld [vmem:[#allocation5 + $0x1308] sm:$0xff] }
 0x344   :  { %5690 = vmatmul.mubr.f32.vlgmr.msra.gmra.mrb[0].mxu1 %v1642_v51  ;;  %v2196_v51 = vrot.slane %v166_v41, %v13505_v17  ;;  %v396_v41 = vld [vmem:[#allocation5 + $0x6e0] sm:$0xff] }
 0x345   :  { %12166 = vmatpush1.bf16.xpose.msra.mxu1 %v12165_v22  ;;  %10100 = vmatmul.mubr.f32.vlgmr.msra.gmra.mrb[0].mxu0 %v2179_v54  ;;  %v12175_v54 = vpack.c.bf16 %v1035_v47, %v779_v46  ;;  %v12687_v22 = vpack.c.bf16 %v1163_v16, %v907_v15  ;;  %v909_v46 = vld [vmem:[#allocation5 + $0x16e8] sm:$0xff]  ;;  %v12693_v50 = vpack.c.bf16 %v652_v42, %v396_v41  ;;  %v1043_v41 = vld [vmem:[#allocation5 + $0x1b18] sm:$0xff] }
 0x346   :  { %12670 = vmatpush1.bf16.xpose.msra.mxu0 %v12669_v23  ;;  %12168 = vmatprep.subr.bf16.mxu1 %v12167_v24  ;;  %v2204_v57 = vcombine.high %v2196_v51, %v2196_v51  ;;  %v1677_v23 = vcombine.high %v1669_v14, %v1669_v14  ;;  %v1165_v47 = vld [vmem:[#allocation5 + $0x1ee8] sm:$0xff] }
 0x347   :  { %12672 = vmatprep.subr.bf16.mxu0 %v12671_v25  ;;  %5759 = vmatprep.mubr.f32.mxu1 %v1660_v26  ;;  %v780_v25 = vld [vmem:[#allocation5 + $0x12e0] sm:$0xff] }
 0x348   :  { %10169 = vmatprep.mubr.f32.mxu0 %v2188_v27  ;;  %v1036_v26 = vld [vmem:[#allocation5 + $0x1ae0] sm:$0xff]  ;;  %v906_v27 = vld [vmem:[#allocation5 + $0x16d0] sm:$0xff] }
 0x349   :  { %v12185_v33 = vpack.c.bf16 %v1036_v26, %v780_v25  ;;  %v12689_v34 = vpack.c.bf16 %v1162_v28, %v906_v27  ;;  %v1166_v25 = vld [vmem:[#allocation5 + $0x1ef0] sm:$0xff]  ;;  %v275_v26 = vld [vmem:[#allocation5 + $0x318] sm:$0xff]  ;;  %v401_v28 = vld [vmem:[#allocation5 + $0x708] sm:$0xff] }
 0x34a   :  { %v531_v27 = vld [vmem:[#allocation5 + $0xb18] sm:$0xff] }
 0x34d   :  { %12170 = vmatpush1.bf16.xpose.msra.mxu1 %v12169_v36  ;;  %v12691_v36 = vpack.c.bf16 %v653_v32, %v397_v31  ;;  %v12203_v32 = vpack.c.bf16 %v531_v27, %v275_v26  ;;  %v661_v26 = vld [vmem:[#allocation5 + $0xf28] sm:$0xff] }
 0x34e   :  { %12674 = vmatpush1.bf16.xpose.msra.mxu0 %v12673_v37  ;;  %12172 = vmatprep.subr.bf16.mxu1 %v12171_v38  ;;  %v1662_v37 = vcombine.high %v135_v6, %v135_v6  ;;  %v167_v38 = vld [vmem:[#allocation2 + $0x1b8] sm:$0xff]  ;;  %v528_v6 = vld [vmem:[#allocation5 + $0xb00] sm:$0xff] }
 0x34f   :  { %12676 = vmatprep.subr.bf16.mxu0 %v12675_v39  ;;  %v270_v39 = vld [vmem:[#allocation5 + $0x2f0] sm:$0xff] }
 0x350   :  { %v1676_v45 = vrot.slane %v1662_v37, %v13505_v17  ;;  %v12189_v49 = vpack.c.bf16 %v526_v40, %v270_v39  ;;  %v530_v37 = vld [vmem:[#allocation5 + $0xb10] sm:$0xff]  ;;  %v656_v39 = vld [vmem:[#allocation5 + $0xf00] sm:$0xff]  ;;  %v787_v40 = vld [vmem:[#allocation5 + $0x1318] sm:$0xff] }
 0x354   :  { %5760 = vmatmul.mubr.f32.vlgmr.msra.gmra.mrb[0].mxu1 %v1652_v18  ;;  %v2203_v18 = vrot.slane %v2189_v7, %v13505_v17  ;;  %v398_v7 = vld [vmem:[#allocation5 + $0x6f0] sm:$0xff] }
 0x355   :  { %12174 = vmatpush1.bf16.xpose.msra.mxu1 %v12173_v52  ;;  %10170 = vmatmul.mubr.f32.vlgmr.msra.gmra.mrb[0].mxu0 %v2186_v21  ;;  %v12183_v21 = vpack.c.bf16 %v1037_v13, %v781_v12  ;;  %v12695_v52 = vpack.c.bf16 %v1165_v47, %v909_v46  ;;  %v911_v12 = vld [vmem:[#allocation5 + $0x16f8] sm:$0xff]  ;;  %v12701_v16 = vpack.c.bf16 %v654_v8, %v398_v7  ;;  %v1045_v7 = vld [vmem:[#allocation5 + $0x1b28] sm:$0xff] }
 0x356   :  { %12678 = vmatpush1.bf16.xpose.msra.mxu0 %v12677_v53  ;;  %12176 = vmatprep.subr.bf16.mxu1 %v12175_v54  ;;  %v2205_v24 = vcombine.high %v2203_v18, %v2203_v18  ;;  %v1678_v53 = vcombine.high %v1676_v45, %v1676_v45  ;;  %v1167_v13 = vld [vmem:[#allocation5 + $0x1ef8] sm:$0xff] }
 0x357   :  { %12680 = vmatprep.subr.bf16.mxu0 %v12679_v55  ;;  %5829 = vmatprep.mubr.f32.mxu1 %v1661_v56  ;;  %v782_v55 = vld [vmem:[#allocation5 + $0x12f0] sm:$0xff] }
 0x358   :  { %10239 = vmatprep.mubr.f32.mxu0 %v2204_v57  ;;  %v1038_v56 = vld [vmem:[#allocation5 + $0x1af0] sm:$0xff]  ;;  %v908_v57 = vld [vmem:[#allocation5 + $0x16e0] sm:$0xff] }
 0x359   :  { %v12193_v63 = vpack.c.bf16 %v1038_v56, %v782_v55  ;;  %v12697_v0 = vpack.c.bf16 %v1164_v58, %v908_v57  ;;  %v1168_v55 = vld [vmem:[#allocation5 + $0x1f00] sm:$0xff]  ;;  %v277_v56 = vld [vmem:[#allocation5 + $0x328] sm:$0xff]  ;;  %v403_v58 = vld [vmem:[#allocation5 + $0x718] sm:$0xff] }
 0x35a   :  { %v533_v57 = vld [vmem:[#allocation5 + $0xb28] sm:$0xff] }
 0x35d   :  { %12178 = vmatpush1.bf16.xpose.msra.mxu1 %v12177_v2  ;;  %v12699_v2 = vpack.c.bf16 %v655_v62, %v399_v61  ;;  %v12211_v62 = vpack.c.bf16 %v533_v57, %v277_v56  ;;  %v663_v56 = vld [vmem:[#allocation5 + $0xf38] sm:$0xff] }
 0x35e   :  { %12682 = vmatpush1.bf16.xpose.msra.mxu0 %v12681_v3  ;;  %12180 = vmatprep.subr.bf16.mxu1 %v12179_v4  ;;  %v136_v3 = vld [vmem:[#allocation2 + $0xc0] sm:$0xff]  ;;  %v2206_v4 = vcombine.high %v167_v38, %v167_v38 }
 0x35f   :  { %12684 = vmatprep.subr.bf16.mxu0 %v12683_v5  ;;  %v272_v5 = vld [vmem:[#allocation5 + $0x300] sm:$0xff]  ;;  %v1686_v11 = vrot.slane %v136_v3, %v13505_v17 }
 0x360   :  { %v12197_v15 = vpack.c.bf16 %v528_v6, %v272_v5  ;;  %v658_v5 = vld [vmem:[#allocation5 + $0xf10] sm:$0xff]  ;;  %v789_v6 = vld [vmem:[#allocation5 + $0x1328] sm:$0xff] }
 0x364   :  { %5830 = vmatmul.mubr.f32.vlgmr.msra.gmra.mrb[0].mxu1 %v1659_v48  ;;  %v2213_v48 = vrot.slane %v167_v38, %v13505_v17  ;;  %v400_v38 = vld [vmem:[#allocation5 + $0x700] sm:$0xff] }
 0x365   :  { %12182 = vmatpush1.bf16.xpose.msra.mxu1 %v12181_v19  ;;  %10240 = vmatmul.mubr.f32.vlgmr.msra.gmra.mrb[0].mxu0 %v2196_v51  ;;  %v12191_v51 = vpack.c.bf16 %v1039_v44, %v783_v43  ;;  %v12703_v19 = vpack.c.bf16 %v1167_v13, %v911_v12  ;;  %v913_v43 = vld [vmem:[#allocation5 + $0x1708] sm:$0xff]  ;;  %v12709_v47 = vpack.c.bf16 %v656_v39, %v400_v38  ;;  %v1047_v38 = vld [vmem:[#allocation5 + $0x1b38] sm:$0xff] }
 0x366   :  { %12686 = vmatpush1.bf16.xpose.msra.mxu0 %v12685_v20  ;;  %12184 = vmatprep.subr.bf16.mxu1 %v12183_v21  ;;  %v2221_v54 = vcombine.high %v2213_v48, %v2213_v48  ;;  %v1694_v20 = vcombine.high %v1686_v11, %v1686_v11  ;;  %v1169_v44 = vld [vmem:[#allocation5 + $0x1f08] sm:$0xff] }
 0x367   :  { %12688 = vmatprep.subr.bf16.mxu0 %v12687_v22  ;;  %5899 = vmatprep.mubr.f32.mxu1 %v1677_v23  ;;  %v784_v22 = vld [vmem:[#allocation5 + $0x1300] sm:$0xff] }
 0x368   :  { %10309 = vmatprep.mubr.f32.mxu0 %v2205_v24  ;;  %v1040_v23 = vld [vmem:[#allocation5 + $0x1b00] sm:$0xff]  ;;  %v910_v24 = vld [vmem:[#allocation5 + $0x16f0] sm:$0xff] }
 0x369   :  { %v12201_v30 = vpack.c.bf16 %v1040_v23, %v784_v22  ;;  %v12705_v31 = vpack.c.bf16 %v1166_v25, %v910_v24  ;;  %v1170_v22 = vld [vmem:[#allocation5 + $0x1f10] sm:$0xff]  ;;  %v279_v23 = vld [vmem:[#allocation5 + $0x338] sm:$0xff]  ;;  %v405_v25 = vld [vmem:[#allocation5 + $0x728] sm:$0xff] }
 0x36a   :  { %v535_v24 = vld [vmem:[#allocation5 + $0xb38] sm:$0xff] }
 0x36d   :  { %12186 = vmatpush1.bf16.xpose.msra.mxu1 %v12185_v33  ;;  %v12707_v33 = vpack.c.bf16 %v657_v29, %v401_v28  ;;  %v12219_v29 = vpack.c.bf16 %v535_v24, %v279_v23  ;;  %v665_v23 = vld [vmem:[#allocation5 + $0xf48] sm:$0xff] }
 0x36e   :  { %12690 = vmatpush1.bf16.xpose.msra.mxu0 %v12689_v34  ;;  %12188 = vmatprep.subr.bf16.mxu1 %v12187_v35  ;;  %v1679_v34 = vcombine.high %v136_v3, %v136_v3  ;;  %v168_v35 = vld [vmem:[#allocation2 + $0x1c0] sm:$0xff] }
 0x36f   :  { %12692 = vmatprep.subr.bf16.mxu0 %v12691_v36  ;;  %v274_v36 = vld [vmem:[#allocation5 + $0x310] sm:$0xff]  ;;  %v532_v3 = vld [vmem:[#allocation5 + $0xb20] sm:$0xff] }
 0x370   :  { %v1693_v42 = vrot.slane %v1679_v34, %v13505_v17  ;;  %v12205_v46 = vpack.c.bf16 %v530_v37, %v274_v36  ;;  %v534_v34 = vld [vmem:[#allocation5 + $0xb30] sm:$0xff]  ;;  %v660_v36 = vld [vmem:[#allocation5 + $0xf20] sm:$0xff]  ;;  %v791_v37 = vld [vmem:[#allocation5 + $0x1338] sm:$0xff] }
 0x374   :  { %5900 = vmatmul.mubr.f32.vlgmr.msra.gmra.mrb[0].mxu1 %v1669_v14  ;;  %v2220_v14 = vrot.slane %v2206_v4, %v13505_v17  ;;  %v402_v4 = vld [vmem:[#allocation5 + $0x710] sm:$0xff] }
 0x375   :  { %12190 = vmatpush1.bf16.xpose.msra.mxu1 %v12189_v49  ;;  %10310 = vmatmul.mubr.f32.vlgmr.msra.gmra.mrb[0].mxu0 %v2203_v18  ;;  %v12199_v18 = vpack.c.bf16 %v1041_v10, %v785_v9  ;;  %v12711_v49 = vpack.c.bf16 %v1169_v44, %v913_v43  ;;  %v915_v9 = vld [vmem:[#allocation5 + $0x1718] sm:$0xff]  ;;  %v12717_v13 = vpack.c.bf16 %v658_v5, %v402_v4  ;;  %v1049_v4 = vld [vmem:[#allocation5 + $0x1b48] sm:$0xff] }
 0x376   :  { %12694 = vmatpush1.bf16.xpose.msra.mxu0 %v12693_v50  ;;  %12192 = vmatprep.subr.bf16.mxu1 %v12191_v51  ;;  %v2222_v21 = vcombine.high %v2220_v14, %v2220_v14  ;;  %v1695_v50 = vcombine.high %v1693_v42, %v1693_v42  ;;  %v1171_v10 = vld [vmem:[#allocation5 + $0x1f18] sm:$0xff] }
 0x377   :  { %12696 = vmatprep.subr.bf16.mxu0 %v12695_v52  ;;  %5969 = vmatprep.mubr.f32.mxu1 %v1678_v53  ;;  %v786_v52 = vld [vmem:[#allocation5 + $0x1310] sm:$0xff] }
 0x378   :  { %10379 = vmatprep.mubr.f32.mxu0 %v2221_v54  ;;  %v1042_v53 = vld [vmem:[#allocation5 + $0x1b10] sm:$0xff]  ;;  %v912_v54 = vld [vmem:[#allocation5 + $0x1700] sm:$0xff] }
 0x379   :  { %v12209_v60 = vpack.c.bf16 %v1042_v53, %v786_v52  ;;  %v12713_v61 = vpack.c.bf16 %v1168_v55, %v912_v54  ;;  %v1172_v52 = vld [vmem:[#allocation5 + $0x1f20] sm:$0xff]  ;;  %v281_v53 = vld [vmem:[#allocation5 + $0x348] sm:$0xff]  ;;  %v407_v55 = vld [vmem:[#allocation5 + $0x738] sm:$0xff] }
 0x37a   :  { %v537_v54 = vld [vmem:[#allocation5 + $0xb48] sm:$0xff] }
 0x37d   :  { %12194 = vmatpush1.bf16.xpose.msra.mxu1 %v12193_v63  ;;  %v12715_v63 = vpack.c.bf16 %v659_v59, %v403_v58  ;;  %v12227_v59 = vpack.c.bf16 %v537_v54, %v281_v53  ;;  %v667_v53 = vld [vmem:[#allocation5 + $0xf58] sm:$0xff] }
 0x37e   :  { %12698 = vmatpush1.bf16.xpose.msra.mxu0 %v12697_v0  ;;  %12196 = vmatprep.subr.bf16.mxu1 %v12195_v1  ;;  %v137_v0 = vld [vmem:[#allocation2 + $0xc8] sm:$0xff]  ;;  %v2223_v1 = vcombine.high %v168_v35, %v168_v35 }
 0x37f   :  { %12700 = vmatprep.subr.bf16.mxu0 %v12699_v2  ;;  %v276_v2 = vld [vmem:[#allocation5 + $0x320] sm:$0xff]  ;;  %v1703_v8 = vrot.slane %v137_v0, %v13505_v17 }
 0x380   :  { %v12213_v12 = vpack.c.bf16 %v532_v3, %v276_v2  ;;  %v662_v2 = vld [vmem:[#allocation5 + $0xf30] sm:$0xff]  ;;  %v793_v3 = vld [vmem:[#allocation5 + $0x1348] sm:$0xff] }
 0x384   :  { %5970 = vmatmul.mubr.f32.vlgmr.msra.gmra.mrb[0].mxu1 %v1676_v45  ;;  %v2230_v45 = vrot.slane %v168_v35, %v13505_v17  ;;  %v404_v35 = vld [vmem:[#allocation5 + $0x720] sm:$0xff] }
 0x385   :  { %12198 = vmatpush1.bf16.xpose.msra.mxu1 %v12197_v15  ;;  %10380 = vmatmul.mubr.f32.vlgmr.msra.gmra.mrb[0].mxu0 %v2213_v48  ;;  %v12207_v48 = vpack.c.bf16 %v1043_v41, %v787_v40  ;;  %v12719_v15 = vpack.c.bf16 %v1171_v10, %v915_v9  ;;  %v917_v40 = vld [vmem:[#allocation5 + $0x1728] sm:$0xff]  ;;  %v12725_v44 = vpack.c.bf16 %v660_v36, %v404_v35  ;;  %v1051_v35 = vld [vmem:[#allocation5 + $0x1b58] sm:$0xff] }
 0x386   :  { %12702 = vmatpush1.bf16.xpose.msra.mxu0 %v12701_v16  ;;  %12200 = vmatprep.subr.bf16.mxu1 %v12199_v18  ;;  %v2238_v51 = vcombine.high %v2230_v45, %v2230_v45  ;;  %v1711_v16 = vcombine.high %v1703_v8, %v1703_v8  ;;  %v1173_v41 = vld [vmem:[#allocation5 + $0x1f28] sm:$0xff] }
 0x387   :  { %12704 = vmatprep.subr.bf16.mxu0 %v12703_v19  ;;  %6039 = vmatprep.mubr.f32.mxu1 %v1694_v20  ;;  %v788_v19 = vld [vmem:[#allocation5 + $0x1320] sm:$0xff] }
 0x388   :  { %10449 = vmatprep.mubr.f32.mxu0 %v2222_v21  ;;  %v1044_v20 = vld [vmem:[#allocation5 + $0x1b20] sm:$0xff]  ;;  %v914_v21 = vld [vmem:[#allocation5 + $0x1710] sm:$0xff] }
 0x389   :  { %v12217_v27 = vpack.c.bf16 %v1044_v20, %v788_v19  ;;  %v12721_v28 = vpack.c.bf16 %v1170_v22, %v914_v21  ;;  %v1174_v19 = vld [vmem:[#allocation5 + $0x1f30] sm:$0xff]  ;;  %v283_v20 = vld [vmem:[#allocation5 + $0x358] sm:$0xff]  ;;  %v409_v22 = vld [vmem:[#allocation5 + $0x748] sm:$0xff] }
 0x38a   :  { %v539_v21 = vld [vmem:[#allocation5 + $0xb58] sm:$0xff] }
 0x38d   :  { %12202 = vmatpush1.bf16.xpose.msra.mxu1 %v12201_v30  ;;  %v12723_v30 = vpack.c.bf16 %v661_v26, %v405_v25  ;;  %v12235_v26 = vpack.c.bf16 %v539_v21, %v283_v20  ;;  %v669_v20 = vld [vmem:[#allocation5 + $0xf68] sm:$0xff] }
 0x38e   :  { %12706 = vmatpush1.bf16.xpose.msra.mxu0 %v12705_v31  ;;  %12204 = vmatprep.subr.bf16.mxu1 %v12203_v32  ;;  %v1696_v31 = vcombine.high %v137_v0, %v137_v0  ;;  %v169_v32 = vld [vmem:[#allocation2 + $0x1c8] sm:$0xff]  ;;  %v536_v0 = vld [vmem:[#allocation5 + $0xb40] sm:$0xff] }
 0x38f   :  { %12708 = vmatprep.subr.bf16.mxu0 %v12707_v33  ;;  %v278_v33 = vld [vmem:[#allocation5 + $0x330] sm:$0xff] }
 0x390   :  { %v1710_v39 = vrot.slane %v1696_v31, %v13505_v17  ;;  %v12221_v43 = vpack.c.bf16 %v534_v34, %v278_v33  ;;  %v538_v31 = vld [vmem:[#allocation5 + $0xb50] sm:$0xff]  ;;  %v664_v33 = vld [vmem:[#allocation5 + $0xf40] sm:$0xff]  ;;  %v795_v34 = vld [vmem:[#allocation5 + $0x1358] sm:$0xff] }
 0x394   :  { %6040 = vmatmul.mubr.f32.vlgmr.msra.gmra.mrb[0].mxu1 %v1686_v11  ;;  %v2237_v11 = vrot.slane %v2223_v1, %v13505_v17  ;;  %v406_v1 = vld [vmem:[#allocation5 + $0x730] sm:$0xff] }
 0x395   :  { %12206 = vmatpush1.bf16.xpose.msra.mxu1 %v12205_v46  ;;  %10450 = vmatmul.mubr.f32.vlgmr.msra.gmra.mrb[0].mxu0 %v2220_v14  ;;  %v12215_v14 = vpack.c.bf16 %v1045_v7, %v789_v6  ;;  %v12727_v46 = vpack.c.bf16 %v1173_v41, %v917_v40  ;;  %v919_v6 = vld [vmem:[#allocation5 + $0x1738] sm:$0xff]  ;;  %v12733_v10 = vpack.c.bf16 %v662_v2, %v406_v1  ;;  %v1053_v1 = vld [vmem:[#allocation5 + $0x1b68] sm:$0xff] }
 0x396   :  { %12710 = vmatpush1.bf16.xpose.msra.mxu0 %v12709_v47  ;;  %12208 = vmatprep.subr.bf16.mxu1 %v12207_v48  ;;  %v2239_v18 = vcombine.high %v2237_v11, %v2237_v11  ;;  %v1712_v47 = vcombine.high %v1710_v39, %v1710_v39  ;;  %v1175_v7 = vld [vmem:[#allocation5 + $0x1f38] sm:$0xff] }
 0x397   :  { %12712 = vmatprep.subr.bf16.mxu0 %v12711_v49  ;;  %6109 = vmatprep.mubr.f32.mxu1 %v1695_v50  ;;  %v790_v49 = vld [vmem:[#allocation5 + $0x1330] sm:$0xff] }
 0x398   :  { %10519 = vmatprep.mubr.f32.mxu0 %v2238_v51  ;;  %v1046_v50 = vld [vmem:[#allocation5 + $0x1b30] sm:$0xff]  ;;  %v916_v51 = vld [vmem:[#allocation5 + $0x1720] sm:$0xff] }
 0x399   :  { %v12225_v57 = vpack.c.bf16 %v1046_v50, %v790_v49  ;;  %v12729_v58 = vpack.c.bf16 %v1172_v52, %v916_v51  ;;  %v1176_v49 = vld [vmem:[#allocation5 + $0x1f40] sm:$0xff]  ;;  %v285_v50 = vld [vmem:[#allocation5 + $0x368] sm:$0xff]  ;;  %v411_v52 = vld [vmem:[#allocation5 + $0x758] sm:$0xff] }
 0x39a   :  { %v541_v51 = vld [vmem:[#allocation5 + $0xb68] sm:$0xff] }
 0x39d   :  { %12210 = vmatpush1.bf16.xpose.msra.mxu1 %v12209_v60  ;;  %v12731_v60 = vpack.c.bf16 %v663_v56, %v407_v55  ;;  %v12243_v56 = vpack.c.bf16 %v541_v51, %v285_v50  ;;  %v671_v50 = vld [vmem:[#allocation5 + $0xf78] sm:$0xff] }
 0x39e   :  { %12714 = vmatpush1.bf16.xpose.msra.mxu0 %v12713_v61  ;;  %12212 = vmatprep.subr.bf16.mxu1 %v12211_v62  ;;  %v138_v61 = vld [vmem:[#allocation2 + $0xd0] sm:$0xff]  ;;  %v2240_v62 = vcombine.high %v169_v32, %v169_v32 }
 0x39f   :  { %12716 = vmatprep.subr.bf16.mxu0 %v12715_v63  ;;  %v280_v63 = vld [vmem:[#allocation5 + $0x340] sm:$0xff]  ;;  %v1720_v5 = vrot.slane %v138_v61, %v13505_v17 }
 0x3a0   :  { %v12229_v9 = vpack.c.bf16 %v536_v0, %v280_v63  ;;  %v666_v63 = vld [vmem:[#allocation5 + $0xf50] sm:$0xff]  ;;  %v797_v0 = vld [vmem:[#allocation5 + $0x1368] sm:$0xff] }
 0x3a4   :  { %6110 = vmatmul.mubr.f32.vlgmr.msra.gmra.mrb[0].mxu1 %v1693_v42  ;;  %v2247_v42 = vrot.slane %v169_v32, %v13505_v17  ;;  %v408_v32 = vld [vmem:[#allocation5 + $0x740] sm:$0xff] }
 0x3a5   :  { %12214 = vmatpush1.bf16.xpose.msra.mxu1 %v12213_v12  ;;  %10520 = vmatmul.mubr.f32.vlgmr.msra.gmra.mrb[0].mxu0 %v2230_v45  ;;  %v12223_v45 = vpack.c.bf16 %v1047_v38, %v791_v37  ;;  %v12735_v12 = vpack.c.bf16 %v1175_v7, %v919_v6  ;;  %v921_v37 = vld [vmem:[#allocation5 + $0x1748] sm:$0xff]  ;;  %v12741_v41 = vpack.c.bf16 %v664_v33, %v408_v32  ;;  %v1055_v32 = vld [vmem:[#allocation5 + $0x1b78] sm:$0xff] }
 0x3a6   :  { %12718 = vmatpush1.bf16.xpose.msra.mxu0 %v12717_v13  ;;  %12216 = vmatprep.subr.bf16.mxu1 %v12215_v14  ;;  %v2255_v48 = vcombine.high %v2247_v42, %v2247_v42  ;;  %v1728_v13 = vcombine.high %v1720_v5, %v1720_v5  ;;  %v1177_v38 = vld [vmem:[#allocation5 + $0x1f48] sm:$0xff] }
 0x3a7   :  { %12720 = vmatprep.subr.bf16.mxu0 %v12719_v15  ;;  %6179 = vmatprep.mubr.f32.mxu1 %v1711_v16  ;;  %v792_v15 = vld [vmem:[#allocation5 + $0x1340] sm:$0xff] }
 0x3a8   :  { %10589 = vmatprep.mubr.f32.mxu0 %v2239_v18  ;;  %v1048_v16 = vld [vmem:[#allocation5 + $0x1b40] sm:$0xff]  ;;  %v918_v18 = vld [vmem:[#allocation5 + $0x1730] sm:$0xff] }
 0x3a9   :  { %v12233_v24 = vpack.c.bf16 %v1048_v16, %v792_v15  ;;  %v12737_v25 = vpack.c.bf16 %v1174_v19, %v918_v18  ;;  %v1178_v15 = vld [vmem:[#allocation5 + $0x1f50] sm:$0xff]  ;;  %v287_v16 = vld [vmem:[#allocation5 + $0x378] sm:$0xff]  ;;  %v413_v19 = vld [vmem:[#allocation5 + $0x768] sm:$0xff] }
 0x3aa   :  { %v543_v18 = vld [vmem:[#allocation5 + $0xb78] sm:$0xff] }
 0x3ad   :  { %12218 = vmatpush1.bf16.xpose.msra.mxu1 %v12217_v27  ;;  %v12739_v27 = vpack.c.bf16 %v665_v23, %v409_v22  ;;  %v12251_v23 = vpack.c.bf16 %v543_v18, %v287_v16  ;;  %v673_v16 = vld [vmem:[#allocation5 + $0xf88] sm:$0xff] }
 0x3ae   :  { %12722 = vmatpush1.bf16.xpose.msra.mxu0 %v12721_v28  ;;  %12220 = vmatprep.subr.bf16.mxu1 %v12219_v29  ;;  %v1713_v28 = vcombine.high %v138_v61, %v138_v61  ;;  %v170_v29 = vld [vmem:[#allocation2 + $0x1d0] sm:$0xff]  ;;  %v540_v61 = vld [vmem:[#allocation5 + $0xb60] sm:$0xff] }
 0x3af   :  { %12724 = vmatprep.subr.bf16.mxu0 %v12723_v30  ;;  %v282_v30 = vld [vmem:[#allocation5 + $0x350] sm:$0xff] }
 0x3b0   :  { %v1727_v36 = vrot.slane %v1713_v28, %v13505_v17  ;;  %v12237_v40 = vpack.c.bf16 %v538_v31, %v282_v30  ;;  %v542_v28 = vld [vmem:[#allocation5 + $0xb70] sm:$0xff]  ;;  %v668_v30 = vld [vmem:[#allocation5 + $0xf60] sm:$0xff]  ;;  %v799_v31 = vld [vmem:[#allocation5 + $0x1378] sm:$0xff] }
 0x3b4   :  { %6180 = vmatmul.mubr.f32.vlgmr.msra.gmra.mrb[0].mxu1 %v1703_v8  ;;  %v2254_v8 = vrot.slane %v2240_v62, %v13505_v17  ;;  %v410_v62 = vld [vmem:[#allocation5 + $0x750] sm:$0xff] }
 0x3b5   :  { %12222 = vmatpush1.bf16.xpose.msra.mxu1 %v12221_v43  ;;  %10590 = vmatmul.mubr.f32.vlgmr.msra.gmra.mrb[0].mxu0 %v2237_v11  ;;  %v12231_v11 = vpack.c.bf16 %v1049_v4, %v793_v3  ;;  %v12743_v43 = vpack.c.bf16 %v1177_v38, %v921_v37  ;;  %v923_v3 = vld [vmem:[#allocation5 + $0x1758] sm:$0xff]  ;;  %v12749_v7 = vpack.c.bf16 %v666_v63, %v410_v62  ;;  %v1057_v62 = vld [vmem:[#allocation5 + $0x1b88] sm:$0xff] }
 0x3b6   :  { %12726 = vmatpush1.bf16.xpose.msra.mxu0 %v12725_v44  ;;  %12224 = vmatprep.subr.bf16.mxu1 %v12223_v45  ;;  %v2256_v14 = vcombine.high %v2254_v8, %v2254_v8  ;;  %v1729_v44 = vcombine.high %v1727_v36, %v1727_v36  ;;  %v1179_v4 = vld [vmem:[#allocation5 + $0x1f58] sm:$0xff] }
 0x3b7   :  { %12728 = vmatprep.subr.bf16.mxu0 %v12727_v46  ;;  %6249 = vmatprep.mubr.f32.mxu1 %v1712_v47  ;;  %v794_v46 = vld [vmem:[#allocation5 + $0x1350] sm:$0xff] }
 0x3b8   :  { %10659 = vmatprep.mubr.f32.mxu0 %v2255_v48  ;;  %v1050_v47 = vld [vmem:[#allocation5 + $0x1b50] sm:$0xff]  ;;  %v920_v48 = vld [vmem:[#allocation5 + $0x1740] sm:$0xff] }
 0x3b9   :  { %v12241_v54 = vpack.c.bf16 %v1050_v47, %v794_v46  ;;  %v12745_v55 = vpack.c.bf16 %v1176_v49, %v920_v48  ;;  %v1180_v46 = vld [vmem:[#allocation5 + $0x1f60] sm:$0xff]  ;;  %v289_v47 = vld [vmem:[#allocation5 + $0x388] sm:$0xff]  ;;  %v415_v49 = vld [vmem:[#allocation5 + $0x778] sm:$0xff] }
 0x3ba   :  { %v545_v48 = vld [vmem:[#allocation5 + $0xb88] sm:$0xff] }
 0x3bd   :  { %12226 = vmatpush1.bf16.xpose.msra.mxu1 %v12225_v57  ;;  %v12747_v57 = vpack.c.bf16 %v667_v53, %v411_v52  ;;  %v12259_v53 = vpack.c.bf16 %v545_v48, %v289_v47  ;;  %v675_v47 = vld [vmem:[#allocation5 + $0xf98] sm:$0xff] }
 0x3be   :  { %12730 = vmatpush1.bf16.xpose.msra.mxu0 %v12729_v58  ;;  %12228 = vmatprep.subr.bf16.mxu1 %v12227_v59  ;;  %v139_v58 = vld [vmem:[#allocation2 + $0xd8] sm:$0xff]  ;;  %v2257_v59 = vcombine.high %v170_v29, %v170_v29 }
 0x3bf   :  { %12732 = vmatprep.subr.bf16.mxu0 %v12731_v60  ;;  %v284_v60 = vld [vmem:[#allocation5 + $0x360] sm:$0xff]  ;;  %v1737_v2 = vrot.slane %v139_v58, %v13505_v17 }
 0x3c0   :  { %v12245_v6 = vpack.c.bf16 %v540_v61, %v284_v60  ;;  %v670_v60 = vld [vmem:[#allocation5 + $0xf70] sm:$0xff]  ;;  %v801_v61 = vld [vmem:[#allocation5 + $0x1388] sm:$0xff] }
 0x3c4   :  { %6250 = vmatmul.mubr.f32.vlgmr.msra.gmra.mrb[0].mxu1 %v1710_v39  ;;  %v2264_v39 = vrot.slane %v170_v29, %v13505_v17  ;;  %v412_v29 = vld [vmem:[#allocation5 + $0x760] sm:$0xff] }
 0x3c5   :  { %12230 = vmatpush1.bf16.xpose.msra.mxu1 %v12229_v9  ;;  %10660 = vmatmul.mubr.f32.vlgmr.msra.gmra.mrb[0].mxu0 %v2247_v42  ;;  %v12239_v42 = vpack.c.bf16 %v1051_v35, %v795_v34  ;;  %v12751_v9 = vpack.c.bf16 %v1179_v4, %v923_v3  ;;  %v925_v34 = vld [vmem:[#allocation5 + $0x1768] sm:$0xff]  ;;  %v12757_v38 = vpack.c.bf16 %v668_v30, %v412_v29  ;;  %v1059_v29 = vld [vmem:[#allocation5 + $0x1b98] sm:$0xff] }
 0x3c6   :  { %12734 = vmatpush1.bf16.xpose.msra.mxu0 %v12733_v10  ;;  %12232 = vmatprep.subr.bf16.mxu1 %v12231_v11  ;;  %v2272_v45 = vcombine.high %v2264_v39, %v2264_v39  ;;  %v1745_v10 = vcombine.high %v1737_v2, %v1737_v2  ;;  %v1181_v35 = vld [vmem:[#allocation5 + $0x1f68] sm:$0xff] }
 0x3c7   :  { %12736 = vmatprep.subr.bf16.mxu0 %v12735_v12  ;;  %6319 = vmatprep.mubr.f32.mxu1 %v1728_v13  ;;  %v796_v12 = vld [vmem:[#allocation5 + $0x1360] sm:$0xff] }
 0x3c8   :  { %10729 = vmatprep.mubr.f32.mxu0 %v2256_v14  ;;  %v1052_v13 = vld [vmem:[#allocation5 + $0x1b60] sm:$0xff]  ;;  %v922_v14 = vld [vmem:[#allocation5 + $0x1750] sm:$0xff] }
 0x3c9   :  { %v12249_v21 = vpack.c.bf16 %v1052_v13, %v796_v12  ;;  %v12753_v22 = vpack.c.bf16 %v1178_v15, %v922_v14  ;;  %v1182_v12 = vld [vmem:[#allocation5 + $0x1f70] sm:$0xff]  ;;  %v291_v13 = vld [vmem:[#allocation5 + $0x398] sm:$0xff]  ;;  %v417_v15 = vld [vmem:[#allocation5 + $0x788] sm:$0xff] }
 0x3ca   :  { %v547_v14 = vld [vmem:[#allocation5 + $0xb98] sm:$0xff] }
 0x3cd   :  { %12234 = vmatpush1.bf16.xpose.msra.mxu1 %v12233_v24  ;;  %v12755_v24 = vpack.c.bf16 %v669_v20, %v413_v19  ;;  %v12267_v20 = vpack.c.bf16 %v547_v14, %v291_v13  ;;  %v677_v13 = vld [vmem:[#allocation5 + $0xfa8] sm:$0xff] }
 0x3ce   :  { %12738 = vmatpush1.bf16.xpose.msra.mxu0 %v12737_v25  ;;  %12236 = vmatprep.subr.bf16.mxu1 %v12235_v26  ;;  %v1730_v25 = vcombine.high %v139_v58, %v139_v58  ;;  %v171_v26 = vld [vmem:[#allocation2 + $0x1d8] sm:$0xff]  ;;  %v544_v58 = vld [vmem:[#allocation5 + $0xb80] sm:$0xff] }
 0x3cf   :  { %12740 = vmatprep.subr.bf16.mxu0 %v12739_v27  ;;  %v286_v27 = vld [vmem:[#allocation5 + $0x370] sm:$0xff] }
 0x3d0   :  { %v1744_v33 = vrot.slane %v1730_v25, %v13505_v17  ;;  %v12253_v37 = vpack.c.bf16 %v542_v28, %v286_v27  ;;  %v546_v25 = vld [vmem:[#allocation5 + $0xb90] sm:$0xff]  ;;  %v672_v27 = vld [vmem:[#allocation5 + $0xf80] sm:$0xff]  ;;  %v803_v28 = vld [vmem:[#allocation5 + $0x1398] sm:$0xff] }
 0x3d4   :  { %6320 = vmatmul.mubr.f32.vlgmr.msra.gmra.mrb[0].mxu1 %v1720_v5  ;;  %v2271_v5 = vrot.slane %v2257_v59, %v13505_v17  ;;  %v414_v59 = vld [vmem:[#allocation5 + $0x770] sm:$0xff] }
 0x3d5   :  { %12238 = vmatpush1.bf16.xpose.msra.mxu1 %v12237_v40  ;;  %10730 = vmatmul.mubr.f32.vlgmr.msra.gmra.mrb[0].mxu0 %v2254_v8  ;;  %v12247_v8 = vpack.c.bf16 %v1053_v1, %v797_v0  ;;  %v12759_v40 = vpack.c.bf16 %v1181_v35, %v925_v34  ;;  %v927_v0 = vld [vmem:[#allocation5 + $0x1778] sm:$0xff]  ;;  %v12765_v4 = vpack.c.bf16 %v670_v60, %v414_v59  ;;  %v1061_v59 = vld [vmem:[#allocation5 + $0x1ba8] sm:$0xff] }
 0x3d6   :  { %12742 = vmatpush1.bf16.xpose.msra.mxu0 %v12741_v41  ;;  %12240 = vmatprep.subr.bf16.mxu1 %v12239_v42  ;;  %v2273_v11 = vcombine.high %v2271_v5, %v2271_v5  ;;  %v1746_v41 = vcombine.high %v1744_v33, %v1744_v33  ;;  %v1183_v1 = vld [vmem:[#allocation5 + $0x1f78] sm:$0xff] }
 0x3d7   :  { %12744 = vmatprep.subr.bf16.mxu0 %v12743_v43  ;;  %6389 = vmatprep.mubr.f32.mxu1 %v1729_v44  ;;  %v798_v43 = vld [vmem:[#allocation5 + $0x1370] sm:$0xff] }
 0x3d8   :  { %10799 = vmatprep.mubr.f32.mxu0 %v2272_v45  ;;  %v1054_v44 = vld [vmem:[#allocation5 + $0x1b70] sm:$0xff]  ;;  %v924_v45 = vld [vmem:[#allocation5 + $0x1760] sm:$0xff] }
 0x3d9   :  { %v12257_v51 = vpack.c.bf16 %v1054_v44, %v798_v43  ;;  %v12761_v52 = vpack.c.bf16 %v1180_v46, %v924_v45  ;;  %v1184_v43 = vld [vmem:[#allocation5 + $0x1f80] sm:$0xff]  ;;  %v293_v44 = vld [vmem:[#allocation5 + $0x3a8] sm:$0xff]  ;;  %v419_v46 = vld [vmem:[#allocation5 + $0x798] sm:$0xff] }
 0x3da   :  { %v549_v45 = vld [vmem:[#allocation5 + $0xba8] sm:$0xff] }
 0x3dd   :  { %12242 = vmatpush1.bf16.xpose.msra.mxu1 %v12241_v54  ;;  %v12763_v54 = vpack.c.bf16 %v671_v50, %v415_v49  ;;  %v12275_v50 = vpack.c.bf16 %v549_v45, %v293_v44  ;;  %v679_v44 = vld [vmem:[#allocation5 + $0xfb8] sm:$0xff] }
 0x3de   :  { %12746 = vmatpush1.bf16.xpose.msra.mxu0 %v12745_v55  ;;  %12244 = vmatprep.subr.bf16.mxu1 %v12243_v56  ;;  %v140_v55 = vld [vmem:[#allocation2 + $0xe0] sm:$0xff]  ;;  %v2274_v56 = vcombine.high %v171_v26, %v171_v26 }
 0x3df   :  { %12748 = vmatprep.subr.bf16.mxu0 %v12747_v57  ;;  %v288_v57 = vld [vmem:[#allocation5 + $0x380] sm:$0xff]  ;;  %v1754_v63 = vrot.slane %v140_v55, %v13505_v17 }
 0x3e0   :  { %v12261_v3 = vpack.c.bf16 %v544_v58, %v288_v57  ;;  %v674_v57 = vld [vmem:[#allocation5 + $0xf90] sm:$0xff]  ;;  %v805_v58 = vld [vmem:[#allocation5 + $0x13a8] sm:$0xff] }
 0x3e4   :  { %6390 = vmatmul.mubr.f32.vlgmr.msra.gmra.mrb[0].mxu1 %v1727_v36  ;;  %v2281_v36 = vrot.slane %v171_v26, %v13505_v17  ;;  %v416_v26 = vld [vmem:[#allocation5 + $0x780] sm:$0xff] }
 0x3e5   :  { %12246 = vmatpush1.bf16.xpose.msra.mxu1 %v12245_v6  ;;  %10800 = vmatmul.mubr.f32.vlgmr.msra.gmra.mrb[0].mxu0 %v2264_v39  ;;  %v12255_v39 = vpack.c.bf16 %v1055_v32, %v799_v31  ;;  %v12767_v6 = vpack.c.bf16 %v1183_v1, %v927_v0  ;;  %v929_v31 = vld [vmem:[#allocation5 + $0x1788] sm:$0xff]  ;;  %v12773_v35 = vpack.c.bf16 %v672_v27, %v416_v26  ;;  %v1063_v26 = vld [vmem:[#allocation5 + $0x1bb8] sm:$0xff] }
 0x3e6   :  { %12750 = vmatpush1.bf16.xpose.msra.mxu0 %v12749_v7  ;;  %12248 = vmatprep.subr.bf16.mxu1 %v12247_v8  ;;  %v2289_v42 = vcombine.high %v2281_v36, %v2281_v36  ;;  %v1762_v7 = vcombine.high %v1754_v63, %v1754_v63  ;;  %v1185_v32 = vld [vmem:[#allocation5 + $0x1f88] sm:$0xff] }
 0x3e7   :  { %12752 = vmatprep.subr.bf16.mxu0 %v12751_v9  ;;  %6459 = vmatprep.mubr.f32.mxu1 %v1745_v10  ;;  %v800_v9 = vld [vmem:[#allocation5 + $0x1380] sm:$0xff] }
 0x3e8   :  { %10869 = vmatprep.mubr.f32.mxu0 %v2273_v11  ;;  %v1056_v10 = vld [vmem:[#allocation5 + $0x1b80] sm:$0xff]  ;;  %v926_v11 = vld [vmem:[#allocation5 + $0x1770] sm:$0xff] }
 0x3e9   :  { %v12265_v18 = vpack.c.bf16 %v1056_v10, %v800_v9  ;;  %v12769_v19 = vpack.c.bf16 %v1182_v12, %v926_v11  ;;  %v1186_v9 = vld [vmem:[#allocation5 + $0x1f90] sm:$0xff]  ;;  %v295_v10 = vld [vmem:[#allocation5 + $0x3b8] sm:$0xff]  ;;  %v421_v12 = vld [vmem:[#allocation5 + $0x7a8] sm:$0xff] }
 0x3ea   :  { %v551_v11 = vld [vmem:[#allocation5 + $0xbb8] sm:$0xff] }
 0x3ed   :  { %12250 = vmatpush1.bf16.xpose.msra.mxu1 %v12249_v21  ;;  %v12771_v21 = vpack.c.bf16 %v673_v16, %v417_v15  ;;  %v12283_v16 = vpack.c.bf16 %v551_v11, %v295_v10  ;;  %v681_v10 = vld [vmem:[#allocation5 + $0xfc8] sm:$0xff] }
 0x3ee   :  { %12754 = vmatpush1.bf16.xpose.msra.mxu0 %v12753_v22  ;;  %12252 = vmatprep.subr.bf16.mxu1 %v12251_v23  ;;  %v1747_v22 = vcombine.high %v140_v55, %v140_v55  ;;  %v172_v23 = vld [vmem:[#allocation2 + $0x1e0] sm:$0xff] }
 0x3ef   :  { %12756 = vmatprep.subr.bf16.mxu0 %v12755_v24  ;;  %v290_v24 = vld [vmem:[#allocation5 + $0x390] sm:$0xff]  ;;  %v548_v55 = vld [vmem:[#allocation5 + $0xba0] sm:$0xff] }
 0x3f0   :  { %v1761_v30 = vrot.slane %v1747_v22, %v13505_v17  ;;  %v12269_v34 = vpack.c.bf16 %v546_v25, %v290_v24  ;;  %v550_v22 = vld [vmem:[#allocation5 + $0xbb0] sm:$0xff]  ;;  %v676_v24 = vld [vmem:[#allocation5 + $0xfa0] sm:$0xff]  ;;  %v807_v25 = vld [vmem:[#allocation5 + $0x13b8] sm:$0xff] }
 0x3f4   :  { %6460 = vmatmul.mubr.f32.vlgmr.msra.gmra.mrb[0].mxu1 %v1737_v2  ;;  %v2288_v2 = vrot.slane %v2274_v56, %v13505_v17  ;;  %v418_v56 = vld [vmem:[#allocation5 + $0x790] sm:$0xff] }
 0x3f5   :  { %12254 = vmatpush1.bf16.xpose.msra.mxu1 %v12253_v37  ;;  %10870 = vmatmul.mubr.f32.vlgmr.msra.gmra.mrb[0].mxu0 %v2271_v5  ;;  %v12263_v5 = vpack.c.bf16 %v1057_v62, %v801_v61  ;;  %v12775_v37 = vpack.c.bf16 %v1185_v32, %v929_v31  ;;  %v931_v61 = vld [vmem:[#allocation5 + $0x1798] sm:$0xff]  ;;  %v12781_v1 = vpack.c.bf16 %v674_v57, %v418_v56  ;;  %v1065_v56 = vld [vmem:[#allocation5 + $0x1bc8] sm:$0xff] }
 0x3f6   :  { %12758 = vmatpush1.bf16.xpose.msra.mxu0 %v12757_v38  ;;  %12256 = vmatprep.subr.bf16.mxu1 %v12255_v39  ;;  %v2290_v8 = vcombine.high %v2288_v2, %v2288_v2  ;;  %v1763_v38 = vcombine.high %v1761_v30, %v1761_v30  ;;  %v1187_v62 = vld [vmem:[#allocation5 + $0x1f98] sm:$0xff] }
 0x3f7   :  { %12760 = vmatprep.subr.bf16.mxu0 %v12759_v40  ;;  %6529 = vmatprep.mubr.f32.mxu1 %v1746_v41  ;;  %v802_v40 = vld [vmem:[#allocation5 + $0x1390] sm:$0xff] }
 0x3f8   :  { %10939 = vmatprep.mubr.f32.mxu0 %v2289_v42  ;;  %v1058_v41 = vld [vmem:[#allocation5 + $0x1b90] sm:$0xff]  ;;  %v928_v42 = vld [vmem:[#allocation5 + $0x1780] sm:$0xff] }
 0x3f9   :  { %v12273_v48 = vpack.c.bf16 %v1058_v41, %v802_v40  ;;  %v12777_v49 = vpack.c.bf16 %v1184_v43, %v928_v42  ;;  %v1188_v40 = vld [vmem:[#allocation5 + $0x1fa0] sm:$0xff]  ;;  %v297_v41 = vld [vmem:[#allocation5 + $0x3c8] sm:$0xff]  ;;  %v423_v43 = vld [vmem:[#allocation5 + $0x7b8] sm:$0xff] }
 0x3fa   :  { %v553_v42 = vld [vmem:[#allocation5 + $0xbc8] sm:$0xff] }
 0x3fd   :  { %12258 = vmatpush1.bf16.xpose.msra.mxu1 %v12257_v51  ;;  %v12779_v51 = vpack.c.bf16 %v675_v47, %v419_v46  ;;  %v12291_v47 = vpack.c.bf16 %v553_v42, %v297_v41  ;;  %v683_v41 = vld [vmem:[#allocation5 + $0xfd8] sm:$0xff] }
 0x3fe   :  { %12762 = vmatpush1.bf16.xpose.msra.mxu0 %v12761_v52  ;;  %12260 = vmatprep.subr.bf16.mxu1 %v12259_v53  ;;  %v141_v52 = vld [vmem:[#allocation2 + $0xe8] sm:$0xff]  ;;  %v2291_v53 = vcombine.high %v172_v23, %v172_v23 }
 0x3ff   :  { %12764 = vmatprep.subr.bf16.mxu0 %v12763_v54  ;;  %v292_v54 = vld [vmem:[#allocation5 + $0x3a0] sm:$0xff]  ;;  %v1771_v60 = vrot.slane %v141_v52, %v13505_v17 }
 0x400   :  { %v12277_v0 = vpack.c.bf16 %v548_v55, %v292_v54  ;;  %v678_v54 = vld [vmem:[#allocation5 + $0xfb0] sm:$0xff]  ;;  %v809_v55 = vld [vmem:[#allocation5 + $0x13c8] sm:$0xff] }
 0x404   :  { %6530 = vmatmul.mubr.f32.vlgmr.msra.gmra.mrb[0].mxu1 %v1744_v33  ;;  %v2298_v33 = vrot.slane %v172_v23, %v13505_v17  ;;  %v420_v23 = vld [vmem:[#allocation5 + $0x7a0] sm:$0xff] }
 0x405   :  { %12262 = vmatpush1.bf16.xpose.msra.mxu1 %v12261_v3  ;;  %10940 = vmatmul.mubr.f32.vlgmr.msra.gmra.mrb[0].mxu0 %v2281_v36  ;;  %v12271_v36 = vpack.c.bf16 %v1059_v29, %v803_v28  ;;  %v12783_v3 = vpack.c.bf16 %v1187_v62, %v931_v61  ;;  %v933_v28 = vld [vmem:[#allocation5 + $0x17a8] sm:$0xff]  ;;  %v12789_v32 = vpack.c.bf16 %v676_v24, %v420_v23  ;;  %v1067_v23 = vld [vmem:[#allocation5 + $0x1bd8] sm:$0xff] }
 0x406   :  { %12766 = vmatpush1.bf16.xpose.msra.mxu0 %v12765_v4  ;;  %12264 = vmatprep.subr.bf16.mxu1 %v12263_v5  ;;  %v2306_v39 = vcombine.high %v2298_v33, %v2298_v33  ;;  %v1779_v4 = vcombine.high %v1771_v60, %v1771_v60  ;;  %v1189_v29 = vld [vmem:[#allocation5 + $0x1fa8] sm:$0xff] }
 0x407   :  { %12768 = vmatprep.subr.bf16.mxu0 %v12767_v6  ;;  %6599 = vmatprep.mubr.f32.mxu1 %v1762_v7  ;;  %v804_v6 = vld [vmem:[#allocation5 + $0x13a0] sm:$0xff] }
 0x408   :  { %11009 = vmatprep.mubr.f32.mxu0 %v2290_v8  ;;  %v1060_v7 = vld [vmem:[#allocation5 + $0x1ba0] sm:$0xff]  ;;  %v930_v8 = vld [vmem:[#allocation5 + $0x1790] sm:$0xff] }
 0x409   :  { %v12281_v14 = vpack.c.bf16 %v1060_v7, %v804_v6  ;;  %v12785_v15 = vpack.c.bf16 %v1186_v9, %v930_v8  ;;  %v1190_v6 = vld [vmem:[#allocation5 + $0x1fb0] sm:$0xff]  ;;  %v299_v7 = vld [vmem:[#allocation5 + $0x3d8] sm:$0xff]  ;;  %v425_v9 = vld [vmem:[#allocation5 + $0x7c8] sm:$0xff] }
 0x40a   :  { %v555_v8 = vld [vmem:[#allocation5 + $0xbd8] sm:$0xff] }
 0x40d   :  { %12266 = vmatpush1.bf16.xpose.msra.mxu1 %v12265_v18  ;;  %v12787_v18 = vpack.c.bf16 %v677_v13, %v421_v12  ;;  %v12299_v13 = vpack.c.bf16 %v555_v8, %v299_v7  ;;  %v175_v8 = vld [vmem:[#allocation2 + $0x1f8] sm:$0xff] }
 0x40e   :  { %12770 = vmatpush1.bf16.xpose.msra.mxu0 %v12769_v19  ;;  %12268 = vmatprep.subr.bf16.mxu1 %v12267_v20  ;;  %v1764_v19 = vcombine.high %v141_v52, %v141_v52  ;;  %v173_v20 = vld [vmem:[#allocation2 + $0x1e8] sm:$0xff]  ;;  %v552_v52 = vld [vmem:[#allocation5 + $0xbc0] sm:$0xff] }
 0x40f   :  { %12772 = vmatprep.subr.bf16.mxu0 %v12771_v21  ;;  %v294_v21 = vld [vmem:[#allocation5 + $0x3b0] sm:$0xff] }
 0x410   :  { %v1778_v27 = vrot.slane %v1764_v19, %v13505_v17  ;;  %v12285_v31 = vpack.c.bf16 %v550_v22, %v294_v21  ;;  %v554_v19 = vld [vmem:[#allocation5 + $0xbd0] sm:$0xff]  ;;  %v680_v21 = vld [vmem:[#allocation5 + $0xfc0] sm:$0xff]  ;;  %v811_v22 = vld [vmem:[#allocation5 + $0x13d8] sm:$0xff] }
 0x414   :  { %6600 = vmatmul.mubr.f32.vlgmr.msra.gmra.mrb[0].mxu1 %v1754_v63  ;;  %v2305_v63 = vrot.slane %v2291_v53, %v13505_v17  ;;  %v422_v53 = vld [vmem:[#allocation5 + $0x7b0] sm:$0xff] }
 0x415   :  { %12270 = vmatpush1.bf16.xpose.msra.mxu1 %v12269_v34  ;;  %11010 = vmatmul.mubr.f32.vlgmr.msra.gmra.mrb[0].mxu0 %v2288_v2  ;;  %v12279_v2 = vpack.c.bf16 %v1061_v59, %v805_v58  ;;  %v12791_v34 = vpack.c.bf16 %v1189_v29, %v933_v28  ;;  %v935_v58 = vld [vmem:[#allocation5 + $0x17b8] sm:$0xff]  ;;  %v12797_v62 = vpack.c.bf16 %v678_v54, %v422_v53 }
 0x416   :  { %12774 = vmatpush1.bf16.xpose.msra.mxu0 %v12773_v35  ;;  %12272 = vmatprep.subr.bf16.mxu1 %v12271_v36  ;;  %v2307_v5 = vcombine.high %v2305_v63, %v2305_v63  ;;  %v1780_v35 = vcombine.high %v1778_v27, %v1778_v27  ;;  %v1191_v59 = vld [vmem:[#allocation5 + $0x1fb8] sm:$0xff] }
 0x417   :  { %12776 = vmatprep.subr.bf16.mxu0 %v12775_v37  ;;  %6669 = vmatprep.mubr.f32.mxu1 %v1763_v38  ;;  %v806_v37 = vld [vmem:[#allocation5 + $0x13b0] sm:$0xff]  ;;  %v13178_v53 = vld.sshfl [vmem:[#allocation2 + $0xf8] sm:$0xff pattern:$0x76325410] }
 0x418   :  { %11079 = vmatprep.mubr.f32.mxu0 %v2306_v39  ;;  %v1062_v38 = vld [vmem:[#allocation5 + $0x1bb0] sm:$0xff]  ;;  %v932_v39 = vld [vmem:[#allocation5 + $0x17a0] sm:$0xff]  ;;  %v939_v54 = vld [vmem:[#allocation5 + $0x17d8] sm:$0xff] }
 0x419   :  { %v12289_v45 = vpack.c.bf16 %v1062_v38, %v806_v37  ;;  %v12793_v46 = vpack.c.bf16 %v1188_v40, %v932_v39  ;;  %v1192_v37 = vld [vmem:[#allocation5 + $0x1fc0] sm:$0xff]  ;;  %v301_v38 = vld [vmem:[#allocation5 + $0x3e8] sm:$0xff]  ;;  %v427_v40 = vld [vmem:[#allocation5 + $0x7d8] sm:$0xff] }
 0x41a   :  { %v557_v39 = vld [vmem:[#allocation5 + $0xbe8] sm:$0xff] }
 0x41d   :  { %12274 = vmatpush1.bf16.xpose.msra.mxu1 %v12273_v48  ;;  %v12795_v48 = vpack.c.bf16 %v679_v44, %v423_v43  ;;  %v12307_v44 = vpack.c.bf16 %v557_v39, %v301_v38  ;;  %v11578_v39 = vld [vmem:[#allocation8 + $0x10] sm:$0xff] }
 0x41e   :  { %12778 = vmatpush1.bf16.xpose.msra.mxu0 %v12777_v49  ;;  %12276 = vmatprep.subr.bf16.mxu1 %v12275_v50  ;;  %v142_v49 = vld [vmem:[#allocation2 + $0xf0] sm:$0xff]  ;;  %v2308_v50 = vcombine.high %v173_v20, %v173_v20 }
 0x41f   :  { %12780 = vmatprep.subr.bf16.mxu0 %v12779_v51  ;;  %v296_v51 = vld [vmem:[#allocation5 + $0x3c0] sm:$0xff]  ;;  %v1788_v57 = vrot.slane %v142_v49, %v13505_v17 }
 0x420   :  { %v12293_v61 = vpack.c.bf16 %v552_v52, %v296_v51  ;;  %v813_v51 = vld [vmem:[#allocation5 + $0x13e8] sm:$0xff] }
 0x421   :  { %v1069_v52 = vld [vmem:[#allocation5 + $0x1be8] sm:$0xff] }
 0x424   :  { %6670 = vmatmul.mubr.f32.vlgmr.msra.gmra.mrb[0].mxu1 %v1761_v30  ;;  %v2315_v30 = vrot.slane %v173_v20, %v13505_v17  ;;  %v424_v20 = vld [vmem:[#allocation5 + $0x7c0] sm:$0xff] }
 0x425   :  { %12278 = vmatpush1.bf16.xpose.msra.mxu1 %v12277_v0  ;;  %11080 = vmatmul.mubr.f32.vlgmr.msra.gmra.mrb[0].mxu0 %v2298_v33  ;;  %v12287_v33 = vpack.c.bf16 %v1063_v26, %v807_v25  ;;  %v12799_v0 = vpack.c.bf16 %v1191_v59, %v935_v58  ;;  %v937_v25 = vld [vmem:[#allocation5 + $0x17c8] sm:$0xff]  ;;  %v12805_v29 = vpack.c.bf16 %v680_v21, %v424_v20  ;;  %v431_v20 = vld [vmem:[#allocation5 + $0x7f8] sm:$0xff] }
 0x426   :  { %12782 = vmatpush1.bf16.xpose.msra.mxu0 %v12781_v1  ;;  %12280 = vmatprep.subr.bf16.mxu1 %v12279_v2  ;;  %v2323_v36 = vcombine.high %v2315_v30, %v2315_v30  ;;  %v1796_v1 = vcombine.high %v1788_v57, %v1788_v57  ;;  %v1193_v26 = vld [vmem:[#allocation5 + $0x1fc8] sm:$0xff]  ;;  %v12311_v59 = vpack.c.bf16 %v1069_v52, %v813_v51  ;;  %v687_v21 = vld [vmem:[#allocation5 + $0xff8] sm:$0xff]  ;;  %v11779_v52 = vld [vmem:[#allocation10] ss:$0 sm:$0xff] }
 0x427   :  { %12784 = vmatprep.subr.bf16.mxu0 %v12783_v3  ;;  %6739 = vmatprep.mubr.f32.mxu1 %v1779_v4  ;;  %v808_v3 = vld [vmem:[#allocation5 + $0x13c0] sm:$0xff] }
 0x428   :  { %11149 = vmatprep.mubr.f32.mxu0 %v2307_v5  ;;  %v1064_v4 = vld [vmem:[#allocation5 + $0x1bc0] sm:$0xff]  ;;  %v934_v5 = vld [vmem:[#allocation5 + $0x17b0] sm:$0xff] }
 0x429   :  { %v12297_v11 = vpack.c.bf16 %v1064_v4, %v808_v3  ;;  %v12801_v12 = vpack.c.bf16 %v1190_v6, %v934_v5  ;;  %v429_v3 = vld [vmem:[#allocation5 + $0x7e8] sm:$0xff] }
 0x42a   :  { %v685_v4 = vld [vmem:[#allocation5 + $0xfe8] sm:$0xff] }
 0x42b   :  { %v12819_v7 = vpack.c.bf16 %v685_v4, %v429_v3  ;;  %v11674_v51 = vld [vmem:[#allocation11] sm:$0xff] }
 0x42d   :  { %12282 = vmatpush1.bf16.xpose.msra.mxu1 %v12281_v14  ;;  %v12803_v14 = vpack.c.bf16 %v681_v10, %v425_v9  ;;  %v2349_v9 = vrot.slane %v175_v8, %v13505_v17  ;;  %v428_v10 = vld [vmem:[#allocation5 + $0x7e0] sm:$0xff] }
 0x42e   :  { %12786 = vmatpush1.bf16.xpose.msra.mxu0 %v12785_v15  ;;  %12284 = vmatprep.subr.bf16.mxu1 %v12283_v16  ;;  %v1781_v15 = vcombine.high %v142_v49, %v142_v49  ;;  %v174_v16 = vld [vmem:[#allocation2 + $0x1f0] sm:$0xff] }
 0x42f   :  { %12788 = vmatprep.subr.bf16.mxu0 %v12787_v18  ;;  %v298_v18 = vld [vmem:[#allocation5 + $0x3d0] sm:$0xff] }
 0x430   :  { %v1795_v24 = vrot.slane %v1781_v15, %v13505_v17  ;;  %v12301_v28 = vpack.c.bf16 %v554_v19, %v298_v18  ;;  %v426_v49 = vld [vmem:[#allocation5 + $0x7d0] sm:$0xff]  ;;  %v2357_v15 = vcombine.high %v2349_v9, %v2349_v9  ;;  %v940_v18 = vld [vmem:[#allocation5 + $0x17e0] sm:$0xff] }
 0x431   :  { %v1196_v19 = vld [vmem:[#allocation5 + $0x1fe0] sm:$0xff] }
 0x434   :  { %6740 = vmatmul.mubr.f32.vlgmr.msra.gmra.mrb[0].mxu1 %v1771_v60  ;;  %v2322_v60 = vrot.slane %v2308_v50, %v13505_v17  ;;  %v682_v50 = vld [vmem:[#allocation5 + $0xfd0] sm:$0xff] }
 0x435   :  { %12286 = vmatpush1.bf16.xpose.msra.mxu1 %v12285_v31  ;;  %11150 = vmatmul.mubr.f32.vlgmr.msra.gmra.mrb[0].mxu0 %v2305_v63  ;;  %v12295_v63 = vpack.c.bf16 %v1065_v56, %v809_v55  ;;  %v12807_v31 = vpack.c.bf16 %v1193_v26, %v937_v25  ;;  %v1195_v55 = vld [vmem:[#allocation5 + $0x1fd8] sm:$0xff]  ;;  %v12813_v58 = vpack.c.bf16 %v682_v50, %v426_v49  ;;  %v430_v26 = vld [vmem:[#allocation5 + $0x7f0] sm:$0xff] }
 0x436   :  { %12790 = vmatpush1.bf16.xpose.msra.mxu0 %v12789_v32  ;;  %12288 = vmatprep.subr.bf16.mxu1 %v12287_v33  ;;  %v2324_v2 = vcombine.high %v2322_v60, %v2322_v60  ;;  %v1797_v32 = vcombine.high %v1795_v24, %v1795_v24 }
 0x437   :  { %12792 = vmatprep.subr.bf16.mxu0 %v12791_v34  ;;  %6809 = vmatprep.mubr.f32.mxu1 %v1780_v35  ;;  %v810_v34 = vld [vmem:[#allocation5 + $0x13d0] sm:$0xff] }
 0x438   :  { %11219 = vmatprep.mubr.f32.mxu0 %v2323_v36  ;;  %v1066_v35 = vld [vmem:[#allocation5 + $0x1bd0] sm:$0xff]  ;;  %v936_v36 = vld [vmem:[#allocation5 + $0x17c0] sm:$0xff] }
 0x439   :  { %v12305_v42 = vpack.c.bf16 %v1066_v35, %v810_v34  ;;  %v12809_v43 = vpack.c.bf16 %v1192_v37, %v936_v36  ;;  %v1198_v34 = vld [vmem:[#allocation5 + $0x1ff0] sm:$0xff]  ;;  %v11576_v36 = vld [vmem:[#allocation8] sm:$0xff] }
 0x43a   :  { %v11577_v37 = vld [vmem:[#allocation8 + $0x8] sm:$0xff] }
 0x43b   :  { %v12836_v38 = vpack.c.bf16 %v11577_v37, %v11576_v36 }
 0x43d   :  { %12290 = vmatpush1.bf16.xpose.msra.mxu1 %v12289_v45  ;;  %v12811_v45 = vpack.c.bf16 %v683_v41, %v427_v40  ;;  %v11579_v40 = vld [vmem:[#allocation8 + $0x18] sm:$0xff] }
 0x43e   :  { %12794 = vmatpush1.bf16.xpose.msra.mxu0 %v12793_v46  ;;  %12292 = vmatprep.subr.bf16.mxu1 %v12291_v47  ;;  %v2325_v46 = vcombine.high %v174_v16, %v174_v16  ;;  %v300_v47 = vld [vmem:[#allocation5 + $0x3e0] sm:$0xff]  ;;  %v12840_v41 = vpack.c.bf16 %v11579_v40, %v11578_v39 }
 0x43f   :  { %12796 = vmatprep.subr.bf16.mxu0 %v12795_v48  ;;  %v556_v48 = vld [vmem:[#allocation5 + $0xbe0] sm:$0xff] }
 0x440   :  { %v2339_v56 = vrot.slane %v2325_v46, %v13505_v17 }
 0x444   :  { %6810 = vmatmul.mubr.f32.vlgmr.msra.gmra.mrb[0].mxu1 %v1778_v27  ;;  %v2332_v27 = vrot.slane %v174_v16, %v13505_v17 }
 0x445   :  { %12294 = vmatpush1.bf16.xpose.msra.mxu1 %v12293_v61  ;;  %11220 = vmatmul.mubr.f32.vlgmr.msra.gmra.mrb[0].mxu0 %v2315_v30  ;;  %v12303_v30 = vpack.c.bf16 %v1067_v23, %v811_v22  ;;  %v1813_v61 = vcombine.high %v13178_v53, %v13178_v53  ;;  %v12825_v22 = vpack.c.bf16 %v1196_v19, %v940_v18 }
 0x446   :  { %12798 = vmatpush1.bf16.xpose.msra.mxu0 %v12797_v62  ;;  %12296 = vmatprep.subr.bf16.mxu1 %v12295_v63  ;;  %v2340_v33 = vcombine.high %v2332_v27, %v2332_v27  ;;  %v2341_v62 = vcombine.high %v2339_v56, %v2339_v56  ;;  %v812_v63 = vld [vmem:[#allocation5 + $0x13e0] sm:$0xff]  ;;  %v2342_v23 = vcombine.high %v175_v8, %v175_v8 }
 0x447   :  { %12800 = vmatprep.subr.bf16.mxu0 %v12799_v0  ;;  %6879 = vmatprep.mubr.f32.mxu1 %v1796_v1  ;;  %v1068_v0 = vld [vmem:[#allocation5 + $0x1be0] sm:$0xff]  ;;  %v938_v1 = vld [vmem:[#allocation5 + $0x17d0] sm:$0xff] }
 0x448   :  { %11289 = vmatprep.mubr.f32.mxu0 %v2324_v2  ;;  %v1194_v2 = vld [vmem:[#allocation5 + $0x1fd0] sm:$0xff]  ;;  %v12313_v5 = vpack.c.bf16 %v1068_v0, %v812_v63  ;;  %v2356_v25 = vrot.slane %v2342_v23, %v13505_v17  ;;  %v13377_v17 = vmov 0.0|0.0  }
 0x449   :  { %v12817_v6 = vpack.c.bf16 %v1194_v2, %v938_v1 }
 0x44d   :  { %12298 = vmatpush1.bf16.xpose.msra.mxu1 %v12297_v11  ;;  %v684_v11 = vld [vmem:[#allocation5 + $0xfe0] sm:$0xff] }
 0x44e   :  { %12802 = vmatpush1.bf16.xpose.msra.mxu0 %v12801_v12  ;;  %12300 = vmatprep.subr.bf16.mxu1 %v12299_v13  ;;  %v941_v12 = vld [vmem:[#allocation5 + $0x17e8] sm:$0xff] }
 0x44f   :  { %12804 = vmatprep.subr.bf16.mxu0 %v12803_v14  ;;  %v1197_v13 = vld [vmem:[#allocation5 + $0x1fe8] sm:$0xff]  ;;  %v12821_v14 = vpack.c.bf16 %v684_v11, %v428_v10 }
 0x450   :  { %v12823_v16 = vpack.c.bf16 %v1197_v13, %v941_v12 }
 0x454   :  { %6880 = vmatmul.mubr.f32.vlgmr.msra.gmra.mrb[0].mxu1 %v1788_v57  ;;  %v12309_v57 = vpack.c.bf16 %v556_v48, %v300_v47 }
 0x455   :  { %12302 = vmatpush1.bf16.xpose.msra.mxu1 %v12301_v28  ;;  %11290 = vmatmul.mubr.f32.vlgmr.msra.gmra.mrb[0].mxu0 %v2322_v60  ;;  %v12815_v60 = vpack.c.bf16 %v1195_v55, %v939_v54  ;;  %v943_v28 = vld [vmem:[#allocation5 + $0x17f8] sm:$0xff] }
 0x456   :  { %12806 = vmatpush1.bf16.xpose.msra.mxu0 %v12805_v29  ;;  %12304 = vmatprep.subr.bf16.mxu1 %v12303_v30  ;;  %v1199_v29 = vld [vmem:[#allocation5 + $0x1ff8] sm:$0xff] }
 0x457   :  { %12808 = vmatprep.subr.bf16.mxu0 %v12807_v31  ;;  %6949 = vmatprep.mubr.f32.mxu1 %v1797_v32  ;;  %v2358_v31 = vcombine.high %v2356_v25, %v2356_v25  ;;  %v12831_v32 = vpack.c.bf16 %v1199_v29, %v943_v28 }
 0x458   :  { %11359 = vmatprep.mubr.f32.mxu0 %v2340_v33  ;;  %v942_v33 = vld [vmem:[#allocation5 + $0x17f0] sm:$0xff] }
 0x459   :  { %v12833_v35 = vpack.c.bf16 %v1198_v34, %v942_v33 }
 0x45d   :  { %12306 = vmatpush1.bf16.xpose.msra.mxu1 %v12305_v42  ;;  %v13379_v42 = vmov 0.0  }
 0x45e   :  { %12810 = vmatpush1.bf16.xpose.msra.mxu0 %v12809_v43  ;;  %12308 = vmatprep.subr.bf16.mxu1 %v12307_v44 }
 0x45f   :  { %12812 = vmatprep.subr.bf16.mxu0 %v12811_v45  ;;  %v11778_v45 = vld [vmem:[#allocation7] ss:$0 sm:$0xff] }
 0x464   :  { %6950 = vmatmul.mubr.f32.vlgmr.msra.gmra.mrb[0].mxu1 %v1795_v24  ;;  %v12827_v24 = vpack.c.bf16 %v687_v21, %v431_v20 }
 0x465   :  { %12310 = vmatpush1.bf16.xpose.msra.mxu1 %v12309_v57  ;;  %11360 = vmatmul.mubr.f32.vlgmr.msra.gmra.mrb[0].mxu0 %v2332_v27  ;;  %v686_v27 = vld [vmem:[#allocation5 + $0xff0] sm:$0xff]  ;;  %v11785_v57 = vld [vmem:[#allocation13] ss:$0 sm:$0xff] }
 0x466   :  { %12814 = vmatpush1.bf16.xpose.msra.mxu0 %v12813_v58  ;;  %12312 = vmatprep.subr.bf16.mxu1 %v12311_v59  ;;  %v12829_v30 = vpack.c.bf16 %v686_v27, %v430_v26 }
 0x467   :  { %12816 = vmatprep.subr.bf16.mxu0 %v12815_v60  ;;  %7019 = vmatprep.mubr.f32.mxu1 %v1813_v61 }
 0x468   :  { %11429 = vmatprep.mubr.f32.mxu0 %v2341_v62 }
 0x46d   :  { %12314 = vmatpush1.bf16.xpose.msra.mxu1 %v12313_v5 }
 0x46e   :  { %12818 = vmatpush1.bf16.xpose.msra.mxu0 %v12817_v6  ;;  %12835 = vmatprep.subr.bf16.mxu1 %v13377_v17 }
 0x46f   :  { %12820 = vmatprep.subr.bf16.mxu0 %v12819_v7 }
 0x474   :  { %7020 = vmatmul.mubr.f32.vlgmr.msra.gmra.mrb[0].mxu1 %v13178_v53 }
 0x475   :  { %11430 = vmatmul.mubr.f32.vlgmr.msra.gmra.mrb[0].mxu0 %v2339_v56  ;;  %12838 = vmatpush3.bf16.xpose.msk.msra.mxu1 %vm12837_vm1, %v12836_v38 }
 0x476   :  { %12822 = vmatpush1.bf16.xpose.msra.mxu0 %v12821_v14  ;;  %11499 = vmatprep.mubr.f32.mxu0 %v2357_v15 }
 0x477   :  { %12824 = vmatprep.subr.bf16.mxu0 %v12823_v16  ;;  %12839 = vmatprep.subr.bf16.mxu1 %v13377_v17 }
 0x478   :  { %11803 = vmatprep.mubr.msk.f32.mxu1 %vm13378_vm2, %v13379_v42 }
 0x47d   :  { %12842 = vmatpush3.bf16.xpose.msk.msra.mxu1 %vm12837_vm1, %v12840_v41 }
 0x47e   :  { %12826 = vmatpush1.bf16.xpose.msra.mxu0 %v12825_v22  ;;  %11806 = vmatprep.subr.mxu1 %v13379_v42 }
 0x47f   :  { %12828 = vmatprep.subr.bf16.mxu0 %v12827_v24 }
 0x485   :  { %11500 = vmatmul.mubr.f32.vlgmr.msra.gmra.mrb[0].mxu0 %v2349_v9 }
 0x486   :  { %12830 = vmatpush1.bf16.xpose.msra.mxu0 %v12829_v30  ;;  %11569 = vmatprep.mubr.f32.mxu0 %v2358_v31 }
 0x487   :  { %12832 = vmatprep.subr.bf16.mxu0 %v12831_v32 }
 0x48e   :  { %12834 = vmatpush1.bf16.xpose.msra.mxu0 %v12833_v35 }
 0x495   :  { %11570 = vmatmul.mubr.f32.vlgmr.msra.gmra.mrb[0].mxu0 %v2356_v25 }
 0x547   :  { %v7021_v43 = vpop.f32.mrb[0].mxu1 }
 0x548   :  { %v7023_v44 = vpop.f32.mrb[1].mxu1  ;;  %v12843_v46 = vadd.f32 %v11778_v45, %v7021_v43 }
 0x568   :  { %v11571_v47 = vpop.f32.mrb[0].mxu0 }
 0x569   :  { %v12844_v48 = vadd.f32 %v12843_v46, %v11571_v47  ;;  %v11573_v49 = vpop.f32.mrb[1].mxu0 }
 0x56b   :  { %v11575_v50 = vmax.f32 %v12844_v48, 0.0 }
 0x56d   :  { %11804 = vmatmul.mubr.msk.f32.vlgmr.msra.gmra.mrb[2].mxu1 %vm11587_vm0, %v11575_v50 }
 0x56e   :  { %11808 = vmatprep.mubr.msk.f32.mxu1 %vm13378_vm2, %v13379_v42  ;;  %11807 = vmatpush3.xpose.msk.msra.mxu1 %vm11587_vm0, %v11674_v51 }
 0x640   :  { %v11669_v53 = vpop.f32.mrb[2].mxu1 }
 0x641   :  { %v11670_v54 = vadd.f32 %v11779_v52, %v11669_v53  ;;  %v11805_v55 = vpop.f32.mrb[3].mxu1 }
 0x643   :  { %v11673_v56 = vmax.f32 %v11670_v54, 0.0 }
 0x645   :  { %11809 = vmatmul.mubr.msk.f32.vlgmr.msra.gmra.mrb[4].mxu1 %vm11587_vm0, %v11673_v56 }
 0x718   :  { %v11754_v58 = vpop.f32.mrb[4].mxu1 }
 0x719   :  { %v11755_v59 = vadd.f32 %v11785_v57, %v11754_v58  ;;  %v11810_v60 = vpop.f32.mrb[5].mxu1 }
 0x71b   :  { %11759 = vst.msk [vmem:[#allocation14] sm:$0x3] %vm11758_vm3, %v11755_v59 }
 0x71c   :  { %13344 = shalt.err (!%p13341_p4)
}
 0x71d   :  { %s13345_s3 = scalar_lea.hbm %s13658_s7, 32 }
 0x71e   :  { %p13346_p5 = scmp.ne.s32.totalorder %s13658_s7, %s13345_s3  ;;  %p13349_p6 = scmp.lt.u32.totalorder %s13345_s3, %s13658_s7 }
 0x720   :  { %p13351_p7 = pnand %p13349_p6, %p13346_p5 }
 0x722   :  { %13354 = shalt.err (!%p13351_p7)
}
 0x723   :  { %11769 = dma.vmem_to_hbm [thread:$0]  %s11767_s14, 32, %s13658_s7, [#allocation4]  }
 0x724   :  { %13363 = dma.done.wait [#allocation4], 32  }
 0x725   :  { %13364 = vsyncadd [#allocation4], 4294967264 }
 0x726   :  { %11773 = vsyncpa [#allocation3], 1 }
 0x727   :  { %11774 = vsyncpa [#allocation6], 1 }
 0x728   :  { %11775 = vsyncpa [#allocation9], 1 }
 0x729   :  { %11776 = vsyncpa [#allocation12], 1 }
 0x72a   :  { %11777 = vsyncpa [#allocation4], 1 }

</bundles_post_ra>
